<compile_context>
chip_gen: v6e
topology: v6e:2x2x1
jax: 0.10.0
libtpu: 0.0.40
codegen_flags: <defaults>
</compile_context>

<pallas_src>
import jax
import jax.numpy as jnp
from jax.experimental import pallas as pl
from jax.experimental.pallas import tpu as pltpu


NUM_CLASSES = 3
N_CHUNKS = 4            # fc1-weight DMA chunks (overlap DMA tail with chunk dots)


def _vmem_spec():
    return pl.BlockSpec(memory_space=pltpu.MemorySpace.VMEM)


# ---------------- one-time parameter preparation (hoisted out of forward) ----------------

def prepare_params(params):
    wc, bc = params["conv_w"], params["conv_b"]          # (256,12,3,3), (256,)
    w1, b1 = params["fc1_w"], params["fc1_b"]            # (256,4096), (256,)
    w2, b2 = params["fc2_w"], params["fc2_b"]            # (3,256), (3,)

    Co, Ci, KH, KW = wc.shape
    K = KH * KW * Ci                                      # 108
    Kp = ((K + 127) // 128) * 128                         # 128 (MXU aligned)

    # conv weight (O,I,kh,kw) -> (kh,kw,I,O) -> (K,O), zero-pad K to 128, bf16
    wc_mat = jnp.transpose(wc, (2, 3, 1, 0)).reshape(K, Co)
    wc_mat = jnp.pad(wc_mat, ((0, Kp - K), (0, 0))).astype(jnp.bfloat16)

    # fc1 weight: PyTorch flatten order is f = c*S + s (s = h2*Wp + w2).
    # Kernel builds the flat activation with column order s*Co + c, so permute
    # once here: w1_flat[s*Co + c, j] = w1[j, c*S + s]; split into N_CHUNKS row
    # slabs for the chunked manual DMA.
    D1 = w1.shape[0]                                      # 256
    S = w1.shape[1] // Co                                 # 16 pooled spatial positions
    w1_flat = jnp.transpose(w1.reshape(D1, Co, S), (2, 1, 0)).reshape(S * Co, D1)
    w1_flat = w1_flat.reshape(N_CHUNKS, (S * Co) // N_CHUNKS, D1).astype(jnp.bfloat16)

    # fc2: transpose + pad output dim 3 -> 128 for a lane-dense final store.
    D2, D2p = w2.shape[0], 128
    w2t = jnp.pad(w2.T, ((0, 0), (0, D2p - D2))).astype(jnp.bfloat16)   # (256,128)
    b2p = jnp.pad(b2, ((0, D2p - D2),)).reshape(1, D2p).astype(jnp.float32)

    return dict(
        wc_mat=wc_mat,                                    # (128, 256)     bf16
        bc=bc.reshape(1, Co).astype(jnp.float32),         # (1, 256)       f32
        w1c=w1_flat,                                      # (4, 1024, 256) bf16 (HBM)
        b1=b1.reshape(1, D1).astype(jnp.float32),         # (1, 256)       f32
        w2t=w2t,                                          # (256, 128)     bf16
        b2=b2p,                                           # (1, 128)       f32
    )


# ---------------- fused forward ----------------

def simple_cnn_forward(x_nchw, prep):
    N, C, H, W = x_nchw.shape                             # (2, 12, 8, 8)
    Hp, Wp = H // 2, W // 2
    S = Hp * Wp                                           # 16 pooling windows / image
    P = N * S                                             # 32 pooled rows
    Kp, Co = prep["wc_mat"].shape                         # 128, 256
    K = 9 * C                                             # 108
    D1 = prep["b1"].shape[1]                              # 256
    D2p = prep["w2t"].shape[1]                            # 128
    F1 = S * Co                                           # 4096
    CK = F1 // N_CHUNKS                                   # 1024

    # ---- host glue: im2col (3x3, stride 1, pad 1), rows ordered (dh, dw, h2, w2, n) ----
    # (layout plumbing on a ~3 KB input; see TODO(synk) at top of file)
    x = jnp.transpose(x_nchw, (0, 2, 3, 1))               # NHWC
    xp = jnp.pad(x, ((0, 0), (1, 1), (1, 1), (0, 0)))
    cols = [xp[:, kh:kh + H, kw:kw + W, :] for kh in range(3) for kw in range(3)]
    patches = jnp.stack(cols, axis=3).reshape(N, H, W, K)         # (n, h, w, K)
    patches = patches.reshape(N, Hp, 2, Wp, 2, K)                 # (n, h2, dh, w2, dw, K)
    patches = jnp.transpose(patches, (2, 4, 1, 3, 0, 5)).reshape(4, P, K)
    patches = jnp.pad(patches, ((0, 0), (0, 0), (0, Kp - K))).astype(jnp.bfloat16)

    def fused_kernel(p_ref, wc_ref, bc_ref, w1_hbm, b1_ref, w2_ref, b2_ref,
                     o_ref, w1_vmem, flat_ref, pooled_ref, dma_sem):
        # Kick off all fc1-weight chunk DMAs immediately; they overlap conv+pool.
        w1_cp = [pltpu.make_async_copy(w1_hbm.at[i], w1_vmem.at[i], dma_sem.at[i])
                 for i in range(N_CHUNKS)]
        for cp in w1_cp:
            cp.start()

        # conv (+bias+ReLU) fused with the 2x2 max-pool: one (32,128)@(128,256)
        # dot per pool tap, running max (relu and +bias commute with max).
        m = jnp.dot(p_ref[0], wc_ref[...], preferred_element_type=jnp.float32)
        for t in range(1, 4):
            m = jnp.maximum(m, jnp.dot(p_ref[t], wc_ref[...],
                                       preferred_element_type=jnp.float32))
        pooled_ref[...] = jnp.maximum(m + bc_ref[...], 0.0).astype(jnp.bfloat16)

        # Scatter the pooled rows (row = s*N + n) into a lane-major (N, 4096)
        # flat activation with column order s*Co + c (matches w1c permutation).
        for s in range(S):
            flat_ref[:, s * Co:(s + 1) * Co] = pooled_ref[s * N:(s + 1) * N, :]

        # fc1 as one K=4096 contraction, accumulated per DMA chunk as it lands.
        acc = jnp.zeros((N, D1), jnp.float32)
        for i in range(N_CHUNKS):
            w1_cp[i].wait()
            acc = acc + jnp.dot(flat_ref[:, i * CK:(i + 1) * CK], w1_vmem[i],
                                preferred_element_type=jnp.float32)
        h = jnp.maximum(acc + b1_ref[...], 0.0)            # (N, 256)

        # fc2 (output padded to 128 lanes; sliced outside the kernel)
        o_ref[...] = jnp.dot(h.astype(jnp.bfloat16), w2_ref[...],
                             preferred_element_type=jnp.float32) + b2_ref[...]

    out = pl.pallas_call(
        fused_kernel,
        out_shape=jax.ShapeDtypeStruct((N, D2p), jnp.float32),
        in_specs=[
            _vmem_spec(),                           # patches (4, 32, 128) bf16
            _vmem_spec(),                           # conv weight matrix (128, 256) bf16
            _vmem_spec(),                           # conv bias
            pl.BlockSpec(memory_space=pl.ANY),      # fc1 weight stays in HBM, manual DMA
            _vmem_spec(),                           # fc1 bias
            _vmem_spec(),                           # fc2 weight (transposed, padded, bf16)
            _vmem_spec(),                           # fc2 bias (padded)
        ],
        out_specs=_vmem_spec(),
        scratch_shapes=[
            pltpu.VMEM((N_CHUNKS, CK, D1), jnp.bfloat16),   # staged fc1 weight (2 MB)
            pltpu.VMEM((N, F1), jnp.bfloat16),              # flat fc1 activation
            pltpu.VMEM((P, Co), jnp.bfloat16),              # pooled activations
            pltpu.SemaphoreType.DMA((N_CHUNKS,)),           # per-chunk DMA semaphores
        ],
    )(patches, prep["wc_mat"], prep["bc"], prep["w1c"],
      prep["b1"], prep["w2t"], prep["b2"])
    return out[:, :NUM_CLASSES]


# ---------------- deterministic parameter init (synthetic, PyTorch-style uniform) ----------------

def init_params(key):
    ks = jax.random.split(key, 6)

    def uni(k, shape, fan_in):
        bound = 1.0 / jnp.sqrt(jnp.float32(fan_in))
        return jax.random.uniform(k, shape, jnp.float32, -bound, bound)

    conv_fan = 12 * 3 * 3
    return dict(
        conv_w=uni(ks[0], (256, 12, 3, 3), conv_fan),
        conv_b=uni(ks[1], (256,), conv_fan),
        fc1_w=uni(ks[2], (256, 256 * 4 * 4), 256 * 4 * 4),
        fc1_b=uni(ks[3], (256,), 256 * 4 * 4),
        fc2_w=uni(ks[4], (3, 256), 256),
        fc2_b=uni(ks[5], (3,), 256),
    )


# ---------------- pure-JAX reference (NCHW, matches PyTorch semantics) ----------------

def reference_forward(x, p):
    N = x.shape[0]
    y = jax.lax.conv_general_dilated(
        x, p["conv_w"], window_strides=(1, 1), padding=((1, 1), (1, 1)),
        dimension_numbers=("NCHW", "OIHW", "NCHW"))
    y = jnp.maximum(y + p["conv_b"].reshape(1, -1, 1, 1), 0.0)
    y = y.reshape(N, 256, 4, 2, 4, 2).max(axis=(3, 5))      # maxpool 2x2
    y = y.reshape(N, 256 * 4 * 4)                            # NCHW flatten
    y = jnp.maximum(y @ p["fc1_w"].T + p["fc1_b"], 0.0)
    return y @ p["fc2_w"].T + p["fc2_b"]


if __name__ == "__main__":
    key = jax.random.PRNGKey(0)
    k_x, k_p = jax.random.split(key)
    params = init_params(k_p)
    prep = prepare_params(params)            # one-time weight re-layout (off the hot path)

    # fc1 expects 256*4*4 features after 2x2 pooling -> spatial must be 8x8
    x = jax.random.normal(k_x, (2, 12, 8, 8), jnp.float32)

    fwd = jax.jit(simple_cnn_forward)
    out = jax.block_until_ready(fwd(x, prep))

    ref = jax.block_until_ready(reference_forward(x, params))
    assert out.shape == (2, 3), out.shape
    assert jnp.allclose(out, ref, rtol=5e-2, atol=5e-2), (out, ref)

    print("KERNEL_OK")
</pallas_src>

<mosaic_0001>
module attributes {stable_mosaic.version = 11 : i64} {
  func.func @fused_kernel(%arg0: memref<4x32x128xbf16, #tpu.memory_space<vmem>>, %arg1: memref<128x256xbf16, #tpu.memory_space<vmem>>, %arg2: memref<1x256xf32, #tpu.memory_space<vmem>>, %arg3: memref<4x1024x256xbf16, #tpu.memory_space<any>>, %arg4: memref<1x256xf32, #tpu.memory_space<vmem>>, %arg5: memref<256x128xbf16, #tpu.memory_space<vmem>>, %arg6: memref<1x128xf32, #tpu.memory_space<vmem>>, %arg7: memref<2x128xf32, #tpu.memory_space<vmem>>, %arg8: memref<4x1024x256xbf16, #tpu.memory_space<vmem>>, %arg9: memref<2x4096xbf16, #tpu.memory_space<vmem>>, %arg10: memref<32x256xbf16, #tpu.memory_space<vmem>>, %arg11: memref<4x!tpu.dma_semaphore, #tpu.memory_space<semaphore_mem>>) attributes {dimension_semantics = [], scalar_prefetch = 0 : i64, scratch_operands = 4 : i64, tpu.core_type = #tpu.core_type<tc>} {
    %c0_i32 = arith.constant 0 : i32
    %c0_i32_0 = arith.constant 0 : i32
    %c0_i32_1 = arith.constant 0 : i32
    %c0_i32_2 = arith.constant 0 : i32
    %c0_i32_3 = arith.constant 0 : i32
    %0 = tpu.memref_slice %arg3[%c0_i32, %c0_i32_2, %c0_i32_3] : memref<4x1024x256xbf16, #tpu.memory_space<any>> -> memref<1x1024x256xbf16, #tpu.memory_space<any>>
    %1 = tpu.memref_squeeze %0 : memref<1x1024x256xbf16, #tpu.memory_space<any>> -> memref<1024x256xbf16, #tpu.memory_space<any>>
    %c0_i32_4 = arith.constant 0 : i32
    %c0_i32_5 = arith.constant 0 : i32
    %2 = tpu.memref_slice %arg8[%c0_i32_0, %c0_i32_4, %c0_i32_5] : memref<4x1024x256xbf16, #tpu.memory_space<vmem>> -> memref<1x1024x256xbf16, #tpu.memory_space<vmem>>
    %3 = tpu.memref_squeeze %2 : memref<1x1024x256xbf16, #tpu.memory_space<vmem>> -> memref<1024x256xbf16, #tpu.memory_space<vmem>>
    %4 = tpu.memref_slice %arg11[%c0_i32_1] : memref<4x!tpu.dma_semaphore, #tpu.memory_space<semaphore_mem>> -> memref<1x!tpu.dma_semaphore, #tpu.memory_space<semaphore_mem>>
    %5 = tpu.memref_squeeze %4 : memref<1x!tpu.dma_semaphore, #tpu.memory_space<semaphore_mem>> -> memref<!tpu.dma_semaphore, #tpu.memory_space<semaphore_mem>>
    tpu.enqueue_dma source(%1 : memref<1024x256xbf16, #tpu.memory_space<any>>) target(%3 : memref<1024x256xbf16, #tpu.memory_space<vmem>>) target_semaphore(%5 : memref<!tpu.dma_semaphore, #tpu.memory_space<semaphore_mem>>)
    %c1_i32 = arith.constant 1 : i32
    %c1_i32_6 = arith.constant 1 : i32
    %c1_i32_7 = arith.constant 1 : i32
    %c0_i32_8 = arith.constant 0 : i32
    %c0_i32_9 = arith.constant 0 : i32
    %6 = tpu.memref_slice %arg3[%c1_i32, %c0_i32_8, %c0_i32_9] : memref<4x1024x256xbf16, #tpu.memory_space<any>> -> memref<1x1024x256xbf16, #tpu.memory_space<any>>
    %7 = tpu.memref_squeeze %6 : memref<1x1024x256xbf16, #tpu.memory_space<any>> -> memref<1024x256xbf16, #tpu.memory_space<any>>
    %c0_i32_10 = arith.constant 0 : i32
    %c0_i32_11 = arith.constant 0 : i32
    %8 = tpu.memref_slice %arg8[%c1_i32_6, %c0_i32_10, %c0_i32_11] : memref<4x1024x256xbf16, #tpu.memory_space<vmem>> -> memref<1x1024x256xbf16, #tpu.memory_space<vmem>>
    %9 = tpu.memref_squeeze %8 : memref<1x1024x256xbf16, #tpu.memory_space<vmem>> -> memref<1024x256xbf16, #tpu.memory_space<vmem>>
    %10 = tpu.memref_slice %arg11[%c1_i32_7] : memref<4x!tpu.dma_semaphore, #tpu.memory_space<semaphore_mem>> -> memref<1x!tpu.dma_semaphore, #tpu.memory_space<semaphore_mem>>
    %11 = tpu.memref_squeeze %10 : memref<1x!tpu.dma_semaphore, #tpu.memory_space<semaphore_mem>> -> memref<!tpu.dma_semaphore, #tpu.memory_space<semaphore_mem>>
    tpu.enqueue_dma source(%7 : memref<1024x256xbf16, #tpu.memory_space<any>>) target(%9 : memref<1024x256xbf16, #tpu.memory_space<vmem>>) target_semaphore(%11 : memref<!tpu.dma_semaphore, #tpu.memory_space<semaphore_mem>>)
    %c2_i32 = arith.constant 2 : i32
    %c2_i32_12 = arith.constant 2 : i32
    %c2_i32_13 = arith.constant 2 : i32
    %c0_i32_14 = arith.constant 0 : i32
    %c0_i32_15 = arith.constant 0 : i32
    %12 = tpu.memref_slice %arg3[%c2_i32, %c0_i32_14, %c0_i32_15] : memref<4x1024x256xbf16, #tpu.memory_space<any>> -> memref<1x1024x256xbf16, #tpu.memory_space<any>>
    %13 = tpu.memref_squeeze %12 : memref<1x1024x256xbf16, #tpu.memory_space<any>> -> memref<1024x256xbf16, #tpu.memory_space<any>>
    %c0_i32_16 = arith.constant 0 : i32
    %c0_i32_17 = arith.constant 0 : i32
    %14 = tpu.memref_slice %arg8[%c2_i32_12, %c0_i32_16, %c0_i32_17] : memref<4x1024x256xbf16, #tpu.memory_space<vmem>> -> memref<1x1024x256xbf16, #tpu.memory_space<vmem>>
    %15 = tpu.memref_squeeze %14 : memref<1x1024x256xbf16, #tpu.memory_space<vmem>> -> memref<1024x256xbf16, #tpu.memory_space<vmem>>
    %16 = tpu.memref_slice %arg11[%c2_i32_13] : memref<4x!tpu.dma_semaphore, #tpu.memory_space<semaphore_mem>> -> memref<1x!tpu.dma_semaphore, #tpu.memory_space<semaphore_mem>>
    %17 = tpu.memref_squeeze %16 : memref<1x!tpu.dma_semaphore, #tpu.memory_space<semaphore_mem>> -> memref<!tpu.dma_semaphore, #tpu.memory_space<semaphore_mem>>
    tpu.enqueue_dma source(%13 : memref<1024x256xbf16, #tpu.memory_space<any>>) target(%15 : memref<1024x256xbf16, #tpu.memory_space<vmem>>) target_semaphore(%17 : memref<!tpu.dma_semaphore, #tpu.memory_space<semaphore_mem>>)
    %c3_i32 = arith.constant 3 : i32
    %c3_i32_18 = arith.constant 3 : i32
    %c3_i32_19 = arith.constant 3 : i32
    %c0_i32_20 = arith.constant 0 : i32
    %c0_i32_21 = arith.constant 0 : i32
    %18 = tpu.memref_slice %arg3[%c3_i32, %c0_i32_20, %c0_i32_21] : memref<4x1024x256xbf16, #tpu.memory_space<any>> -> memref<1x1024x256xbf16, #tpu.memory_space<any>>
    %19 = tpu.memref_squeeze %18 : memref<1x1024x256xbf16, #tpu.memory_space<any>> -> memref<1024x256xbf16, #tpu.memory_space<any>>
    %c0_i32_22 = arith.constant 0 : i32
    %c0_i32_23 = arith.constant 0 : i32
    %20 = tpu.memref_slice %arg8[%c3_i32_18, %c0_i32_22, %c0_i32_23] : memref<4x1024x256xbf16, #tpu.memory_space<vmem>> -> memref<1x1024x256xbf16, #tpu.memory_space<vmem>>
    %21 = tpu.memref_squeeze %20 : memref<1x1024x256xbf16, #tpu.memory_space<vmem>> -> memref<1024x256xbf16, #tpu.memory_space<vmem>>
    %22 = tpu.memref_slice %arg11[%c3_i32_19] : memref<4x!tpu.dma_semaphore, #tpu.memory_space<semaphore_mem>> -> memref<1x!tpu.dma_semaphore, #tpu.memory_space<semaphore_mem>>
    %23 = tpu.memref_squeeze %22 : memref<1x!tpu.dma_semaphore, #tpu.memory_space<semaphore_mem>> -> memref<!tpu.dma_semaphore, #tpu.memory_space<semaphore_mem>>
    tpu.enqueue_dma source(%19 : memref<1024x256xbf16, #tpu.memory_space<any>>) target(%21 : memref<1024x256xbf16, #tpu.memory_space<vmem>>) target_semaphore(%23 : memref<!tpu.dma_semaphore, #tpu.memory_space<semaphore_mem>>)
    %c0 = arith.constant 0 : index
    %c0_24 = arith.constant 0 : index
    %c0_25 = arith.constant 0 : index
    %24 = vector.load %arg0[%c0, %c0_24, %c0_25] : memref<4x32x128xbf16, #tpu.memory_space<vmem>>, vector<1x32x128xbf16>
    %25 = vector.shape_cast %24 : vector<1x32x128xbf16> to vector<32x128xbf16>
    %c0_26 = arith.constant 0 : index
    %c0_27 = arith.constant 0 : index
    %26 = vector.load %arg1[%c0_26, %c0_27] : memref<128x256xbf16, #tpu.memory_space<vmem>>, vector<128x256xbf16>
    %cst = arith.constant dense<0.000000e+00> : vector<32x256xf32>
    %27 = tpu.matmul %25, %26, %cst {dimension_numbers = #tpu.dot_dimension_numbers<[1], [0], [0], [1], [0, 0, 1, 1], [], []>} : vector<32x128xbf16>, vector<128x256xbf16>, vector<32x256xf32> -> vector<32x256xf32>
    %c1 = arith.constant 1 : index
    %c0_28 = arith.constant 0 : index
    %c0_29 = arith.constant 0 : index
    %28 = vector.load %arg0[%c1, %c0_28, %c0_29] : memref<4x32x128xbf16, #tpu.memory_space<vmem>>, vector<1x32x128xbf16>
    %29 = vector.shape_cast %28 : vector<1x32x128xbf16> to vector<32x128xbf16>
    %c0_30 = arith.constant 0 : index
    %c0_31 = arith.constant 0 : index
    %30 = vector.load %arg1[%c0_30, %c0_31] : memref<128x256xbf16, #tpu.memory_space<vmem>>, vector<128x256xbf16>
    %cst_32 = arith.constant dense<0.000000e+00> : vector<32x256xf32>
    %31 = tpu.matmul %29, %30, %cst_32 {dimension_numbers = #tpu.dot_dimension_numbers<[1], [0], [0], [1], [0, 0, 1, 1], [], []>} : vector<32x128xbf16>, vector<128x256xbf16>, vector<32x256xf32> -> vector<32x256xf32>
    %32 = arith.maximumf %27, %31 : vector<32x256xf32>
    %c2 = arith.constant 2 : index
    %c0_33 = arith.constant 0 : index
    %c0_34 = arith.constant 0 : index
    %33 = vector.load %arg0[%c2, %c0_33, %c0_34] : memref<4x32x128xbf16, #tpu.memory_space<vmem>>, vector<1x32x128xbf16>
    %34 = vector.shape_cast %33 : vector<1x32x128xbf16> to vector<32x128xbf16>
    %c0_35 = arith.constant 0 : index
    %c0_36 = arith.constant 0 : index
    %35 = vector.load %arg1[%c0_35, %c0_36] : memref<128x256xbf16, #tpu.memory_space<vmem>>, vector<128x256xbf16>
    %cst_37 = arith.constant dense<0.000000e+00> : vector<32x256xf32>
    %36 = tpu.matmul %34, %35, %cst_37 {dimension_numbers = #tpu.dot_dimension_numbers<[1], [0], [0], [1], [0, 0, 1, 1], [], []>} : vector<32x128xbf16>, vector<128x256xbf16>, vector<32x256xf32> -> vector<32x256xf32>
    %37 = arith.maximumf %32, %36 : vector<32x256xf32>
    %c3 = arith.constant 3 : index
    %c0_38 = arith.constant 0 : index
    %c0_39 = arith.constant 0 : index
    %38 = vector.load %arg0[%c3, %c0_38, %c0_39] : memref<4x32x128xbf16, #tpu.memory_space<vmem>>, vector<1x32x128xbf16>
    %39 = vector.shape_cast %38 : vector<1x32x128xbf16> to vector<32x128xbf16>
    %c0_40 = arith.constant 0 : index
    %c0_41 = arith.constant 0 : index
    %40 = vector.load %arg1[%c0_40, %c0_41] : memref<128x256xbf16, #tpu.memory_space<vmem>>, vector<128x256xbf16>
    %cst_42 = arith.constant dense<0.000000e+00> : vector<32x256xf32>
    %41 = tpu.matmul %39, %40, %cst_42 {dimension_numbers = #tpu.dot_dimension_numbers<[1], [0], [0], [1], [0, 0, 1, 1], [], []>} : vector<32x128xbf16>, vector<128x256xbf16>, vector<32x256xf32> -> vector<32x256xf32>
    %42 = arith.maximumf %37, %41 : vector<32x256xf32>
    %c0_43 = arith.constant 0 : index
    %c0_44 = arith.constant 0 : index
    %43 = vector.load %arg2[%c0_43, %c0_44] : memref<1x256xf32, #tpu.memory_space<vmem>>, vector<1x256xf32>
    %44 = vector.broadcast %43 : vector<1x256xf32> to vector<32x256xf32>
    %45 = arith.addf %42, %44 : vector<32x256xf32>
    %cst_45 = arith.constant 0.000000e+00 : f32
    %46 = vector.broadcast %cst_45 : f32 to vector<32x256xf32>
    %47 = arith.maximumf %45, %46 : vector<32x256xf32>
    %48 = arith.truncf %47 : vector<32x256xf32> to vector<32x256xbf16>
    %c0_46 = arith.constant 0 : index
    %c0_47 = arith.constant 0 : index
    %49 = vector.load %arg10[%c0_46, %c0_47] : memref<32x256xbf16, #tpu.memory_space<vmem>>, vector<32x256xbf16>
    tpu.vector_store %arg10[%c0_46, %c0_47], %48 {strides = array<i32>} : memref<32x256xbf16, #tpu.memory_space<vmem>>, vector<32x256xbf16>,
    %c0_48 = arith.constant 0 : index
    %c0_49 = arith.constant 0 : index
    %50 = vector.load %arg10[%c0_48, %c0_49] : memref<32x256xbf16, #tpu.memory_space<vmem>>, vector<2x256xbf16>
    %c0_50 = arith.constant 0 : index
    %c0_51 = arith.constant 0 : index
    %51 = vector.load %arg9[%c0_50, %c0_51] : memref<2x4096xbf16, #tpu.memory_space<vmem>>, vector<2x256xbf16>
    tpu.vector_store %arg9[%c0_50, %c0_51], %50 {strides = array<i32>} : memref<2x4096xbf16, #tpu.memory_space<vmem>>, vector<2x256xbf16>,
    %c2_52 = arith.constant 2 : index
    %c0_53 = arith.constant 0 : index
    %52 = vector.load %arg10[%c2_52, %c0_53] : memref<32x256xbf16, #tpu.memory_space<vmem>>, vector<2x256xbf16>
    %c0_54 = arith.constant 0 : index
    %c256 = arith.constant 256 : index
    %53 = vector.load %arg9[%c0_54, %c256] : memref<2x4096xbf16, #tpu.memory_space<vmem>>, vector<2x256xbf16>
    tpu.vector_store %arg9[%c0_54, %c256], %52 {strides = array<i32>} : memref<2x4096xbf16, #tpu.memory_space<vmem>>, vector<2x256xbf16>,
    %c4 = arith.constant 4 : index
    %c0_55 = arith.constant 0 : index
    %54 = vector.load %arg10[%c4, %c0_55] : memref<32x256xbf16, #tpu.memory_space<vmem>>, vector<2x256xbf16>
    %c0_56 = arith.constant 0 : index
    %c512 = arith.constant 512 : index
    %55 = vector.load %arg9[%c0_56, %c512] : memref<2x4096xbf16, #tpu.memory_space<vmem>>, vector<2x256xbf16>
    tpu.vector_store %arg9[%c0_56, %c512], %54 {strides = array<i32>} : memref<2x4096xbf16, #tpu.memory_space<vmem>>, vector<2x256xbf16>,
    %c6 = arith.constant 6 : index
    %c0_57 = arith.constant 0 : index
    %56 = vector.load %arg10[%c6, %c0_57] : memref<32x256xbf16, #tpu.memory_space<vmem>>, vector<2x256xbf16>
    %c0_58 = arith.constant 0 : index
    %c768 = arith.constant 768 : index
    %57 = vector.load %arg9[%c0_58, %c768] : memref<2x4096xbf16, #tpu.memory_space<vmem>>, vector<2x256xbf16>
    tpu.vector_store %arg9[%c0_58, %c768], %56 {strides = array<i32>} : memref<2x4096xbf16, #tpu.memory_space<vmem>>, vector<2x256xbf16>,
    %c8 = arith.constant 8 : index
    %c0_59 = arith.constant 0 : index
    %58 = vector.load %arg10[%c8, %c0_59] : memref<32x256xbf16, #tpu.memory_space<vmem>>, vector<2x256xbf16>
    %c0_60 = arith.constant 0 : index
    %c1024 = arith.constant 1024 : index
    %59 = vector.load %arg9[%c0_60, %c1024] : memref<2x4096xbf16, #tpu.memory_space<vmem>>, vector<2x256xbf16>
    tpu.vector_store %arg9[%c0_60, %c1024], %58 {strides = array<i32>} : memref<2x4096xbf16, #tpu.memory_space<vmem>>, vector<2x256xbf16>,
    %c10 = arith.constant 10 : index
    %c0_61 = arith.constant 0 : index
    %60 = vector.load %arg10[%c10, %c0_61] : memref<32x256xbf16, #tpu.memory_space<vmem>>, vector<2x256xbf16>
    %c0_62 = arith.constant 0 : index
    %c1280 = arith.constant 1280 : index
    %61 = vector.load %arg9[%c0_62, %c1280] : memref<2x4096xbf16, #tpu.memory_space<vmem>>, vector<2x256xbf16>
    tpu.vector_store %arg9[%c0_62, %c1280], %60 {strides = array<i32>} : memref<2x4096xbf16, #tpu.memory_space<vmem>>, vector<2x256xbf16>,
    %c12 = arith.constant 12 : index
    %c0_63 = arith.constant 0 : index
    %62 = vector.load %arg10[%c12, %c0_63] : memref<32x256xbf16, #tpu.memory_space<vmem>>, vector<2x256xbf16>
    %c0_64 = arith.constant 0 : index
    %c1536 = arith.constant 1536 : index
    %63 = vector.load %arg9[%c0_64, %c1536] : memref<2x4096xbf16, #tpu.memory_space<vmem>>, vector<2x256xbf16>
    tpu.vector_store %arg9[%c0_64, %c1536], %62 {strides = array<i32>} : memref<2x4096xbf16, #tpu.memory_space<vmem>>, vector<2x256xbf16>,
    %c14 = arith.constant 14 : index
    %c0_65 = arith.constant 0 : index
    %64 = vector.load %arg10[%c14, %c0_65] : memref<32x256xbf16, #tpu.memory_space<vmem>>, vector<2x256xbf16>
    %c0_66 = arith.constant 0 : index
    %c1792 = arith.constant 1792 : index
    %65 = vector.load %arg9[%c0_66, %c1792] : memref<2x4096xbf16, #tpu.memory_space<vmem>>, vector<2x256xbf16>
    tpu.vector_store %arg9[%c0_66, %c1792], %64 {strides = array<i32>} : memref<2x4096xbf16, #tpu.memory_space<vmem>>, vector<2x256xbf16>,
    %c16 = arith.constant 16 : index
    %c0_67 = arith.constant 0 : index
    %66 = vector.load %arg10[%c16, %c0_67] : memref<32x256xbf16, #tpu.memory_space<vmem>>, vector<2x256xbf16>
    %c0_68 = arith.constant 0 : index
    %c2048 = arith.constant 2048 : index
    %67 = vector.load %arg9[%c0_68, %c2048] : memref<2x4096xbf16, #tpu.memory_space<vmem>>, vector<2x256xbf16>
    tpu.vector_store %arg9[%c0_68, %c2048], %66 {strides = array<i32>} : memref<2x4096xbf16, #tpu.memory_space<vmem>>, vector<2x256xbf16>,
    %c18 = arith.constant 18 : index
    %c0_69 = arith.constant 0 : index
    %68 = vector.load %arg10[%c18, %c0_69] : memref<32x256xbf16, #tpu.memory_space<vmem>>, vector<2x256xbf16>
    %c0_70 = arith.constant 0 : index
    %c2304 = arith.constant 2304 : index
    %69 = vector.load %arg9[%c0_70, %c2304] : memref<2x4096xbf16, #tpu.memory_space<vmem>>, vector<2x256xbf16>
    tpu.vector_store %arg9[%c0_70, %c2304], %68 {strides = array<i32>} : memref<2x4096xbf16, #tpu.memory_space<vmem>>, vector<2x256xbf16>,
    %c20 = arith.constant 20 : index
    %c0_71 = arith.constant 0 : index
    %70 = vector.load %arg10[%c20, %c0_71] : memref<32x256xbf16, #tpu.memory_space<vmem>>, vector<2x256xbf16>
    %c0_72 = arith.constant 0 : index
    %c2560 = arith.constant 2560 : index
    %71 = vector.load %arg9[%c0_72, %c2560] : memref<2x4096xbf16, #tpu.memory_space<vmem>>, vector<2x256xbf16>
    tpu.vector_store %arg9[%c0_72, %c2560], %70 {strides = array<i32>} : memref<2x4096xbf16, #tpu.memory_space<vmem>>, vector<2x256xbf16>,
    %c22 = arith.constant 22 : index
    %c0_73 = arith.constant 0 : index
    %72 = vector.load %arg10[%c22, %c0_73] : memref<32x256xbf16, #tpu.memory_space<vmem>>, vector<2x256xbf16>
    %c0_74 = arith.constant 0 : index
    %c2816 = arith.constant 2816 : index
    %73 = vector.load %arg9[%c0_74, %c2816] : memref<2x4096xbf16, #tpu.memory_space<vmem>>, vector<2x256xbf16>
    tpu.vector_store %arg9[%c0_74, %c2816], %72 {strides = array<i32>} : memref<2x4096xbf16, #tpu.memory_space<vmem>>, vector<2x256xbf16>,
    %c24 = arith.constant 24 : index
    %c0_75 = arith.constant 0 : index
    %74 = vector.load %arg10[%c24, %c0_75] : memref<32x256xbf16, #tpu.memory_space<vmem>>, vector<2x256xbf16>
    %c0_76 = arith.constant 0 : index
    %c3072 = arith.constant 3072 : index
    %75 = vector.load %arg9[%c0_76, %c3072] : memref<2x4096xbf16, #tpu.memory_space<vmem>>, vector<2x256xbf16>
    tpu.vector_store %arg9[%c0_76, %c3072], %74 {strides = array<i32>} : memref<2x4096xbf16, #tpu.memory_space<vmem>>, vector<2x256xbf16>,
    %c26 = arith.constant 26 : index
    %c0_77 = arith.constant 0 : index
    %76 = vector.load %arg10[%c26, %c0_77] : memref<32x256xbf16, #tpu.memory_space<vmem>>, vector<2x256xbf16>
    %c0_78 = arith.constant 0 : index
    %c3328 = arith.constant 3328 : index
    %77 = vector.load %arg9[%c0_78, %c3328] : memref<2x4096xbf16, #tpu.memory_space<vmem>>, vector<2x256xbf16>
    tpu.vector_store %arg9[%c0_78, %c3328], %76 {strides = array<i32>} : memref<2x4096xbf16, #tpu.memory_space<vmem>>, vector<2x256xbf16>,
    %c28 = arith.constant 28 : index
    %c0_79 = arith.constant 0 : index
    %78 = vector.load %arg10[%c28, %c0_79] : memref<32x256xbf16, #tpu.memory_space<vmem>>, vector<2x256xbf16>
    %c0_80 = arith.constant 0 : index
    %c3584 = arith.constant 3584 : index
    %79 = vector.load %arg9[%c0_80, %c3584] : memref<2x4096xbf16, #tpu.memory_space<vmem>>, vector<2x256xbf16>
    tpu.vector_store %arg9[%c0_80, %c3584], %78 {strides = array<i32>} : memref<2x4096xbf16, #tpu.memory_space<vmem>>, vector<2x256xbf16>,
    %c30 = arith.constant 30 : index
    %c0_81 = arith.constant 0 : index
    %80 = vector.load %arg10[%c30, %c0_81] : memref<32x256xbf16, #tpu.memory_space<vmem>>, vector<2x256xbf16>
    %c0_82 = arith.constant 0 : index
    %c3840 = arith.constant 3840 : index
    %81 = vector.load %arg9[%c0_82, %c3840] : memref<2x4096xbf16, #tpu.memory_space<vmem>>, vector<2x256xbf16>
    tpu.vector_store %arg9[%c0_82, %c3840], %80 {strides = array<i32>} : memref<2x4096xbf16, #tpu.memory_space<vmem>>, vector<2x256xbf16>,
    %cst_83 = arith.constant 0.000000e+00 : f32
    %82 = vector.broadcast %cst_83 : f32 to vector<2x256xf32>
    %c0_i32_84 = arith.constant 0 : i32
    %c0_i32_85 = arith.constant 0 : i32
    %c0_i32_86 = arith.constant 0 : i32
    %c0_i32_87 = arith.constant 0 : i32
    %c0_i32_88 = arith.constant 0 : i32
    %83 = tpu.memref_slice %arg3[%c0_i32_84, %c0_i32_87, %c0_i32_88] : memref<4x1024x256xbf16, #tpu.memory_space<any>> -> memref<1x1024x256xbf16, #tpu.memory_space<any>>
    %84 = tpu.memref_squeeze %83 : memref<1x1024x256xbf16, #tpu.memory_space<any>> -> memref<1024x256xbf16, #tpu.memory_space<any>>
    %c0_i32_89 = arith.constant 0 : i32
    %c0_i32_90 = arith.constant 0 : i32
    %85 = tpu.memref_slice %arg8[%c0_i32_85, %c0_i32_89, %c0_i32_90] : memref<4x1024x256xbf16, #tpu.memory_space<vmem>> -> memref<1x1024x256xbf16, #tpu.memory_space<vmem>>
    %86 = tpu.memref_squeeze %85 : memref<1x1024x256xbf16, #tpu.memory_space<vmem>> -> memref<1024x256xbf16, #tpu.memory_space<vmem>>
    %87 = tpu.memref_slice %arg11[%c0_i32_86] : memref<4x!tpu.dma_semaphore, #tpu.memory_space<semaphore_mem>> -> memref<1x!tpu.dma_semaphore, #tpu.memory_space<semaphore_mem>>
    %88 = tpu.memref_squeeze %87 : memref<1x!tpu.dma_semaphore, #tpu.memory_space<semaphore_mem>> -> memref<!tpu.dma_semaphore, #tpu.memory_space<semaphore_mem>>
    tpu.wait_dma2 semaphore(%88 : memref<!tpu.dma_semaphore, #tpu.memory_space<semaphore_mem>>) src(%84 : memref<1024x256xbf16, #tpu.memory_space<any>>) dst(%86 : memref<1024x256xbf16, #tpu.memory_space<vmem>>)
    %c0_91 = arith.constant 0 : index
    %c0_92 = arith.constant 0 : index
    %89 = vector.load %arg9[%c0_91, %c0_92] : memref<2x4096xbf16, #tpu.memory_space<vmem>>, vector<2x1024xbf16>
    %c0_93 = arith.constant 0 : index
    %c0_94 = arith.constant 0 : index
    %c0_95 = arith.constant 0 : index
    %90 = vector.load %arg8[%c0_93, %c0_94, %c0_95] : memref<4x1024x256xbf16, #tpu.memory_space<vmem>>, vector<1x1024x256xbf16>
    %91 = vector.shape_cast %90 : vector<1x1024x256xbf16> to vector<1024x256xbf16>
    %cst_96 = arith.constant dense<0.000000e+00> : vector<2x256xf32>
    %92 = tpu.matmul %89, %91, %cst_96 {dimension_numbers = #tpu.dot_dimension_numbers<[1], [0], [0], [1], [0, 0, 1, 1], [], []>} : vector<2x1024xbf16>, vector<1024x256xbf16>, vector<2x256xf32> -> vector<2x256xf32>
    %93 = arith.addf %82, %92 : vector<2x256xf32>
    %c1_i32_97 = arith.constant 1 : i32
    %c1_i32_98 = arith.constant 1 : i32
    %c1_i32_99 = arith.constant 1 : i32
    %c0_i32_100 = arith.constant 0 : i32
    %c0_i32_101 = arith.constant 0 : i32
    %94 = tpu.memref_slice %arg3[%c1_i32_97, %c0_i32_100, %c0_i32_101] : memref<4x1024x256xbf16, #tpu.memory_space<any>> -> memref<1x1024x256xbf16, #tpu.memory_space<any>>
    %95 = tpu.memref_squeeze %94 : memref<1x1024x256xbf16, #tpu.memory_space<any>> -> memref<1024x256xbf16, #tpu.memory_space<any>>
    %c0_i32_102 = arith.constant 0 : i32
    %c0_i32_103 = arith.constant 0 : i32
    %96 = tpu.memref_slice %arg8[%c1_i32_98, %c0_i32_102, %c0_i32_103] : memref<4x1024x256xbf16, #tpu.memory_space<vmem>> -> memref<1x1024x256xbf16, #tpu.memory_space<vmem>>
    %97 = tpu.memref_squeeze %96 : memref<1x1024x256xbf16, #tpu.memory_space<vmem>> -> memref<1024x256xbf16, #tpu.memory_space<vmem>>
    %98 = tpu.memref_slice %arg11[%c1_i32_99] : memref<4x!tpu.dma_semaphore, #tpu.memory_space<semaphore_mem>> -> memref<1x!tpu.dma_semaphore, #tpu.memory_space<semaphore_mem>>
    %99 = tpu.memref_squeeze %98 : memref<1x!tpu.dma_semaphore, #tpu.memory_space<semaphore_mem>> -> memref<!tpu.dma_semaphore, #tpu.memory_space<semaphore_mem>>
    tpu.wait_dma2 semaphore(%99 : memref<!tpu.dma_semaphore, #tpu.memory_space<semaphore_mem>>) src(%95 : memref<1024x256xbf16, #tpu.memory_space<any>>) dst(%97 : memref<1024x256xbf16, #tpu.memory_space<vmem>>)
    %c0_104 = arith.constant 0 : index
    %c1024_105 = arith.constant 1024 : index
    %100 = vector.load %arg9[%c0_104, %c1024_105] : memref<2x4096xbf16, #tpu.memory_space<vmem>>, vector<2x1024xbf16>
    %c1_106 = arith.constant 1 : index
    %c0_107 = arith.constant 0 : index
    %c0_108 = arith.constant 0 : index
    %101 = vector.load %arg8[%c1_106, %c0_107, %c0_108] : memref<4x1024x256xbf16, #tpu.memory_space<vmem>>, vector<1x1024x256xbf16>
    %102 = vector.shape_cast %101 : vector<1x1024x256xbf16> to vector<1024x256xbf16>
    %cst_109 = arith.constant dense<0.000000e+00> : vector<2x256xf32>
    %103 = tpu.matmul %100, %102, %cst_109 {dimension_numbers = #tpu.dot_dimension_numbers<[1], [0], [0], [1], [0, 0, 1, 1], [], []>} : vector<2x1024xbf16>, vector<1024x256xbf16>, vector<2x256xf32> -> vector<2x256xf32>
    %104 = arith.addf %93, %103 : vector<2x256xf32>
    %c2_i32_110 = arith.constant 2 : i32
    %c2_i32_111 = arith.constant 2 : i32
    %c2_i32_112 = arith.constant 2 : i32
    %c0_i32_113 = arith.constant 0 : i32
    %c0_i32_114 = arith.constant 0 : i32
    %105 = tpu.memref_slice %arg3[%c2_i32_110, %c0_i32_113, %c0_i32_114] : memref<4x1024x256xbf16, #tpu.memory_space<any>> -> memref<1x1024x256xbf16, #tpu.memory_space<any>>
    %106 = tpu.memref_squeeze %105 : memref<1x1024x256xbf16, #tpu.memory_space<any>> -> memref<1024x256xbf16, #tpu.memory_space<any>>
    %c0_i32_115 = arith.constant 0 : i32
    %c0_i32_116 = arith.constant 0 : i32
    %107 = tpu.memref_slice %arg8[%c2_i32_111, %c0_i32_115, %c0_i32_116] : memref<4x1024x256xbf16, #tpu.memory_space<vmem>> -> memref<1x1024x256xbf16, #tpu.memory_space<vmem>>
    %108 = tpu.memref_squeeze %107 : memref<1x1024x256xbf16, #tpu.memory_space<vmem>> -> memref<1024x256xbf16, #tpu.memory_space<vmem>>
    %109 = tpu.memref_slice %arg11[%c2_i32_112] : memref<4x!tpu.dma_semaphore, #tpu.memory_space<semaphore_mem>> -> memref<1x!tpu.dma_semaphore, #tpu.memory_space<semaphore_mem>>
    %110 = tpu.memref_squeeze %109 : memref<1x!tpu.dma_semaphore, #tpu.memory_space<semaphore_mem>> -> memref<!tpu.dma_semaphore, #tpu.memory_space<semaphore_mem>>
    tpu.wait_dma2 semaphore(%110 : memref<!tpu.dma_semaphore, #tpu.memory_space<semaphore_mem>>) src(%106 : memref<1024x256xbf16, #tpu.memory_space<any>>) dst(%108 : memref<1024x256xbf16, #tpu.memory_space<vmem>>)
    %c0_117 = arith.constant 0 : index
    %c2048_118 = arith.constant 2048 : index
    %111 = vector.load %arg9[%c0_117, %c2048_118] : memref<2x4096xbf16, #tpu.memory_space<vmem>>, vector<2x1024xbf16>
    %c2_119 = arith.constant 2 : index
    %c0_120 = arith.constant 0 : index
    %c0_121 = arith.constant 0 : index
    %112 = vector.load %arg8[%c2_119, %c0_120, %c0_121] : memref<4x1024x256xbf16, #tpu.memory_space<vmem>>, vector<1x1024x256xbf16>
    %113 = vector.shape_cast %112 : vector<1x1024x256xbf16> to vector<1024x256xbf16>
    %cst_122 = arith.constant dense<0.000000e+00> : vector<2x256xf32>
    %114 = tpu.matmul %111, %113, %cst_122 {dimension_numbers = #tpu.dot_dimension_numbers<[1], [0], [0], [1], [0, 0, 1, 1], [], []>} : vector<2x1024xbf16>, vector<1024x256xbf16>, vector<2x256xf32> -> vector<2x256xf32>
    %115 = arith.addf %104, %114 : vector<2x256xf32>
    %c3_i32_123 = arith.constant 3 : i32
    %c3_i32_124 = arith.constant 3 : i32
    %c3_i32_125 = arith.constant 3 : i32
    %c0_i32_126 = arith.constant 0 : i32
    %c0_i32_127 = arith.constant 0 : i32
    %116 = tpu.memref_slice %arg3[%c3_i32_123, %c0_i32_126, %c0_i32_127] : memref<4x1024x256xbf16, #tpu.memory_space<any>> -> memref<1x1024x256xbf16, #tpu.memory_space<any>>
    %117 = tpu.memref_squeeze %116 : memref<1x1024x256xbf16, #tpu.memory_space<any>> -> memref<1024x256xbf16, #tpu.memory_space<any>>
    %c0_i32_128 = arith.constant 0 : i32
    %c0_i32_129 = arith.constant 0 : i32
    %118 = tpu.memref_slice %arg8[%c3_i32_124, %c0_i32_128, %c0_i32_129] : memref<4x1024x256xbf16, #tpu.memory_space<vmem>> -> memref<1x1024x256xbf16, #tpu.memory_space<vmem>>
    %119 = tpu.memref_squeeze %118 : memref<1x1024x256xbf16, #tpu.memory_space<vmem>> -> memref<1024x256xbf16, #tpu.memory_space<vmem>>
    %120 = tpu.memref_slice %arg11[%c3_i32_125] : memref<4x!tpu.dma_semaphore, #tpu.memory_space<semaphore_mem>> -> memref<1x!tpu.dma_semaphore, #tpu.memory_space<semaphore_mem>>
    %121 = tpu.memref_squeeze %120 : memref<1x!tpu.dma_semaphore, #tpu.memory_space<semaphore_mem>> -> memref<!tpu.dma_semaphore, #tpu.memory_space<semaphore_mem>>
    tpu.wait_dma2 semaphore(%121 : memref<!tpu.dma_semaphore, #tpu.memory_space<semaphore_mem>>) src(%117 : memref<1024x256xbf16, #tpu.memory_space<any>>) dst(%119 : memref<1024x256xbf16, #tpu.memory_space<vmem>>)
    %c0_130 = arith.constant 0 : index
    %c3072_131 = arith.constant 3072 : index
    %122 = vector.load %arg9[%c0_130, %c3072_131] : memref<2x4096xbf16, #tpu.memory_space<vmem>>, vector<2x1024xbf16>
    %c3_132 = arith.constant 3 : index
    %c0_133 = arith.constant 0 : index
    %c0_134 = arith.constant 0 : index
    %123 = vector.load %arg8[%c3_132, %c0_133, %c0_134] : memref<4x1024x256xbf16, #tpu.memory_space<vmem>>, vector<1x1024x256xbf16>
    %124 = vector.shape_cast %123 : vector<1x1024x256xbf16> to vector<1024x256xbf16>
    %cst_135 = arith.constant dense<0.000000e+00> : vector<2x256xf32>
    %125 = tpu.matmul %122, %124, %cst_135 {dimension_numbers = #tpu.dot_dimension_numbers<[1], [0], [0], [1], [0, 0, 1, 1], [], []>} : vector<2x1024xbf16>, vector<1024x256xbf16>, vector<2x256xf32> -> vector<2x256xf32>
    %126 = arith.addf %115, %125 : vector<2x256xf32>
    %c0_136 = arith.constant 0 : index
    %c0_137 = arith.constant 0 : index
    %127 = vector.load %arg4[%c0_136, %c0_137] : memref<1x256xf32, #tpu.memory_space<vmem>>, vector<1x256xf32>
    %128 = vector.broadcast %127 : vector<1x256xf32> to vector<2x256xf32>
    %129 = arith.addf %126, %128 : vector<2x256xf32>
    %cst_138 = arith.constant 0.000000e+00 : f32
    %130 = vector.broadcast %cst_138 : f32 to vector<2x256xf32>
    %131 = arith.maximumf %129, %130 : vector<2x256xf32>
    %132 = arith.truncf %131 : vector<2x256xf32> to vector<2x256xbf16>
    %c0_139 = arith.constant 0 : index
    %c0_140 = arith.constant 0 : index
    %133 = vector.load %arg5[%c0_139, %c0_140] : memref<256x128xbf16, #tpu.memory_space<vmem>>, vector<256x128xbf16>
    %cst_141 = arith.constant dense<0.000000e+00> : vector<2x128xf32>
    %134 = tpu.matmul %132, %133, %cst_141 {dimension_numbers = #tpu.dot_dimension_numbers<[1], [0], [0], [1], [0, 0, 1, 1], [], []>} : vector<2x256xbf16>, vector<256x128xbf16>, vector<2x128xf32> -> vector<2x128xf32>
    %c0_142 = arith.constant 0 : index
    %c0_143 = arith.constant 0 : index
    %135 = vector.load %arg6[%c0_142, %c0_143] : memref<1x128xf32, #tpu.memory_space<vmem>>, vector<1x128xf32>
    %136 = vector.broadcast %135 : vector<1x128xf32> to vector<2x128xf32>
    %137 = arith.addf %134, %136 : vector<2x128xf32>
    %c0_144 = arith.constant 0 : index
    %c0_145 = arith.constant 0 : index
    %138 = vector.load %arg7[%c0_144, %c0_145] : memref<2x128xf32, #tpu.memory_space<vmem>>, vector<2x128xf32>
    tpu.vector_store %arg7[%c0_144, %c0_145], %137 {strides = array<i32>} : memref<2x128xf32, #tpu.memory_space<vmem>>, vector<2x128xf32>,
    return
  }
}

</mosaic_0001>

<bundles_post_ra>
// kernel: simple_cnn_forward.1
= control target key start
LH: loop header
LB: loop body
LE: loop exit
PB: predicated region body
PF: predicated region fallthrough
CT: control target
= control target key end

     0   :  { %12 = vsyncpa [#allocation7], 0  ;;  %s11207_s0 = inlined_call_operand.vmem [shape: bf16[4,32,128], index: 0, kind: input, shape index: {}]   ;;  %s11208_s1 = inlined_call_operand.vmem [shape: bf16[128,256], index: 1, kind: input, shape index: {}]   ;;  %s11209_s2 = inlined_call_operand.vmem [shape: f32[1,256], index: 2, kind: input, shape index: {}]   ;;  %s11210_s3 = inlined_call_operand.vmem [shape: bf16[4,1024,256], index: 3, kind: input, shape index: {}]   ;;  %s11211_s4 = inlined_call_operand.vmem [shape: f32[1,256], index: 4, kind: input, shape index: {}]   ;;  %s11212_s5 = inlined_call_operand.vmem [shape: bf16[256,128], index: 5, kind: input, shape index: {}]   ;;  %s11213_s6 = inlined_call_operand.vmem [shape: f32[1,128], index: 6, kind: input, shape index: {}]   ;;  %s11214_s7 = inlined_call_operand.hbm [shape: f32[2,128], index: 7, kind: output, shape index: {}]  }
   0x1   :  { %v7367_v0 = vld [vmem:[%s11210_s3] sm:$0xff]  ;;  %v7372_v1 = vld [vmem:[%s11210_s3 + $0x8] sm:$0xff]  ;;  %v7377_v2 = vld [vmem:[%s11210_s3 + $0x10] sm:$0xff] }
   0x2   :  { %11706 = vst [vmem:[#allocation17_spill] sm:$0xff] %v7367_v0  ;;  %11707 = vst [vmem:[#allocation18_spill] sm:$0xff] %v7372_v1  ;;  %v7382_v3 = vld [vmem:[%s11210_s3 + $0x18] sm:$0xff]  ;;  %v7387_v4 = vld [vmem:[%s11210_s3 + $0x20] sm:$0xff] }
   0x3   :  { %11708 = vst [vmem:[#allocation19_spill] sm:$0xff] %v7377_v2  ;;  %11709 = vst [vmem:[#allocation20_spill] sm:$0xff] %v7382_v3  ;;  %v7392_v5 = vld [vmem:[%s11210_s3 + $0x28] sm:$0xff]  ;;  %v7397_v6 = vld [vmem:[%s11210_s3 + $0x30] sm:$0xff] }
   0x4   :  { %11710 = vst [vmem:[#allocation21_spill] sm:$0xff] %v7387_v4  ;;  %11711 = vst [vmem:[#allocation22_spill] sm:$0xff] %v7392_v5  ;;  %v7402_v7 = vld [vmem:[%s11210_s3 + $0x38] sm:$0xff]  ;;  %v7407_v8 = vld [vmem:[%s11210_s3 + $0x40] sm:$0xff] }
   0x5   :  { %11712 = vst [vmem:[#allocation23_spill] sm:$0xff] %v7397_v6  ;;  %11713 = vst [vmem:[#allocation24_spill] sm:$0xff] %v7402_v7  ;;  %v7412_v9 = vld [vmem:[%s11210_s3 + $0x48] sm:$0xff]  ;;  %v7417_v10 = vld [vmem:[%s11210_s3 + $0x50] sm:$0xff] }
   0x6   :  { %11714 = vst [vmem:[#allocation25_spill] sm:$0xff] %v7407_v8  ;;  %11715 = vst [vmem:[#allocation26_spill] sm:$0xff] %v7412_v9  ;;  %v7422_v11 = vld [vmem:[%s11210_s3 + $0x58] sm:$0xff]  ;;  %v7427_v12 = vld [vmem:[%s11210_s3 + $0x60] sm:$0xff] }
   0x7   :  { %11716 = vst [vmem:[#allocation27_spill] sm:$0xff] %v7417_v10  ;;  %11717 = vst [vmem:[#allocation28_spill] sm:$0xff] %v7422_v11  ;;  %v7432_v13 = vld [vmem:[%s11210_s3 + $0x68] sm:$0xff]  ;;  %v7437_v14 = vld [vmem:[%s11210_s3 + $0x70] sm:$0xff] }
   0x8   :  { %11718 = vst [vmem:[#allocation29_spill] sm:$0xff] %v7427_v12  ;;  %11719 = vst [vmem:[#allocation30_spill] sm:$0xff] %v7432_v13  ;;  %v7442_v15 = vld [vmem:[%s11210_s3 + $0x78] sm:$0xff]  ;;  %v7447_v16 = vld [vmem:[%s11210_s3 + $0x80] sm:$0xff] }
   0x9   :  { %11720 = vst [vmem:[#allocation31_spill] sm:$0xff] %v7437_v14  ;;  %11721 = vst [vmem:[#allocation32_spill] sm:$0xff] %v7442_v15  ;;  %v7452_v17 = vld [vmem:[%s11210_s3 + $0x88] sm:$0xff]  ;;  %v7457_v18 = vld [vmem:[%s11210_s3 + $0x90] sm:$0xff] }
   0xa   :  { %11722 = vst [vmem:[#allocation33_spill] sm:$0xff] %v7447_v16  ;;  %11723 = vst [vmem:[#allocation34_spill] sm:$0xff] %v7452_v17  ;;  %v7462_v19 = vld [vmem:[%s11210_s3 + $0x98] sm:$0xff]  ;;  %v7467_v20 = vld [vmem:[%s11210_s3 + $0xa0] sm:$0xff] }
   0xb   :  { %11724 = vst [vmem:[#allocation35_spill] sm:$0xff] %v7457_v18  ;;  %11725 = vst [vmem:[#allocation36_spill] sm:$0xff] %v7462_v19  ;;  %v7472_v21 = vld [vmem:[%s11210_s3 + $0xa8] sm:$0xff]  ;;  %v7477_v22 = vld [vmem:[%s11210_s3 + $0xb0] sm:$0xff] }
   0xc   :  { %11726 = vst [vmem:[#allocation37_spill] sm:$0xff] %v7467_v20  ;;  %11727 = vst [vmem:[#allocation38_spill] sm:$0xff] %v7472_v21  ;;  %v7482_v23 = vld [vmem:[%s11210_s3 + $0xb8] sm:$0xff]  ;;  %v7487_v24 = vld [vmem:[%s11210_s3 + $0xc0] sm:$0xff] }
   0xd   :  { %11728 = vst [vmem:[#allocation39_spill] sm:$0xff] %v7477_v22  ;;  %11729 = vst [vmem:[#allocation40_spill] sm:$0xff] %v7482_v23  ;;  %v7492_v25 = vld [vmem:[%s11210_s3 + $0xc8] sm:$0xff]  ;;  %v7497_v26 = vld [vmem:[%s11210_s3 + $0xd0] sm:$0xff] }
   0xe   :  { %11730 = vst [vmem:[#allocation41_spill] sm:$0xff] %v7487_v24  ;;  %11731 = vst [vmem:[#allocation42_spill] sm:$0xff] %v7492_v25  ;;  %v7502_v27 = vld [vmem:[%s11210_s3 + $0xd8] sm:$0xff]  ;;  %v7507_v28 = vld [vmem:[%s11210_s3 + $0xe0] sm:$0xff] }
   0xf   :  { %11732 = vst [vmem:[#allocation43_spill] sm:$0xff] %v7497_v26  ;;  %11733 = vst [vmem:[#allocation44_spill] sm:$0xff] %v7502_v27  ;;  %v7512_v29 = vld [vmem:[%s11210_s3 + $0xe8] sm:$0xff]  ;;  %v7517_v30 = vld [vmem:[%s11210_s3 + $0xf0] sm:$0xff] }
  0x10   :  { %11734 = vst [vmem:[#allocation45_spill] sm:$0xff] %v7507_v28  ;;  %11735 = vst [vmem:[#allocation46_spill] sm:$0xff] %v7512_v29  ;;  %v7522_v31 = vld [vmem:[%s11210_s3 + $0xf8] sm:$0xff]  ;;  %v7527_v32 = vld [vmem:[%s11210_s3 + $0x100] sm:$0xff] }
  0x11   :  { %11736 = vst [vmem:[#allocation47_spill] sm:$0xff] %v7517_v30  ;;  %11737 = vst [vmem:[#allocation48_spill] sm:$0xff] %v7522_v31  ;;  %v7532_v33 = vld [vmem:[%s11210_s3 + $0x108] sm:$0xff]  ;;  %v7537_v34 = vld [vmem:[%s11210_s3 + $0x110] sm:$0xff] }
  0x12   :  { %11738 = vst [vmem:[#allocation49_spill] sm:$0xff] %v7527_v32  ;;  %11739 = vst [vmem:[#allocation50_spill] sm:$0xff] %v7532_v33  ;;  %v7542_v35 = vld [vmem:[%s11210_s3 + $0x118] sm:$0xff]  ;;  %v7547_v36 = vld [vmem:[%s11210_s3 + $0x120] sm:$0xff] }
  0x13   :  { %11740 = vst [vmem:[#allocation51_spill] sm:$0xff] %v7537_v34  ;;  %11741 = vst [vmem:[#allocation52_spill] sm:$0xff] %v7542_v35  ;;  %v7552_v37 = vld [vmem:[%s11210_s3 + $0x128] sm:$0xff]  ;;  %v7557_v38 = vld [vmem:[%s11210_s3 + $0x130] sm:$0xff] }
  0x14   :  { %11742 = vst [vmem:[#allocation53_spill] sm:$0xff] %v7547_v36  ;;  %11743 = vst [vmem:[#allocation54_spill] sm:$0xff] %v7552_v37  ;;  %v7562_v39 = vld [vmem:[%s11210_s3 + $0x138] sm:$0xff]  ;;  %v7567_v40 = vld [vmem:[%s11210_s3 + $0x140] sm:$0xff] }
  0x15   :  { %11744 = vst [vmem:[#allocation55_spill] sm:$0xff] %v7557_v38  ;;  %11745 = vst [vmem:[#allocation56_spill] sm:$0xff] %v7562_v39  ;;  %v7572_v41 = vld [vmem:[%s11210_s3 + $0x148] sm:$0xff]  ;;  %v7577_v42 = vld [vmem:[%s11210_s3 + $0x150] sm:$0xff] }
  0x16   :  { %11746 = vst [vmem:[#allocation57_spill] sm:$0xff] %v7567_v40  ;;  %11747 = vst [vmem:[#allocation58_spill] sm:$0xff] %v7572_v41  ;;  %v7582_v43 = vld [vmem:[%s11210_s3 + $0x158] sm:$0xff]  ;;  %v7587_v44 = vld [vmem:[%s11210_s3 + $0x160] sm:$0xff] }
  0x17   :  { %11748 = vst [vmem:[#allocation59_spill] sm:$0xff] %v7577_v42  ;;  %11749 = vst [vmem:[#allocation60_spill] sm:$0xff] %v7582_v43  ;;  %v7592_v45 = vld [vmem:[%s11210_s3 + $0x168] sm:$0xff]  ;;  %v7597_v46 = vld [vmem:[%s11210_s3 + $0x170] sm:$0xff] }
  0x18   :  { %11750 = vst [vmem:[#allocation61_spill] sm:$0xff] %v7587_v44  ;;  %11751 = vst [vmem:[#allocation62_spill] sm:$0xff] %v7592_v45  ;;  %v7602_v47 = vld [vmem:[%s11210_s3 + $0x178] sm:$0xff]  ;;  %v7607_v48 = vld [vmem:[%s11210_s3 + $0x180] sm:$0xff] }
  0x19   :  { %11752 = vst [vmem:[#allocation63_spill] sm:$0xff] %v7597_v46  ;;  %11753 = vst [vmem:[#allocation64_spill] sm:$0xff] %v7602_v47  ;;  %v7612_v49 = vld [vmem:[%s11210_s3 + $0x188] sm:$0xff]  ;;  %v7617_v50 = vld [vmem:[%s11210_s3 + $0x190] sm:$0xff] }
  0x1a   :  { %11754 = vst [vmem:[#allocation65_spill] sm:$0xff] %v7607_v48  ;;  %11755 = vst [vmem:[#allocation66_spill] sm:$0xff] %v7612_v49  ;;  %v7622_v51 = vld [vmem:[%s11210_s3 + $0x198] sm:$0xff]  ;;  %v7627_v52 = vld [vmem:[%s11210_s3 + $0x1a0] sm:$0xff] }
  0x1b   :  { %11756 = vst [vmem:[#allocation67_spill] sm:$0xff] %v7617_v50  ;;  %11757 = vst [vmem:[#allocation68_spill] sm:$0xff] %v7622_v51  ;;  %v7632_v53 = vld [vmem:[%s11210_s3 + $0x1a8] sm:$0xff]  ;;  %v7637_v54 = vld [vmem:[%s11210_s3 + $0x1b0] sm:$0xff] }
  0x1c   :  { %11758 = vst [vmem:[#allocation69_spill] sm:$0xff] %v7627_v52  ;;  %11759 = vst [vmem:[#allocation70_spill] sm:$0xff] %v7632_v53  ;;  %v7642_v55 = vld [vmem:[%s11210_s3 + $0x1b8] sm:$0xff]  ;;  %v7647_v56 = vld [vmem:[%s11210_s3 + $0x1c0] sm:$0xff] }
  0x1d   :  { %11760 = vst [vmem:[#allocation71_spill] sm:$0xff] %v7637_v54  ;;  %11761 = vst [vmem:[#allocation72_spill] sm:$0xff] %v7642_v55  ;;  %v7652_v57 = vld [vmem:[%s11210_s3 + $0x1c8] sm:$0xff]  ;;  %v7657_v58 = vld [vmem:[%s11210_s3 + $0x1d0] sm:$0xff] }
  0x1e   :  { %11762 = vst [vmem:[#allocation73_spill] sm:$0xff] %v7647_v56  ;;  %11763 = vst [vmem:[#allocation74_spill] sm:$0xff] %v7652_v57  ;;  %v7662_v59 = vld [vmem:[%s11210_s3 + $0x1d8] sm:$0xff]  ;;  %v7667_v60 = vld [vmem:[%s11210_s3 + $0x1e0] sm:$0xff] }
  0x1f   :  { %11764 = vst [vmem:[#allocation75_spill] sm:$0xff] %v7657_v58  ;;  %11765 = vst [vmem:[#allocation76_spill] sm:$0xff] %v7662_v59  ;;  %v7672_v61 = vld [vmem:[%s11210_s3 + $0x1e8] sm:$0xff]  ;;  %v7677_v62 = vld [vmem:[%s11210_s3 + $0x1f0] sm:$0xff] }
  0x20   :  { %11766 = vst [vmem:[#allocation77_spill] sm:$0xff] %v7667_v60  ;;  %11767 = vst [vmem:[#allocation78_spill] sm:$0xff] %v7672_v61  ;;  %v7682_v63 = vld [vmem:[%s11210_s3 + $0x1f8] sm:$0xff]  ;;  %v7687_v48 = vld [vmem:[%s11210_s3 + $0x200] sm:$0xff] }
  0x21   :  { %11768 = vst [vmem:[#allocation79_spill] sm:$0xff] %v7677_v62  ;;  %11769 = vst [vmem:[#allocation80_spill] sm:$0xff] %v7682_v63  ;;  %v7692_v49 = vld [vmem:[%s11210_s3 + $0x208] sm:$0xff]  ;;  %v7697_v16 = vld [vmem:[%s11210_s3 + $0x210] sm:$0xff] }
  0x22   :  { %11770 = vst [vmem:[#allocation81_spill] sm:$0xff] %v7687_v48  ;;  %11771 = vst [vmem:[#allocation82_spill] sm:$0xff] %v7692_v49  ;;  %v7702_v17 = vld [vmem:[%s11210_s3 + $0x218] sm:$0xff]  ;;  %v7707_v50 = vld [vmem:[%s11210_s3 + $0x220] sm:$0xff] }
  0x23   :  { %11772 = vst [vmem:[#allocation83_spill] sm:$0xff] %v7697_v16  ;;  %11773 = vst [vmem:[#allocation84_spill] sm:$0xff] %v7702_v17  ;;  %v7712_v48 = vld [vmem:[%s11210_s3 + $0x228] sm:$0xff]  ;;  %v7717_v49 = vld [vmem:[%s11210_s3 + $0x230] sm:$0xff] }
  0x24   :  { %11774 = vst [vmem:[#allocation85_spill] sm:$0xff] %v7707_v50  ;;  %11775 = vst [vmem:[#allocation86_spill] sm:$0xff] %v7712_v48  ;;  %v7722_v16 = vld [vmem:[%s11210_s3 + $0x238] sm:$0xff]  ;;  %v7727_v17 = vld [vmem:[%s11210_s3 + $0x240] sm:$0xff] }
  0x25   :  { %11776 = vst [vmem:[#allocation87_spill] sm:$0xff] %v7717_v49  ;;  %11777 = vst [vmem:[#allocation88_spill] sm:$0xff] %v7722_v16  ;;  %v7732_v50 = vld [vmem:[%s11210_s3 + $0x248] sm:$0xff]  ;;  %v7737_v48 = vld [vmem:[%s11210_s3 + $0x250] sm:$0xff] }
  0x26   :  { %11778 = vst [vmem:[#allocation89_spill] sm:$0xff] %v7727_v17  ;;  %11779 = vst [vmem:[#allocation90_spill] sm:$0xff] %v7732_v50  ;;  %v7742_v49 = vld [vmem:[%s11210_s3 + $0x258] sm:$0xff]  ;;  %v7747_v16 = vld [vmem:[%s11210_s3 + $0x260] sm:$0xff] }
  0x27   :  { %11780 = vst [vmem:[#allocation91_spill] sm:$0xff] %v7737_v48  ;;  %11781 = vst [vmem:[#allocation92_spill] sm:$0xff] %v7742_v49  ;;  %v7752_v17 = vld [vmem:[%s11210_s3 + $0x268] sm:$0xff]  ;;  %v7757_v50 = vld [vmem:[%s11210_s3 + $0x270] sm:$0xff] }
  0x28   :  { %11782 = vst [vmem:[#allocation93_spill] sm:$0xff] %v7747_v16  ;;  %11783 = vst [vmem:[#allocation94_spill] sm:$0xff] %v7752_v17  ;;  %v7762_v48 = vld [vmem:[%s11210_s3 + $0x278] sm:$0xff]  ;;  %v7767_v49 = vld [vmem:[%s11210_s3 + $0x280] sm:$0xff] }
  0x29   :  { %11784 = vst [vmem:[#allocation95_spill] sm:$0xff] %v7757_v50  ;;  %11785 = vst [vmem:[#allocation96_spill] sm:$0xff] %v7762_v48  ;;  %v7772_v16 = vld [vmem:[%s11210_s3 + $0x288] sm:$0xff]  ;;  %v7777_v17 = vld [vmem:[%s11210_s3 + $0x290] sm:$0xff] }
  0x2a   :  { %11786 = vst [vmem:[#allocation97_spill] sm:$0xff] %v7767_v49  ;;  %11787 = vst [vmem:[#allocation98_spill] sm:$0xff] %v7772_v16  ;;  %v7782_v50 = vld [vmem:[%s11210_s3 + $0x298] sm:$0xff]  ;;  %v7787_v48 = vld [vmem:[%s11210_s3 + $0x2a0] sm:$0xff] }
  0x2b   :  { %11788 = vst [vmem:[#allocation99_spill] sm:$0xff] %v7777_v17  ;;  %11789 = vst [vmem:[#allocation100_spill] sm:$0xff] %v7782_v50  ;;  %v7792_v49 = vld [vmem:[%s11210_s3 + $0x2a8] sm:$0xff]  ;;  %v7797_v16 = vld [vmem:[%s11210_s3 + $0x2b0] sm:$0xff] }
  0x2c   :  { %11790 = vst [vmem:[#allocation101_spill] sm:$0xff] %v7787_v48  ;;  %11791 = vst [vmem:[#allocation102_spill] sm:$0xff] %v7792_v49  ;;  %v7802_v17 = vld [vmem:[%s11210_s3 + $0x2b8] sm:$0xff]  ;;  %v7807_v50 = vld [vmem:[%s11210_s3 + $0x2c0] sm:$0xff] }
  0x2d   :  { %11792 = vst [vmem:[#allocation103_spill] sm:$0xff] %v7797_v16  ;;  %11793 = vst [vmem:[#allocation104_spill] sm:$0xff] %v7802_v17  ;;  %v7812_v48 = vld [vmem:[%s11210_s3 + $0x2c8] sm:$0xff]  ;;  %v7817_v49 = vld [vmem:[%s11210_s3 + $0x2d0] sm:$0xff] }
  0x2e   :  { %11794 = vst [vmem:[#allocation105_spill] sm:$0xff] %v7807_v50  ;;  %11795 = vst [vmem:[#allocation106_spill] sm:$0xff] %v7812_v48  ;;  %v7822_v16 = vld [vmem:[%s11210_s3 + $0x2d8] sm:$0xff]  ;;  %v7827_v17 = vld [vmem:[%s11210_s3 + $0x2e0] sm:$0xff] }
  0x2f   :  { %11796 = vst [vmem:[#allocation107_spill] sm:$0xff] %v7817_v49  ;;  %11797 = vst [vmem:[#allocation108_spill] sm:$0xff] %v7822_v16  ;;  %v7832_v50 = vld [vmem:[%s11210_s3 + $0x2e8] sm:$0xff]  ;;  %v7837_v48 = vld [vmem:[%s11210_s3 + $0x2f0] sm:$0xff] }
  0x30   :  { %11798 = vst [vmem:[#allocation109_spill] sm:$0xff] %v7827_v17  ;;  %11799 = vst [vmem:[#allocation110_spill] sm:$0xff] %v7832_v50  ;;  %v7842_v49 = vld [vmem:[%s11210_s3 + $0x2f8] sm:$0xff]  ;;  %v7847_v16 = vld [vmem:[%s11210_s3 + $0x300] sm:$0xff] }
  0x31   :  { %11800 = vst [vmem:[#allocation111_spill] sm:$0xff] %v7837_v48  ;;  %11801 = vst [vmem:[#allocation112_spill] sm:$0xff] %v7842_v49  ;;  %v7852_v17 = vld [vmem:[%s11210_s3 + $0x308] sm:$0xff]  ;;  %v7857_v50 = vld [vmem:[%s11210_s3 + $0x310] sm:$0xff] }
  0x32   :  { %11802 = vst [vmem:[#allocation113_spill] sm:$0xff] %v7847_v16  ;;  %11803 = vst [vmem:[#allocation114_spill] sm:$0xff] %v7852_v17  ;;  %v7862_v48 = vld [vmem:[%s11210_s3 + $0x318] sm:$0xff]  ;;  %v7867_v49 = vld [vmem:[%s11210_s3 + $0x320] sm:$0xff] }
  0x33   :  { %11804 = vst [vmem:[#allocation115_spill] sm:$0xff] %v7857_v50  ;;  %11805 = vst [vmem:[#allocation116_spill] sm:$0xff] %v7862_v48  ;;  %v7872_v16 = vld [vmem:[%s11210_s3 + $0x328] sm:$0xff]  ;;  %v7877_v17 = vld [vmem:[%s11210_s3 + $0x330] sm:$0xff] }
  0x34   :  { %11806 = vst [vmem:[#allocation117_spill] sm:$0xff] %v7867_v49  ;;  %11807 = vst [vmem:[#allocation118_spill] sm:$0xff] %v7872_v16  ;;  %v7882_v50 = vld [vmem:[%s11210_s3 + $0x338] sm:$0xff]  ;;  %v7887_v48 = vld [vmem:[%s11210_s3 + $0x340] sm:$0xff] }
  0x35   :  { %11808 = vst [vmem:[#allocation119_spill] sm:$0xff] %v7877_v17  ;;  %11809 = vst [vmem:[#allocation120_spill] sm:$0xff] %v7882_v50  ;;  %v7892_v49 = vld [vmem:[%s11210_s3 + $0x348] sm:$0xff]  ;;  %v7897_v16 = vld [vmem:[%s11210_s3 + $0x350] sm:$0xff] }
  0x36   :  { %11810 = vst [vmem:[#allocation121_spill] sm:$0xff] %v7887_v48  ;;  %11811 = vst [vmem:[#allocation122_spill] sm:$0xff] %v7892_v49  ;;  %v7902_v17 = vld [vmem:[%s11210_s3 + $0x358] sm:$0xff]  ;;  %v7907_v50 = vld [vmem:[%s11210_s3 + $0x360] sm:$0xff] }
  0x37   :  { %11812 = vst [vmem:[#allocation123_spill] sm:$0xff] %v7897_v16  ;;  %11813 = vst [vmem:[#allocation124_spill] sm:$0xff] %v7902_v17  ;;  %v7912_v48 = vld [vmem:[%s11210_s3 + $0x368] sm:$0xff]  ;;  %v7917_v49 = vld [vmem:[%s11210_s3 + $0x370] sm:$0xff] }
  0x38   :  { %11814 = vst [vmem:[#allocation125_spill] sm:$0xff] %v7907_v50  ;;  %11815 = vst [vmem:[#allocation126_spill] sm:$0xff] %v7912_v48  ;;  %v7922_v16 = vld [vmem:[%s11210_s3 + $0x378] sm:$0xff]  ;;  %v7927_v17 = vld [vmem:[%s11210_s3 + $0x380] sm:$0xff] }
  0x39   :  { %11816 = vst [vmem:[#allocation127_spill] sm:$0xff] %v7917_v49  ;;  %11817 = vst [vmem:[#allocation128_spill] sm:$0xff] %v7922_v16  ;;  %v7932_v50 = vld [vmem:[%s11210_s3 + $0x388] sm:$0xff]  ;;  %v7937_v48 = vld [vmem:[%s11210_s3 + $0x390] sm:$0xff] }
  0x3a   :  { %11818 = vst [vmem:[#allocation129_spill] sm:$0xff] %v7927_v17  ;;  %11819 = vst [vmem:[#allocation130_spill] sm:$0xff] %v7932_v50  ;;  %v7942_v49 = vld [vmem:[%s11210_s3 + $0x398] sm:$0xff]  ;;  %v7947_v16 = vld [vmem:[%s11210_s3 + $0x3a0] sm:$0xff] }
  0x3b   :  { %11820 = vst [vmem:[#allocation131_spill] sm:$0xff] %v7937_v48  ;;  %11821 = vst [vmem:[#allocation132_spill] sm:$0xff] %v7942_v49  ;;  %v7952_v17 = vld [vmem:[%s11210_s3 + $0x3a8] sm:$0xff]  ;;  %v7957_v50 = vld [vmem:[%s11210_s3 + $0x3b0] sm:$0xff] }
  0x3c   :  { %11822 = vst [vmem:[#allocation133_spill] sm:$0xff] %v7947_v16  ;;  %11823 = vst [vmem:[#allocation134_spill] sm:$0xff] %v7952_v17  ;;  %v7962_v48 = vld [vmem:[%s11210_s3 + $0x3b8] sm:$0xff]  ;;  %v7967_v49 = vld [vmem:[%s11210_s3 + $0x3c0] sm:$0xff] }
  0x3d   :  { %11824 = vst [vmem:[#allocation135_spill] sm:$0xff] %v7957_v50  ;;  %11825 = vst [vmem:[#allocation136_spill] sm:$0xff] %v7962_v48  ;;  %v7972_v16 = vld [vmem:[%s11210_s3 + $0x3c8] sm:$0xff]  ;;  %v7977_v17 = vld [vmem:[%s11210_s3 + $0x3d0] sm:$0xff] }
  0x3e   :  { %11826 = vst [vmem:[#allocation137_spill] sm:$0xff] %v7967_v49  ;;  %11827 = vst [vmem:[#allocation138_spill] sm:$0xff] %v7972_v16  ;;  %v7982_v50 = vld [vmem:[%s11210_s3 + $0x3d8] sm:$0xff]  ;;  %v7987_v48 = vld [vmem:[%s11210_s3 + $0x3e0] sm:$0xff] }
  0x3f   :  { %11828 = vst [vmem:[#allocation139_spill] sm:$0xff] %v7977_v17  ;;  %11829 = vst [vmem:[#allocation140_spill] sm:$0xff] %v7982_v50  ;;  %v7992_v49 = vld [vmem:[%s11210_s3 + $0x3e8] sm:$0xff]  ;;  %v7997_v16 = vld [vmem:[%s11210_s3 + $0x3f0] sm:$0xff] }
  0x40   :  { %11830 = vst [vmem:[#allocation141_spill] sm:$0xff] %v7987_v48  ;;  %11831 = vst [vmem:[#allocation142_spill] sm:$0xff] %v7992_v49  ;;  %v8002_v17 = vld [vmem:[%s11210_s3 + $0x3f8] sm:$0xff] }
  0x41   :  { %11832 = vst [vmem:[#allocation143_spill] sm:$0xff] %v7997_v16  ;;  %11833 = vst [vmem:[#allocation144_spill] sm:$0xff] %v8002_v17 }
  0x42   :  { %322 = vsyncadd [#allocation5], 16384  ;;  %v8007_v50 = vld [vmem:[%s11210_s3 + $0x400] sm:$0xff]  ;;  %v8012_v48 = vld [vmem:[%s11210_s3 + $0x408] sm:$0xff] }
  0x43   :  { %11834 = vst [vmem:[#allocation145_spill] sm:$0xff] %v8007_v50  ;;  %11835 = vst [vmem:[#allocation146_spill] sm:$0xff] %v8012_v48  ;;  %v8017_v49 = vld [vmem:[%s11210_s3 + $0x410] sm:$0xff]  ;;  %v8022_v16 = vld [vmem:[%s11210_s3 + $0x418] sm:$0xff] }
  0x44   :  { %11836 = vst [vmem:[#allocation147_spill] sm:$0xff] %v8017_v49  ;;  %v8027_v17 = vld [vmem:[%s11210_s3 + $0x420] sm:$0xff]  ;;  %v8032_v51 = vld [vmem:[%s11210_s3 + $0x428] sm:$0xff]  ;;  %v8037_v18 = vld [vmem:[%s11210_s3 + $0x430] sm:$0xff] }
  0x45   :  { %v8042_v19 = vld [vmem:[%s11210_s3 + $0x438] sm:$0xff]  ;;  %v8047_v52 = vld [vmem:[%s11210_s3 + $0x440] sm:$0xff]  ;;  %v8052_v53 = vld [vmem:[%s11210_s3 + $0x448] sm:$0xff] }
  0x46   :  { %v8057_v20 = vld [vmem:[%s11210_s3 + $0x450] sm:$0xff]  ;;  %v8062_v21 = vld [vmem:[%s11210_s3 + $0x458] sm:$0xff]  ;;  %v8067_v54 = vld [vmem:[%s11210_s3 + $0x460] sm:$0xff] }
  0x47   :  { %v8072_v55 = vld [vmem:[%s11210_s3 + $0x468] sm:$0xff]  ;;  %v8077_v22 = vld [vmem:[%s11210_s3 + $0x470] sm:$0xff]  ;;  %v8082_v23 = vld [vmem:[%s11210_s3 + $0x478] sm:$0xff] }
  0x48   :  { %v8087_v56 = vld [vmem:[%s11210_s3 + $0x480] sm:$0xff]  ;;  %v8092_v57 = vld [vmem:[%s11210_s3 + $0x488] sm:$0xff]  ;;  %v8097_v24 = vld [vmem:[%s11210_s3 + $0x490] sm:$0xff] }
  0x49   :  { %11837 = vst [vmem:[#allocation148_spill] sm:$0xff] %v8087_v56  ;;  %11838 = vst [vmem:[#allocation149_spill] sm:$0xff] %v8092_v57  ;;  %v8102_v25 = vld [vmem:[%s11210_s3 + $0x498] sm:$0xff]  ;;  %v8107_v58 = vld [vmem:[%s11210_s3 + $0x4a0] sm:$0xff] }
  0x4a   :  { %11839 = vst [vmem:[#allocation150_spill] sm:$0xff] %v8097_v24  ;;  %11840 = vst [vmem:[#allocation151_spill] sm:$0xff] %v8102_v25  ;;  %v8112_v59 = vld [vmem:[%s11210_s3 + $0x4a8] sm:$0xff]  ;;  %v8117_v26 = vld [vmem:[%s11210_s3 + $0x4b0] sm:$0xff] }
  0x4b   :  { %11841 = vst [vmem:[#allocation152_spill] sm:$0xff] %v8107_v58  ;;  %11842 = vst [vmem:[#allocation153_spill] sm:$0xff] %v8112_v59  ;;  %v8122_v27 = vld [vmem:[%s11210_s3 + $0x4b8] sm:$0xff]  ;;  %v8127_v60 = vld [vmem:[%s11210_s3 + $0x4c0] sm:$0xff] }
  0x4c   :  { %11843 = vst [vmem:[#allocation154_spill] sm:$0xff] %v8117_v26  ;;  %11844 = vst [vmem:[#allocation155_spill] sm:$0xff] %v8122_v27  ;;  %v8132_v61 = vld [vmem:[%s11210_s3 + $0x4c8] sm:$0xff]  ;;  %v8137_v28 = vld [vmem:[%s11210_s3 + $0x4d0] sm:$0xff] }
  0x4d   :  { %11845 = vst [vmem:[#allocation156_spill] sm:$0xff] %v8127_v60  ;;  %11846 = vst [vmem:[#allocation157_spill] sm:$0xff] %v8132_v61  ;;  %v8142_v29 = vld [vmem:[%s11210_s3 + $0x4d8] sm:$0xff]  ;;  %v8147_v62 = vld [vmem:[%s11210_s3 + $0x4e0] sm:$0xff] }
  0x4e   :  { %11847 = vst [vmem:[#allocation158_spill] sm:$0xff] %v8137_v28  ;;  %11848 = vst [vmem:[#allocation159_spill] sm:$0xff] %v8142_v29  ;;  %v8152_v63 = vld [vmem:[%s11210_s3 + $0x4e8] sm:$0xff]  ;;  %v8157_v30 = vld [vmem:[%s11210_s3 + $0x4f0] sm:$0xff] }
  0x4f   :  { %11849 = vst [vmem:[#allocation160_spill] sm:$0xff] %v8147_v62  ;;  %11850 = vst [vmem:[#allocation161_spill] sm:$0xff] %v8152_v63  ;;  %v8162_v31 = vld [vmem:[%s11210_s3 + $0x4f8] sm:$0xff]  ;;  %v8167_v32 = vld [vmem:[%s11210_s3 + $0x500] sm:$0xff] }
  0x50   :  { %11851 = vst [vmem:[#allocation162_spill] sm:$0xff] %v8157_v30  ;;  %11852 = vst [vmem:[#allocation163_spill] sm:$0xff] %v8162_v31  ;;  %v8172_v33 = vld [vmem:[%s11210_s3 + $0x508] sm:$0xff]  ;;  %v8177_v0 = vld [vmem:[%s11210_s3 + $0x510] sm:$0xff] }
  0x51   :  { %11853 = vst [vmem:[#allocation164_spill] sm:$0xff] %v8167_v32  ;;  %11854 = vst [vmem:[#allocation165_spill] sm:$0xff] %v8172_v33  ;;  %v8182_v1 = vld [vmem:[%s11210_s3 + $0x518] sm:$0xff]  ;;  %v8187_v34 = vld [vmem:[%s11210_s3 + $0x520] sm:$0xff] }
  0x52   :  { %11855 = vst [vmem:[#allocation166_spill] sm:$0xff] %v8177_v0  ;;  %11856 = vst [vmem:[#allocation167_spill] sm:$0xff] %v8182_v1  ;;  %v8192_v35 = vld [vmem:[%s11210_s3 + $0x528] sm:$0xff]  ;;  %v8197_v2 = vld [vmem:[%s11210_s3 + $0x530] sm:$0xff] }
  0x53   :  { %v8202_v3 = vld [vmem:[%s11210_s3 + $0x538] sm:$0xff]  ;;  %v8207_v36 = vld [vmem:[%s11210_s3 + $0x540] sm:$0xff]  ;;  %v8212_v37 = vld [vmem:[%s11210_s3 + $0x548] sm:$0xff] }
  0x54   :  { %v8217_v4 = vld [vmem:[%s11210_s3 + $0x550] sm:$0xff]  ;;  %v8222_v5 = vld [vmem:[%s11210_s3 + $0x558] sm:$0xff]  ;;  %v8227_v38 = vld [vmem:[%s11210_s3 + $0x560] sm:$0xff] }
  0x55   :  { %v8232_v39 = vld [vmem:[%s11210_s3 + $0x568] sm:$0xff]  ;;  %v8237_v6 = vld [vmem:[%s11210_s3 + $0x570] sm:$0xff]  ;;  %v8242_v7 = vld [vmem:[%s11210_s3 + $0x578] sm:$0xff] }
  0x56   :  { %v8247_v40 = vld [vmem:[%s11210_s3 + $0x580] sm:$0xff]  ;;  %v8252_v41 = vld [vmem:[%s11210_s3 + $0x588] sm:$0xff]  ;;  %v8257_v8 = vld [vmem:[%s11210_s3 + $0x590] sm:$0xff] }
  0x57   :  { %11857 = vst [vmem:[#allocation168_spill] sm:$0xff] %v8247_v40  ;;  %11858 = vst [vmem:[#allocation169_spill] sm:$0xff] %v8252_v41  ;;  %v8262_v9 = vld [vmem:[%s11210_s3 + $0x598] sm:$0xff]  ;;  %v8267_v42 = vld [vmem:[%s11210_s3 + $0x5a0] sm:$0xff] }
  0x58   :  { %11859 = vst [vmem:[#allocation170_spill] sm:$0xff] %v8257_v8  ;;  %11860 = vst [vmem:[#allocation171_spill] sm:$0xff] %v8262_v9  ;;  %v8272_v43 = vld [vmem:[%s11210_s3 + $0x5a8] sm:$0xff]  ;;  %v8277_v10 = vld [vmem:[%s11210_s3 + $0x5b0] sm:$0xff] }
  0x59   :  { %11861 = vst [vmem:[#allocation172_spill] sm:$0xff] %v8267_v42  ;;  %11862 = vst [vmem:[#allocation173_spill] sm:$0xff] %v8272_v43  ;;  %v8282_v11 = vld [vmem:[%s11210_s3 + $0x5b8] sm:$0xff]  ;;  %v8287_v44 = vld [vmem:[%s11210_s3 + $0x5c0] sm:$0xff] }
  0x5a   :  { %11863 = vst [vmem:[#allocation174_spill] sm:$0xff] %v8277_v10  ;;  %11864 = vst [vmem:[#allocation175_spill] sm:$0xff] %v8282_v11  ;;  %v8292_v45 = vld [vmem:[%s11210_s3 + $0x5c8] sm:$0xff]  ;;  %v8297_v12 = vld [vmem:[%s11210_s3 + $0x5d0] sm:$0xff] }
  0x5b   :  { %11865 = vst [vmem:[#allocation176_spill] sm:$0xff] %v8287_v44  ;;  %11866 = vst [vmem:[#allocation177_spill] sm:$0xff] %v8292_v45  ;;  %v8302_v13 = vld [vmem:[%s11210_s3 + $0x5d8] sm:$0xff]  ;;  %v8307_v46 = vld [vmem:[%s11210_s3 + $0x5e0] sm:$0xff] }
  0x5c   :  { %11867 = vst [vmem:[#allocation178_spill] sm:$0xff] %v8297_v12  ;;  %11868 = vst [vmem:[#allocation179_spill] sm:$0xff] %v8302_v13  ;;  %v8312_v47 = vld [vmem:[%s11210_s3 + $0x5e8] sm:$0xff]  ;;  %v8317_v14 = vld [vmem:[%s11210_s3 + $0x5f0] sm:$0xff] }
  0x5d   :  { %11869 = vst [vmem:[#allocation180_spill] sm:$0xff] %v8307_v46  ;;  %11870 = vst [vmem:[#allocation181_spill] sm:$0xff] %v8312_v47  ;;  %v8322_v15 = vld [vmem:[%s11210_s3 + $0x5f8] sm:$0xff]  ;;  %v8327_v40 = vld [vmem:[%s11210_s3 + $0x600] sm:$0xff] }
  0x5e   :  { %11871 = vst [vmem:[#allocation182_spill] sm:$0xff] %v8317_v14  ;;  %11872 = vst [vmem:[#allocation183_spill] sm:$0xff] %v8322_v15  ;;  %v8332_v41 = vld [vmem:[%s11210_s3 + $0x608] sm:$0xff]  ;;  %v8337_v56 = vld [vmem:[%s11210_s3 + $0x610] sm:$0xff] }
  0x5f   :  { %11873 = vst [vmem:[#allocation184_spill] sm:$0xff] %v8327_v40  ;;  %11874 = vst [vmem:[#allocation185_spill] sm:$0xff] %v8332_v41  ;;  %v8342_v57 = vld [vmem:[%s11210_s3 + $0x618] sm:$0xff]  ;;  %v8347_v8 = vld [vmem:[%s11210_s3 + $0x620] sm:$0xff] }
  0x60   :  { %11875 = vst [vmem:[#allocation186_spill] sm:$0xff] %v8337_v56  ;;  %11876 = vst [vmem:[#allocation187_spill] sm:$0xff] %v8342_v57  ;;  %v8352_v40 = vld [vmem:[%s11210_s3 + $0x628] sm:$0xff]  ;;  %v8357_v41 = vld [vmem:[%s11210_s3 + $0x630] sm:$0xff] }
  0x61   :  { %11877 = vst [vmem:[#allocation188_spill] sm:$0xff] %v8347_v8  ;;  %11878 = vst [vmem:[#allocation189_spill] sm:$0xff] %v8352_v40  ;;  %v8362_v56 = vld [vmem:[%s11210_s3 + $0x638] sm:$0xff]  ;;  %v8367_v57 = vld [vmem:[%s11210_s3 + $0x640] sm:$0xff] }
  0x62   :  { %11879 = vst [vmem:[#allocation190_spill] sm:$0xff] %v8357_v41  ;;  %11880 = vst [vmem:[#allocation191_spill] sm:$0xff] %v8362_v56  ;;  %v8372_v8 = vld [vmem:[%s11210_s3 + $0x648] sm:$0xff]  ;;  %v8377_v40 = vld [vmem:[%s11210_s3 + $0x650] sm:$0xff] }
  0x63   :  { %11881 = vst [vmem:[#allocation192_spill] sm:$0xff] %v8367_v57  ;;  %11882 = vst [vmem:[#allocation193_spill] sm:$0xff] %v8372_v8  ;;  %v8382_v41 = vld [vmem:[%s11210_s3 + $0x658] sm:$0xff]  ;;  %v8387_v56 = vld [vmem:[%s11210_s3 + $0x660] sm:$0xff] }
  0x64   :  { %11883 = vst [vmem:[#allocation194_spill] sm:$0xff] %v8377_v40  ;;  %11884 = vst [vmem:[#allocation195_spill] sm:$0xff] %v8382_v41  ;;  %v8392_v57 = vld [vmem:[%s11210_s3 + $0x668] sm:$0xff]  ;;  %v8397_v8 = vld [vmem:[%s11210_s3 + $0x670] sm:$0xff] }
  0x65   :  { %11885 = vst [vmem:[#allocation196_spill] sm:$0xff] %v8387_v56  ;;  %11886 = vst [vmem:[#allocation197_spill] sm:$0xff] %v8392_v57  ;;  %v8402_v40 = vld [vmem:[%s11210_s3 + $0x678] sm:$0xff]  ;;  %v8407_v41 = vld [vmem:[%s11210_s3 + $0x680] sm:$0xff] }
  0x66   :  { %11887 = vst [vmem:[#allocation198_spill] sm:$0xff] %v8397_v8  ;;  %11888 = vst [vmem:[#allocation199_spill] sm:$0xff] %v8402_v40  ;;  %v8412_v56 = vld [vmem:[%s11210_s3 + $0x688] sm:$0xff]  ;;  %v8417_v57 = vld [vmem:[%s11210_s3 + $0x690] sm:$0xff] }
  0x67   :  { %11889 = vst [vmem:[#allocation200_spill] sm:$0xff] %v8407_v41  ;;  %11890 = vst [vmem:[#allocation201_spill] sm:$0xff] %v8412_v56  ;;  %v8422_v8 = vld [vmem:[%s11210_s3 + $0x698] sm:$0xff]  ;;  %v8427_v40 = vld [vmem:[%s11210_s3 + $0x6a0] sm:$0xff] }
  0x68   :  { %11891 = vst [vmem:[#allocation202_spill] sm:$0xff] %v8417_v57  ;;  %11892 = vst [vmem:[#allocation203_spill] sm:$0xff] %v8422_v8  ;;  %v8432_v41 = vld [vmem:[%s11210_s3 + $0x6a8] sm:$0xff]  ;;  %v8437_v56 = vld [vmem:[%s11210_s3 + $0x6b0] sm:$0xff] }
  0x69   :  { %11893 = vst [vmem:[#allocation204_spill] sm:$0xff] %v8427_v40  ;;  %11894 = vst [vmem:[#allocation205_spill] sm:$0xff] %v8432_v41  ;;  %v8442_v57 = vld [vmem:[%s11210_s3 + $0x6b8] sm:$0xff]  ;;  %v8447_v8 = vld [vmem:[%s11210_s3 + $0x6c0] sm:$0xff] }
  0x6a   :  { %11895 = vst [vmem:[#allocation206_spill] sm:$0xff] %v8437_v56  ;;  %11896 = vst [vmem:[#allocation207_spill] sm:$0xff] %v8442_v57  ;;  %v8452_v40 = vld [vmem:[%s11210_s3 + $0x6c8] sm:$0xff]  ;;  %v8457_v41 = vld [vmem:[%s11210_s3 + $0x6d0] sm:$0xff] }
  0x6b   :  { %11897 = vst [vmem:[#allocation208_spill] sm:$0xff] %v8447_v8  ;;  %11898 = vst [vmem:[#allocation209_spill] sm:$0xff] %v8452_v40  ;;  %v8462_v56 = vld [vmem:[%s11210_s3 + $0x6d8] sm:$0xff]  ;;  %v8467_v57 = vld [vmem:[%s11210_s3 + $0x6e0] sm:$0xff] }
  0x6c   :  { %11899 = vst [vmem:[#allocation210_spill] sm:$0xff] %v8457_v41  ;;  %11900 = vst [vmem:[#allocation211_spill] sm:$0xff] %v8462_v56  ;;  %v8472_v8 = vld [vmem:[%s11210_s3 + $0x6e8] sm:$0xff]  ;;  %v8477_v40 = vld [vmem:[%s11210_s3 + $0x6f0] sm:$0xff] }
  0x6d   :  { %11901 = vst [vmem:[#allocation212_spill] sm:$0xff] %v8467_v57  ;;  %11902 = vst [vmem:[#allocation213_spill] sm:$0xff] %v8472_v8  ;;  %v8482_v41 = vld [vmem:[%s11210_s3 + $0x6f8] sm:$0xff]  ;;  %v8487_v56 = vld [vmem:[%s11210_s3 + $0x700] sm:$0xff] }
  0x6e   :  { %11903 = vst [vmem:[#allocation214_spill] sm:$0xff] %v8477_v40  ;;  %11904 = vst [vmem:[#allocation215_spill] sm:$0xff] %v8482_v41  ;;  %v8492_v57 = vld [vmem:[%s11210_s3 + $0x708] sm:$0xff]  ;;  %v8497_v8 = vld [vmem:[%s11210_s3 + $0x710] sm:$0xff] }
  0x6f   :  { %11905 = vst [vmem:[#allocation216_spill] sm:$0xff] %v8487_v56  ;;  %11906 = vst [vmem:[#allocation217_spill] sm:$0xff] %v8492_v57  ;;  %v8502_v40 = vld [vmem:[%s11210_s3 + $0x718] sm:$0xff]  ;;  %v8507_v41 = vld [vmem:[%s11210_s3 + $0x720] sm:$0xff] }
  0x70   :  { %11907 = vst [vmem:[#allocation218_spill] sm:$0xff] %v8497_v8  ;;  %11908 = vst [vmem:[#allocation219_spill] sm:$0xff] %v8502_v40  ;;  %v8512_v56 = vld [vmem:[%s11210_s3 + $0x728] sm:$0xff]  ;;  %v8517_v57 = vld [vmem:[%s11210_s3 + $0x730] sm:$0xff] }
  0x71   :  { %11909 = vst [vmem:[#allocation220_spill] sm:$0xff] %v8507_v41  ;;  %11910 = vst [vmem:[#allocation221_spill] sm:$0xff] %v8512_v56  ;;  %v8522_v8 = vld [vmem:[%s11210_s3 + $0x738] sm:$0xff]  ;;  %v8527_v40 = vld [vmem:[%s11210_s3 + $0x740] sm:$0xff] }
  0x72   :  { %11911 = vst [vmem:[#allocation222_spill] sm:$0xff] %v8517_v57  ;;  %11912 = vst [vmem:[#allocation223_spill] sm:$0xff] %v8522_v8  ;;  %v8532_v41 = vld [vmem:[%s11210_s3 + $0x748] sm:$0xff]  ;;  %v8537_v56 = vld [vmem:[%s11210_s3 + $0x750] sm:$0xff] }
  0x73   :  { %11913 = vst [vmem:[#allocation224_spill] sm:$0xff] %v8527_v40  ;;  %11914 = vst [vmem:[#allocation225_spill] sm:$0xff] %v8532_v41  ;;  %v8542_v57 = vld [vmem:[%s11210_s3 + $0x758] sm:$0xff]  ;;  %v8547_v8 = vld [vmem:[%s11210_s3 + $0x760] sm:$0xff] }
  0x74   :  { %11915 = vst [vmem:[#allocation226_spill] sm:$0xff] %v8537_v56  ;;  %11916 = vst [vmem:[#allocation227_spill] sm:$0xff] %v8542_v57  ;;  %v8552_v40 = vld [vmem:[%s11210_s3 + $0x768] sm:$0xff]  ;;  %v8557_v41 = vld [vmem:[%s11210_s3 + $0x770] sm:$0xff] }
  0x75   :  { %11917 = vst [vmem:[#allocation228_spill] sm:$0xff] %v8547_v8  ;;  %11918 = vst [vmem:[#allocation229_spill] sm:$0xff] %v8552_v40  ;;  %v8562_v56 = vld [vmem:[%s11210_s3 + $0x778] sm:$0xff]  ;;  %v8567_v57 = vld [vmem:[%s11210_s3 + $0x780] sm:$0xff] }
  0x76   :  { %11919 = vst [vmem:[#allocation230_spill] sm:$0xff] %v8557_v41  ;;  %11920 = vst [vmem:[#allocation231_spill] sm:$0xff] %v8562_v56  ;;  %v8572_v8 = vld [vmem:[%s11210_s3 + $0x788] sm:$0xff]  ;;  %v8577_v40 = vld [vmem:[%s11210_s3 + $0x790] sm:$0xff] }
  0x77   :  { %11921 = vst [vmem:[#allocation232_spill] sm:$0xff] %v8567_v57  ;;  %11922 = vst [vmem:[#allocation233_spill] sm:$0xff] %v8572_v8  ;;  %v8582_v41 = vld [vmem:[%s11210_s3 + $0x798] sm:$0xff]  ;;  %v8587_v56 = vld [vmem:[%s11210_s3 + $0x7a0] sm:$0xff] }
  0x78   :  { %11923 = vst [vmem:[#allocation234_spill] sm:$0xff] %v8577_v40  ;;  %11924 = vst [vmem:[#allocation235_spill] sm:$0xff] %v8582_v41  ;;  %v8592_v57 = vld [vmem:[%s11210_s3 + $0x7a8] sm:$0xff]  ;;  %v8597_v8 = vld [vmem:[%s11210_s3 + $0x7b0] sm:$0xff] }
  0x79   :  { %11925 = vst [vmem:[#allocation236_spill] sm:$0xff] %v8587_v56  ;;  %11926 = vst [vmem:[#allocation237_spill] sm:$0xff] %v8592_v57  ;;  %v8602_v40 = vld [vmem:[%s11210_s3 + $0x7b8] sm:$0xff]  ;;  %v8607_v41 = vld [vmem:[%s11210_s3 + $0x7c0] sm:$0xff] }
  0x7a   :  { %11927 = vst [vmem:[#allocation238_spill] sm:$0xff] %v8597_v8  ;;  %11928 = vst [vmem:[#allocation239_spill] sm:$0xff] %v8602_v40  ;;  %v8612_v56 = vld [vmem:[%s11210_s3 + $0x7c8] sm:$0xff]  ;;  %v8617_v57 = vld [vmem:[%s11210_s3 + $0x7d0] sm:$0xff] }
  0x7b   :  { %11929 = vst [vmem:[#allocation240_spill] sm:$0xff] %v8607_v41  ;;  %11930 = vst [vmem:[#allocation241_spill] sm:$0xff] %v8612_v56  ;;  %v8622_v8 = vld [vmem:[%s11210_s3 + $0x7d8] sm:$0xff]  ;;  %v8627_v40 = vld [vmem:[%s11210_s3 + $0x7e0] sm:$0xff] }
  0x7c   :  { %11931 = vst [vmem:[#allocation242_spill] sm:$0xff] %v8617_v57  ;;  %11932 = vst [vmem:[#allocation243_spill] sm:$0xff] %v8622_v8  ;;  %v8632_v41 = vld [vmem:[%s11210_s3 + $0x7e8] sm:$0xff]  ;;  %v8637_v56 = vld [vmem:[%s11210_s3 + $0x7f0] sm:$0xff] }
  0x7d   :  { %11933 = vst [vmem:[#allocation244_spill] sm:$0xff] %v8627_v40  ;;  %11934 = vst [vmem:[#allocation245_spill] sm:$0xff] %v8632_v41  ;;  %v8642_v57 = vld [vmem:[%s11210_s3 + $0x7f8] sm:$0xff] }
  0x7e   :  { %11935 = vst [vmem:[#allocation246_spill] sm:$0xff] %v8637_v56  ;;  %11936 = vst [vmem:[#allocation247_spill] sm:$0xff] %v8642_v57 }
  0x7f   :  { %622 = vsyncadd [#allocation5 + $0x1], 16384  ;;  %v8647_v8 = vld [vmem:[%s11210_s3 + $0x800] sm:$0xff]  ;;  %v8652_v40 = vld [vmem:[%s11210_s3 + $0x808] sm:$0xff] }
  0x80   :  { %11937 = vst [vmem:[#allocation248_spill] sm:$0xff] %v8647_v8  ;;  %11938 = vst [vmem:[#allocation249_spill] sm:$0xff] %v8652_v40  ;;  %v8657_v41 = vld [vmem:[%s11210_s3 + $0x810] sm:$0xff]  ;;  %v8662_v56 = vld [vmem:[%s11210_s3 + $0x818] sm:$0xff] }
  0x81   :  { %11939 = vst [vmem:[#allocation250_spill] sm:$0xff] %v8657_v41  ;;  %11940 = vst [vmem:[#allocation251_spill] sm:$0xff] %v8662_v56  ;;  %v8667_v57 = vld [vmem:[%s11210_s3 + $0x820] sm:$0xff]  ;;  %v8672_v8 = vld [vmem:[%s11210_s3 + $0x828] sm:$0xff] }
  0x82   :  { %11941 = vst [vmem:[#allocation252_spill] sm:$0xff] %v8667_v57  ;;  %11942 = vst [vmem:[#allocation253_spill] sm:$0xff] %v8672_v8  ;;  %v8677_v40 = vld [vmem:[%s11210_s3 + $0x830] sm:$0xff]  ;;  %v8682_v41 = vld [vmem:[%s11210_s3 + $0x838] sm:$0xff] }
  0x83   :  { %11943 = vst [vmem:[#allocation254_spill] sm:$0xff] %v8677_v40  ;;  %11944 = vst [vmem:[#allocation255_spill] sm:$0xff] %v8682_v41  ;;  %v8687_v56 = vld [vmem:[%s11210_s3 + $0x840] sm:$0xff]  ;;  %v8692_v57 = vld [vmem:[%s11210_s3 + $0x848] sm:$0xff] }
  0x84   :  { %11945 = vst [vmem:[#allocation256_spill] sm:$0xff] %v8687_v56  ;;  %11946 = vst [vmem:[#allocation257_spill] sm:$0xff] %v8692_v57  ;;  %v8697_v8 = vld [vmem:[%s11210_s3 + $0x850] sm:$0xff]  ;;  %v8702_v40 = vld [vmem:[%s11210_s3 + $0x858] sm:$0xff] }
  0x85   :  { %11947 = vst [vmem:[#allocation258_spill] sm:$0xff] %v8697_v8  ;;  %11948 = vst [vmem:[#allocation259_spill] sm:$0xff] %v8702_v40  ;;  %v8707_v41 = vld [vmem:[%s11210_s3 + $0x860] sm:$0xff]  ;;  %v8712_v56 = vld [vmem:[%s11210_s3 + $0x868] sm:$0xff] }
  0x86   :  { %11949 = vst [vmem:[#allocation260_spill] sm:$0xff] %v8707_v41  ;;  %11950 = vst [vmem:[#allocation261_spill] sm:$0xff] %v8712_v56  ;;  %v8717_v57 = vld [vmem:[%s11210_s3 + $0x870] sm:$0xff]  ;;  %v8722_v8 = vld [vmem:[%s11210_s3 + $0x878] sm:$0xff] }
  0x87   :  { %11951 = vst [vmem:[#allocation262_spill] sm:$0xff] %v8717_v57  ;;  %11952 = vst [vmem:[#allocation263_spill] sm:$0xff] %v8722_v8  ;;  %v8727_v40 = vld [vmem:[%s11210_s3 + $0x880] sm:$0xff]  ;;  %v8732_v41 = vld [vmem:[%s11210_s3 + $0x888] sm:$0xff] }
  0x88   :  { %11953 = vst [vmem:[#allocation264_spill] sm:$0xff] %v8727_v40  ;;  %11954 = vst [vmem:[#allocation265_spill] sm:$0xff] %v8732_v41  ;;  %v8737_v56 = vld [vmem:[%s11210_s3 + $0x890] sm:$0xff]  ;;  %v8742_v57 = vld [vmem:[%s11210_s3 + $0x898] sm:$0xff] }
  0x89   :  { %11955 = vst [vmem:[#allocation266_spill] sm:$0xff] %v8737_v56  ;;  %11956 = vst [vmem:[#allocation267_spill] sm:$0xff] %v8742_v57  ;;  %v8747_v8 = vld [vmem:[%s11210_s3 + $0x8a0] sm:$0xff]  ;;  %v8752_v40 = vld [vmem:[%s11210_s3 + $0x8a8] sm:$0xff] }
  0x8a   :  { %11957 = vst [vmem:[#allocation268_spill] sm:$0xff] %v8747_v8  ;;  %11958 = vst [vmem:[#allocation269_spill] sm:$0xff] %v8752_v40  ;;  %v8757_v41 = vld [vmem:[%s11210_s3 + $0x8b0] sm:$0xff]  ;;  %v8762_v56 = vld [vmem:[%s11210_s3 + $0x8b8] sm:$0xff] }
  0x8b   :  { %11959 = vst [vmem:[#allocation270_spill] sm:$0xff] %v8757_v41  ;;  %11960 = vst [vmem:[#allocation271_spill] sm:$0xff] %v8762_v56  ;;  %v8767_v57 = vld [vmem:[%s11210_s3 + $0x8c0] sm:$0xff]  ;;  %v8772_v8 = vld [vmem:[%s11210_s3 + $0x8c8] sm:$0xff] }
  0x8c   :  { %11961 = vst [vmem:[#allocation272_spill] sm:$0xff] %v8767_v57  ;;  %11962 = vst [vmem:[#allocation273_spill] sm:$0xff] %v8772_v8  ;;  %v8777_v40 = vld [vmem:[%s11210_s3 + $0x8d0] sm:$0xff]  ;;  %v8782_v41 = vld [vmem:[%s11210_s3 + $0x8d8] sm:$0xff] }
  0x8d   :  { %11963 = vst [vmem:[#allocation274_spill] sm:$0xff] %v8777_v40  ;;  %11964 = vst [vmem:[#allocation275_spill] sm:$0xff] %v8782_v41  ;;  %v8787_v56 = vld [vmem:[%s11210_s3 + $0x8e0] sm:$0xff]  ;;  %v8792_v57 = vld [vmem:[%s11210_s3 + $0x8e8] sm:$0xff] }
  0x8e   :  { %11965 = vst [vmem:[#allocation276_spill] sm:$0xff] %v8787_v56  ;;  %11966 = vst [vmem:[#allocation277_spill] sm:$0xff] %v8792_v57  ;;  %v8797_v8 = vld [vmem:[%s11210_s3 + $0x8f0] sm:$0xff]  ;;  %v8802_v40 = vld [vmem:[%s11210_s3 + $0x8f8] sm:$0xff] }
  0x8f   :  { %11967 = vst [vmem:[#allocation278_spill] sm:$0xff] %v8797_v8  ;;  %11968 = vst [vmem:[#allocation279_spill] sm:$0xff] %v8802_v40  ;;  %v8807_v41 = vld [vmem:[%s11210_s3 + $0x900] sm:$0xff]  ;;  %v8812_v56 = vld [vmem:[%s11210_s3 + $0x908] sm:$0xff] }
  0x90   :  { %11969 = vst [vmem:[#allocation280_spill] sm:$0xff] %v8807_v41  ;;  %11970 = vst [vmem:[#allocation281_spill] sm:$0xff] %v8812_v56  ;;  %v8817_v57 = vld [vmem:[%s11210_s3 + $0x910] sm:$0xff]  ;;  %v8822_v8 = vld [vmem:[%s11210_s3 + $0x918] sm:$0xff] }
  0x91   :  { %11971 = vst [vmem:[#allocation282_spill] sm:$0xff] %v8817_v57  ;;  %11972 = vst [vmem:[#allocation283_spill] sm:$0xff] %v8822_v8  ;;  %v8827_v40 = vld [vmem:[%s11210_s3 + $0x920] sm:$0xff]  ;;  %v8832_v41 = vld [vmem:[%s11210_s3 + $0x928] sm:$0xff] }
  0x92   :  { %11973 = vst [vmem:[#allocation284_spill] sm:$0xff] %v8827_v40  ;;  %11974 = vst [vmem:[#allocation285_spill] sm:$0xff] %v8832_v41  ;;  %v8837_v56 = vld [vmem:[%s11210_s3 + $0x930] sm:$0xff]  ;;  %v8842_v57 = vld [vmem:[%s11210_s3 + $0x938] sm:$0xff] }
  0x93   :  { %11975 = vst [vmem:[#allocation286_spill] sm:$0xff] %v8837_v56  ;;  %11976 = vst [vmem:[#allocation287_spill] sm:$0xff] %v8842_v57  ;;  %v8847_v8 = vld [vmem:[%s11210_s3 + $0x940] sm:$0xff]  ;;  %v8852_v40 = vld [vmem:[%s11210_s3 + $0x948] sm:$0xff] }
  0x94   :  { %11977 = vst [vmem:[#allocation288_spill] sm:$0xff] %v8847_v8  ;;  %11978 = vst [vmem:[#allocation289_spill] sm:$0xff] %v8852_v40  ;;  %v8857_v41 = vld [vmem:[%s11210_s3 + $0x950] sm:$0xff]  ;;  %v8862_v56 = vld [vmem:[%s11210_s3 + $0x958] sm:$0xff] }
  0x95   :  { %11979 = vst [vmem:[#allocation290_spill] sm:$0xff] %v8857_v41  ;;  %11980 = vst [vmem:[#allocation291_spill] sm:$0xff] %v8862_v56  ;;  %v8867_v57 = vld [vmem:[%s11210_s3 + $0x960] sm:$0xff]  ;;  %v8872_v8 = vld [vmem:[%s11210_s3 + $0x968] sm:$0xff] }
  0x96   :  { %11981 = vst [vmem:[#allocation292_spill] sm:$0xff] %v8867_v57  ;;  %11982 = vst [vmem:[#allocation293_spill] sm:$0xff] %v8872_v8  ;;  %v8877_v40 = vld [vmem:[%s11210_s3 + $0x970] sm:$0xff]  ;;  %v8882_v41 = vld [vmem:[%s11210_s3 + $0x978] sm:$0xff] }
  0x97   :  { %11983 = vst [vmem:[#allocation294_spill] sm:$0xff] %v8877_v40  ;;  %11984 = vst [vmem:[#allocation295_spill] sm:$0xff] %v8882_v41  ;;  %v8887_v56 = vld [vmem:[%s11210_s3 + $0x980] sm:$0xff]  ;;  %v8892_v57 = vld [vmem:[%s11210_s3 + $0x988] sm:$0xff] }
  0x98   :  { %11985 = vst [vmem:[#allocation296_spill] sm:$0xff] %v8887_v56  ;;  %11986 = vst [vmem:[#allocation297_spill] sm:$0xff] %v8892_v57  ;;  %v8897_v8 = vld [vmem:[%s11210_s3 + $0x990] sm:$0xff]  ;;  %v8902_v40 = vld [vmem:[%s11210_s3 + $0x998] sm:$0xff] }
  0x99   :  { %11987 = vst [vmem:[#allocation298_spill] sm:$0xff] %v8897_v8  ;;  %11988 = vst [vmem:[#allocation299_spill] sm:$0xff] %v8902_v40  ;;  %v8907_v41 = vld [vmem:[%s11210_s3 + $0x9a0] sm:$0xff]  ;;  %v8912_v56 = vld [vmem:[%s11210_s3 + $0x9a8] sm:$0xff] }
  0x9a   :  { %11989 = vst [vmem:[#allocation300_spill] sm:$0xff] %v8907_v41  ;;  %11990 = vst [vmem:[#allocation301_spill] sm:$0xff] %v8912_v56  ;;  %v8917_v57 = vld [vmem:[%s11210_s3 + $0x9b0] sm:$0xff]  ;;  %v8922_v8 = vld [vmem:[%s11210_s3 + $0x9b8] sm:$0xff] }
  0x9b   :  { %11991 = vst [vmem:[#allocation302_spill] sm:$0xff] %v8917_v57  ;;  %11992 = vst [vmem:[#allocation303_spill] sm:$0xff] %v8922_v8  ;;  %v8927_v40 = vld [vmem:[%s11210_s3 + $0x9c0] sm:$0xff]  ;;  %v8932_v41 = vld [vmem:[%s11210_s3 + $0x9c8] sm:$0xff] }
  0x9c   :  { %11993 = vst [vmem:[#allocation304_spill] sm:$0xff] %v8927_v40  ;;  %11994 = vst [vmem:[#allocation305_spill] sm:$0xff] %v8932_v41  ;;  %v8937_v56 = vld [vmem:[%s11210_s3 + $0x9d0] sm:$0xff]  ;;  %v8942_v57 = vld [vmem:[%s11210_s3 + $0x9d8] sm:$0xff] }
  0x9d   :  { %11995 = vst [vmem:[#allocation306_spill] sm:$0xff] %v8937_v56  ;;  %11996 = vst [vmem:[#allocation307_spill] sm:$0xff] %v8942_v57  ;;  %v8947_v8 = vld [vmem:[%s11210_s3 + $0x9e0] sm:$0xff]  ;;  %v8952_v40 = vld [vmem:[%s11210_s3 + $0x9e8] sm:$0xff] }
  0x9e   :  { %11997 = vst [vmem:[#allocation308_spill] sm:$0xff] %v8947_v8  ;;  %11998 = vst [vmem:[#allocation309_spill] sm:$0xff] %v8952_v40  ;;  %v8957_v41 = vld [vmem:[%s11210_s3 + $0x9f0] sm:$0xff]  ;;  %v8962_v56 = vld [vmem:[%s11210_s3 + $0x9f8] sm:$0xff] }
  0x9f   :  { %11999 = vst [vmem:[#allocation310_spill] sm:$0xff] %v8957_v41  ;;  %12000 = vst [vmem:[#allocation311_spill] sm:$0xff] %v8962_v56  ;;  %v8967_v57 = vld [vmem:[%s11210_s3 + $0xa00] sm:$0xff]  ;;  %v8972_v8 = vld [vmem:[%s11210_s3 + $0xa08] sm:$0xff] }
  0xa0   :  { %12001 = vst [vmem:[#allocation312_spill] sm:$0xff] %v8967_v57  ;;  %12002 = vst [vmem:[#allocation313_spill] sm:$0xff] %v8972_v8  ;;  %v8977_v40 = vld [vmem:[%s11210_s3 + $0xa10] sm:$0xff]  ;;  %v8982_v41 = vld [vmem:[%s11210_s3 + $0xa18] sm:$0xff] }
  0xa1   :  { %12003 = vst [vmem:[#allocation314_spill] sm:$0xff] %v8977_v40  ;;  %12004 = vst [vmem:[#allocation315_spill] sm:$0xff] %v8982_v41  ;;  %v8987_v56 = vld [vmem:[%s11210_s3 + $0xa20] sm:$0xff]  ;;  %v8992_v57 = vld [vmem:[%s11210_s3 + $0xa28] sm:$0xff] }
  0xa2   :  { %12005 = vst [vmem:[#allocation316_spill] sm:$0xff] %v8987_v56  ;;  %12006 = vst [vmem:[#allocation317_spill] sm:$0xff] %v8992_v57  ;;  %v8997_v8 = vld [vmem:[%s11210_s3 + $0xa30] sm:$0xff]  ;;  %v9002_v40 = vld [vmem:[%s11210_s3 + $0xa38] sm:$0xff] }
  0xa3   :  { %12007 = vst [vmem:[#allocation318_spill] sm:$0xff] %v8997_v8  ;;  %12008 = vst [vmem:[#allocation319_spill] sm:$0xff] %v9002_v40  ;;  %v9007_v41 = vld [vmem:[%s11210_s3 + $0xa40] sm:$0xff]  ;;  %v9012_v56 = vld [vmem:[%s11210_s3 + $0xa48] sm:$0xff] }
  0xa4   :  { %12009 = vst [vmem:[#allocation320_spill] sm:$0xff] %v9007_v41  ;;  %12010 = vst [vmem:[#allocation321_spill] sm:$0xff] %v9012_v56  ;;  %v9017_v57 = vld [vmem:[%s11210_s3 + $0xa50] sm:$0xff]  ;;  %v9022_v8 = vld [vmem:[%s11210_s3 + $0xa58] sm:$0xff] }
  0xa5   :  { %12011 = vst [vmem:[#allocation322_spill] sm:$0xff] %v9017_v57  ;;  %12012 = vst [vmem:[#allocation323_spill] sm:$0xff] %v9022_v8  ;;  %v9027_v40 = vld [vmem:[%s11210_s3 + $0xa60] sm:$0xff]  ;;  %v9032_v41 = vld [vmem:[%s11210_s3 + $0xa68] sm:$0xff] }
  0xa6   :  { %12013 = vst [vmem:[#allocation324_spill] sm:$0xff] %v9027_v40  ;;  %12014 = vst [vmem:[#allocation325_spill] sm:$0xff] %v9032_v41  ;;  %v9037_v56 = vld [vmem:[%s11210_s3 + $0xa70] sm:$0xff]  ;;  %v9042_v57 = vld [vmem:[%s11210_s3 + $0xa78] sm:$0xff] }
  0xa7   :  { %12015 = vst [vmem:[#allocation326_spill] sm:$0xff] %v9037_v56  ;;  %12016 = vst [vmem:[#allocation327_spill] sm:$0xff] %v9042_v57  ;;  %v9047_v8 = vld [vmem:[%s11210_s3 + $0xa80] sm:$0xff]  ;;  %v9052_v40 = vld [vmem:[%s11210_s3 + $0xa88] sm:$0xff] }
  0xa8   :  { %12017 = vst [vmem:[#allocation328_spill] sm:$0xff] %v9047_v8  ;;  %12018 = vst [vmem:[#allocation329_spill] sm:$0xff] %v9052_v40  ;;  %v9057_v41 = vld [vmem:[%s11210_s3 + $0xa90] sm:$0xff]  ;;  %v9062_v56 = vld [vmem:[%s11210_s3 + $0xa98] sm:$0xff] }
  0xa9   :  { %12019 = vst [vmem:[#allocation330_spill] sm:$0xff] %v9057_v41  ;;  %12020 = vst [vmem:[#allocation331_spill] sm:$0xff] %v9062_v56  ;;  %v9067_v57 = vld [vmem:[%s11210_s3 + $0xaa0] sm:$0xff]  ;;  %v9072_v8 = vld [vmem:[%s11210_s3 + $0xaa8] sm:$0xff] }
  0xaa   :  { %12021 = vst [vmem:[#allocation332_spill] sm:$0xff] %v9067_v57  ;;  %12022 = vst [vmem:[#allocation333_spill] sm:$0xff] %v9072_v8  ;;  %v9077_v40 = vld [vmem:[%s11210_s3 + $0xab0] sm:$0xff]  ;;  %v9082_v41 = vld [vmem:[%s11210_s3 + $0xab8] sm:$0xff] }
  0xab   :  { %12023 = vst [vmem:[#allocation334_spill] sm:$0xff] %v9077_v40  ;;  %12024 = vst [vmem:[#allocation335_spill] sm:$0xff] %v9082_v41  ;;  %v9087_v56 = vld [vmem:[%s11210_s3 + $0xac0] sm:$0xff]  ;;  %v9092_v57 = vld [vmem:[%s11210_s3 + $0xac8] sm:$0xff] }
  0xac   :  { %12025 = vst [vmem:[#allocation336_spill] sm:$0xff] %v9087_v56  ;;  %12026 = vst [vmem:[#allocation337_spill] sm:$0xff] %v9092_v57  ;;  %v9097_v8 = vld [vmem:[%s11210_s3 + $0xad0] sm:$0xff]  ;;  %v9102_v40 = vld [vmem:[%s11210_s3 + $0xad8] sm:$0xff] }
  0xad   :  { %12027 = vst [vmem:[#allocation338_spill] sm:$0xff] %v9097_v8  ;;  %12028 = vst [vmem:[#allocation339_spill] sm:$0xff] %v9102_v40  ;;  %v9107_v41 = vld [vmem:[%s11210_s3 + $0xae0] sm:$0xff]  ;;  %v9112_v56 = vld [vmem:[%s11210_s3 + $0xae8] sm:$0xff] }
  0xae   :  { %12029 = vst [vmem:[#allocation340_spill] sm:$0xff] %v9107_v41  ;;  %12030 = vst [vmem:[#allocation341_spill] sm:$0xff] %v9112_v56  ;;  %v9117_v57 = vld [vmem:[%s11210_s3 + $0xaf0] sm:$0xff]  ;;  %v9122_v8 = vld [vmem:[%s11210_s3 + $0xaf8] sm:$0xff] }
  0xaf   :  { %12031 = vst [vmem:[#allocation342_spill] sm:$0xff] %v9117_v57  ;;  %12032 = vst [vmem:[#allocation343_spill] sm:$0xff] %v9122_v8  ;;  %v9127_v40 = vld [vmem:[%s11210_s3 + $0xb00] sm:$0xff]  ;;  %v9132_v41 = vld [vmem:[%s11210_s3 + $0xb08] sm:$0xff] }
  0xb0   :  { %12033 = vst [vmem:[#allocation344_spill] sm:$0xff] %v9127_v40  ;;  %12034 = vst [vmem:[#allocation345_spill] sm:$0xff] %v9132_v41  ;;  %v9137_v56 = vld [vmem:[%s11210_s3 + $0xb10] sm:$0xff]  ;;  %v9142_v57 = vld [vmem:[%s11210_s3 + $0xb18] sm:$0xff] }
  0xb1   :  { %12035 = vst [vmem:[#allocation346_spill] sm:$0xff] %v9137_v56  ;;  %12036 = vst [vmem:[#allocation347_spill] sm:$0xff] %v9142_v57  ;;  %v9147_v8 = vld [vmem:[%s11210_s3 + $0xb20] sm:$0xff]  ;;  %v9152_v40 = vld [vmem:[%s11210_s3 + $0xb28] sm:$0xff] }
  0xb2   :  { %12037 = vst [vmem:[#allocation348_spill] sm:$0xff] %v9147_v8  ;;  %12038 = vst [vmem:[#allocation349_spill] sm:$0xff] %v9152_v40  ;;  %v9157_v41 = vld [vmem:[%s11210_s3 + $0xb30] sm:$0xff]  ;;  %v9162_v56 = vld [vmem:[%s11210_s3 + $0xb38] sm:$0xff] }
  0xb3   :  { %12039 = vst [vmem:[#allocation350_spill] sm:$0xff] %v9157_v41  ;;  %12040 = vst [vmem:[#allocation351_spill] sm:$0xff] %v9162_v56  ;;  %v9167_v57 = vld [vmem:[%s11210_s3 + $0xb40] sm:$0xff]  ;;  %v9172_v8 = vld [vmem:[%s11210_s3 + $0xb48] sm:$0xff] }
  0xb4   :  { %12041 = vst [vmem:[#allocation352_spill] sm:$0xff] %v9167_v57  ;;  %12042 = vst [vmem:[#allocation353_spill] sm:$0xff] %v9172_v8  ;;  %v9177_v40 = vld [vmem:[%s11210_s3 + $0xb50] sm:$0xff]  ;;  %v9182_v41 = vld [vmem:[%s11210_s3 + $0xb58] sm:$0xff] }
  0xb5   :  { %12043 = vst [vmem:[#allocation354_spill] sm:$0xff] %v9177_v40  ;;  %12044 = vst [vmem:[#allocation355_spill] sm:$0xff] %v9182_v41  ;;  %v9187_v56 = vld [vmem:[%s11210_s3 + $0xb60] sm:$0xff]  ;;  %v9192_v57 = vld [vmem:[%s11210_s3 + $0xb68] sm:$0xff] }
  0xb6   :  { %12045 = vst [vmem:[#allocation356_spill] sm:$0xff] %v9187_v56  ;;  %12046 = vst [vmem:[#allocation357_spill] sm:$0xff] %v9192_v57  ;;  %v9197_v8 = vld [vmem:[%s11210_s3 + $0xb70] sm:$0xff]  ;;  %v9202_v40 = vld [vmem:[%s11210_s3 + $0xb78] sm:$0xff] }
  0xb7   :  { %12047 = vst [vmem:[#allocation358_spill] sm:$0xff] %v9197_v8  ;;  %12048 = vst [vmem:[#allocation359_spill] sm:$0xff] %v9202_v40  ;;  %v9207_v41 = vld [vmem:[%s11210_s3 + $0xb80] sm:$0xff]  ;;  %v9212_v56 = vld [vmem:[%s11210_s3 + $0xb88] sm:$0xff] }
  0xb8   :  { %12049 = vst [vmem:[#allocation360_spill] sm:$0xff] %v9207_v41  ;;  %12050 = vst [vmem:[#allocation361_spill] sm:$0xff] %v9212_v56  ;;  %v9217_v57 = vld [vmem:[%s11210_s3 + $0xb90] sm:$0xff]  ;;  %v9222_v8 = vld [vmem:[%s11210_s3 + $0xb98] sm:$0xff] }
  0xb9   :  { %12051 = vst [vmem:[#allocation362_spill] sm:$0xff] %v9217_v57  ;;  %12052 = vst [vmem:[#allocation363_spill] sm:$0xff] %v9222_v8  ;;  %v9227_v40 = vld [vmem:[%s11210_s3 + $0xba0] sm:$0xff]  ;;  %v9232_v41 = vld [vmem:[%s11210_s3 + $0xba8] sm:$0xff] }
  0xba   :  { %12053 = vst [vmem:[#allocation364_spill] sm:$0xff] %v9227_v40  ;;  %12054 = vst [vmem:[#allocation365_spill] sm:$0xff] %v9232_v41  ;;  %v9237_v56 = vld [vmem:[%s11210_s3 + $0xbb0] sm:$0xff]  ;;  %v9242_v57 = vld [vmem:[%s11210_s3 + $0xbb8] sm:$0xff] }
  0xbb   :  { %12055 = vst [vmem:[#allocation366_spill] sm:$0xff] %v9237_v56  ;;  %12056 = vst [vmem:[#allocation367_spill] sm:$0xff] %v9242_v57  ;;  %v9247_v8 = vld [vmem:[%s11210_s3 + $0xbc0] sm:$0xff]  ;;  %v9252_v40 = vld [vmem:[%s11210_s3 + $0xbc8] sm:$0xff] }
  0xbc   :  { %12057 = vst [vmem:[#allocation368_spill] sm:$0xff] %v9247_v8  ;;  %12058 = vst [vmem:[#allocation369_spill] sm:$0xff] %v9252_v40  ;;  %v9257_v41 = vld [vmem:[%s11210_s3 + $0xbd0] sm:$0xff]  ;;  %v9262_v56 = vld [vmem:[%s11210_s3 + $0xbd8] sm:$0xff] }
  0xbd   :  { %12059 = vst [vmem:[#allocation370_spill] sm:$0xff] %v9257_v41  ;;  %12060 = vst [vmem:[#allocation371_spill] sm:$0xff] %v9262_v56  ;;  %v9267_v57 = vld [vmem:[%s11210_s3 + $0xbe0] sm:$0xff]  ;;  %v9272_v8 = vld [vmem:[%s11210_s3 + $0xbe8] sm:$0xff] }
  0xbe   :  { %12061 = vst [vmem:[#allocation372_spill] sm:$0xff] %v9267_v57  ;;  %12062 = vst [vmem:[#allocation373_spill] sm:$0xff] %v9272_v8  ;;  %v9277_v40 = vld [vmem:[%s11210_s3 + $0xbf0] sm:$0xff]  ;;  %v9282_v41 = vld [vmem:[%s11210_s3 + $0xbf8] sm:$0xff] }
  0xbf   :  { %12063 = vst [vmem:[#allocation374_spill] sm:$0xff] %v9277_v40  ;;  %12064 = vst [vmem:[#allocation375_spill] sm:$0xff] %v9282_v41 }
  0xc0   :  { %922 = vsyncadd [#allocation5 + $0x2], 16384  ;;  %v9287_v56 = vld [vmem:[%s11210_s3 + $0xc00] sm:$0xff]  ;;  %v9292_v57 = vld [vmem:[%s11210_s3 + $0xc08] sm:$0xff] }
  0xc1   :  { %12065 = vst [vmem:[#allocation376_spill] sm:$0xff] %v9287_v56  ;;  %12066 = vst [vmem:[#allocation377_spill] sm:$0xff] %v9292_v57  ;;  %v9297_v8 = vld [vmem:[%s11210_s3 + $0xc10] sm:$0xff]  ;;  %v9302_v40 = vld [vmem:[%s11210_s3 + $0xc18] sm:$0xff] }
  0xc2   :  { %12067 = vst [vmem:[#allocation378_spill] sm:$0xff] %v9297_v8  ;;  %12068 = vst [vmem:[#allocation379_spill] sm:$0xff] %v9302_v40  ;;  %v9307_v41 = vld [vmem:[%s11210_s3 + $0xc20] sm:$0xff]  ;;  %v9312_v56 = vld [vmem:[%s11210_s3 + $0xc28] sm:$0xff] }
  0xc3   :  { %12069 = vst [vmem:[#allocation380_spill] sm:$0xff] %v9307_v41  ;;  %12070 = vst [vmem:[#allocation381_spill] sm:$0xff] %v9312_v56  ;;  %v9317_v57 = vld [vmem:[%s11210_s3 + $0xc30] sm:$0xff]  ;;  %v9322_v8 = vld [vmem:[%s11210_s3 + $0xc38] sm:$0xff] }
  0xc4   :  { %12071 = vst [vmem:[#allocation382_spill] sm:$0xff] %v9317_v57  ;;  %12072 = vst [vmem:[#allocation383_spill] sm:$0xff] %v9322_v8  ;;  %v9327_v40 = vld [vmem:[%s11210_s3 + $0xc40] sm:$0xff]  ;;  %v9332_v41 = vld [vmem:[%s11210_s3 + $0xc48] sm:$0xff] }
  0xc5   :  { %12073 = vst [vmem:[#allocation384_spill] sm:$0xff] %v9327_v40  ;;  %12074 = vst [vmem:[#allocation385_spill] sm:$0xff] %v9332_v41  ;;  %v9337_v56 = vld [vmem:[%s11210_s3 + $0xc50] sm:$0xff]  ;;  %v9342_v57 = vld [vmem:[%s11210_s3 + $0xc58] sm:$0xff] }
  0xc6   :  { %12075 = vst [vmem:[#allocation386_spill] sm:$0xff] %v9337_v56  ;;  %12076 = vst [vmem:[#allocation387_spill] sm:$0xff] %v9342_v57  ;;  %v9347_v8 = vld [vmem:[%s11210_s3 + $0xc60] sm:$0xff]  ;;  %v9352_v40 = vld [vmem:[%s11210_s3 + $0xc68] sm:$0xff] }
  0xc7   :  { %12077 = vst [vmem:[#allocation388_spill] sm:$0xff] %v9347_v8  ;;  %12078 = vst [vmem:[#allocation389_spill] sm:$0xff] %v9352_v40  ;;  %v9357_v41 = vld [vmem:[%s11210_s3 + $0xc70] sm:$0xff]  ;;  %v9362_v56 = vld [vmem:[%s11210_s3 + $0xc78] sm:$0xff] }
  0xc8   :  { %12079 = vst [vmem:[#allocation390_spill] sm:$0xff] %v9357_v41  ;;  %12080 = vst [vmem:[#allocation391_spill] sm:$0xff] %v9362_v56  ;;  %v9367_v57 = vld [vmem:[%s11210_s3 + $0xc80] sm:$0xff]  ;;  %v9372_v8 = vld [vmem:[%s11210_s3 + $0xc88] sm:$0xff] }
  0xc9   :  { %12081 = vst [vmem:[#allocation392_spill] sm:$0xff] %v9367_v57  ;;  %12082 = vst [vmem:[#allocation393_spill] sm:$0xff] %v9372_v8  ;;  %v9377_v40 = vld [vmem:[%s11210_s3 + $0xc90] sm:$0xff]  ;;  %v9382_v41 = vld [vmem:[%s11210_s3 + $0xc98] sm:$0xff] }
  0xca   :  { %12083 = vst [vmem:[#allocation394_spill] sm:$0xff] %v9377_v40  ;;  %12084 = vst [vmem:[#allocation395_spill] sm:$0xff] %v9382_v41  ;;  %v9387_v56 = vld [vmem:[%s11210_s3 + $0xca0] sm:$0xff]  ;;  %v9392_v57 = vld [vmem:[%s11210_s3 + $0xca8] sm:$0xff] }
  0xcb   :  { %12085 = vst [vmem:[#allocation396_spill] sm:$0xff] %v9387_v56  ;;  %12086 = vst [vmem:[#allocation397_spill] sm:$0xff] %v9392_v57  ;;  %v9397_v8 = vld [vmem:[%s11210_s3 + $0xcb0] sm:$0xff]  ;;  %v9402_v40 = vld [vmem:[%s11210_s3 + $0xcb8] sm:$0xff] }
  0xcc   :  { %12087 = vst [vmem:[#allocation398_spill] sm:$0xff] %v9397_v8  ;;  %12088 = vst [vmem:[#allocation399_spill] sm:$0xff] %v9402_v40  ;;  %v9407_v41 = vld [vmem:[%s11210_s3 + $0xcc0] sm:$0xff]  ;;  %v9412_v56 = vld [vmem:[%s11210_s3 + $0xcc8] sm:$0xff] }
  0xcd   :  { %12089 = vst [vmem:[#allocation400_spill] sm:$0xff] %v9407_v41  ;;  %12090 = vst [vmem:[#allocation401_spill] sm:$0xff] %v9412_v56  ;;  %v9417_v57 = vld [vmem:[%s11210_s3 + $0xcd0] sm:$0xff]  ;;  %v9422_v8 = vld [vmem:[%s11210_s3 + $0xcd8] sm:$0xff] }
  0xce   :  { %12091 = vst [vmem:[#allocation402_spill] sm:$0xff] %v9417_v57  ;;  %12092 = vst [vmem:[#allocation403_spill] sm:$0xff] %v9422_v8  ;;  %v9427_v40 = vld [vmem:[%s11210_s3 + $0xce0] sm:$0xff]  ;;  %v9432_v41 = vld [vmem:[%s11210_s3 + $0xce8] sm:$0xff] }
  0xcf   :  { %12093 = vst [vmem:[#allocation404_spill] sm:$0xff] %v9427_v40  ;;  %12094 = vst [vmem:[#allocation405_spill] sm:$0xff] %v9432_v41  ;;  %v9437_v56 = vld [vmem:[%s11210_s3 + $0xcf0] sm:$0xff]  ;;  %v9442_v57 = vld [vmem:[%s11210_s3 + $0xcf8] sm:$0xff] }
  0xd0   :  { %12095 = vst [vmem:[#allocation406_spill] sm:$0xff] %v9437_v56  ;;  %12096 = vst [vmem:[#allocation407_spill] sm:$0xff] %v9442_v57  ;;  %v9447_v8 = vld [vmem:[%s11210_s3 + $0xd00] sm:$0xff]  ;;  %v9452_v40 = vld [vmem:[%s11210_s3 + $0xd08] sm:$0xff] }
  0xd1   :  { %12097 = vst [vmem:[#allocation408_spill] sm:$0xff] %v9447_v8  ;;  %12098 = vst [vmem:[#allocation409_spill] sm:$0xff] %v9452_v40  ;;  %v9457_v41 = vld [vmem:[%s11210_s3 + $0xd10] sm:$0xff]  ;;  %v9462_v56 = vld [vmem:[%s11210_s3 + $0xd18] sm:$0xff] }
  0xd2   :  { %12099 = vst [vmem:[#allocation410_spill] sm:$0xff] %v9457_v41  ;;  %12100 = vst [vmem:[#allocation411_spill] sm:$0xff] %v9462_v56  ;;  %v9467_v57 = vld [vmem:[%s11210_s3 + $0xd20] sm:$0xff]  ;;  %v9472_v8 = vld [vmem:[%s11210_s3 + $0xd28] sm:$0xff] }
  0xd3   :  { %12101 = vst [vmem:[#allocation412_spill] sm:$0xff] %v9467_v57  ;;  %12102 = vst [vmem:[#allocation413_spill] sm:$0xff] %v9472_v8  ;;  %v9477_v40 = vld [vmem:[%s11210_s3 + $0xd30] sm:$0xff]  ;;  %v9482_v41 = vld [vmem:[%s11210_s3 + $0xd38] sm:$0xff] }
  0xd4   :  { %12103 = vst [vmem:[#allocation414_spill] sm:$0xff] %v9477_v40  ;;  %12104 = vst [vmem:[#allocation415_spill] sm:$0xff] %v9482_v41  ;;  %v9487_v56 = vld [vmem:[%s11210_s3 + $0xd40] sm:$0xff]  ;;  %v9492_v57 = vld [vmem:[%s11210_s3 + $0xd48] sm:$0xff] }
  0xd5   :  { %12105 = vst [vmem:[#allocation416_spill] sm:$0xff] %v9487_v56  ;;  %12106 = vst [vmem:[#allocation417_spill] sm:$0xff] %v9492_v57  ;;  %v9497_v8 = vld [vmem:[%s11210_s3 + $0xd50] sm:$0xff]  ;;  %v9502_v40 = vld [vmem:[%s11210_s3 + $0xd58] sm:$0xff] }
  0xd6   :  { %12107 = vst [vmem:[#allocation418_spill] sm:$0xff] %v9497_v8  ;;  %12108 = vst [vmem:[#allocation419_spill] sm:$0xff] %v9502_v40  ;;  %v9507_v41 = vld [vmem:[%s11210_s3 + $0xd60] sm:$0xff]  ;;  %v9512_v56 = vld [vmem:[%s11210_s3 + $0xd68] sm:$0xff] }
  0xd7   :  { %12109 = vst [vmem:[#allocation420_spill] sm:$0xff] %v9507_v41  ;;  %12110 = vst [vmem:[#allocation421_spill] sm:$0xff] %v9512_v56  ;;  %v9517_v57 = vld [vmem:[%s11210_s3 + $0xd70] sm:$0xff]  ;;  %v9522_v8 = vld [vmem:[%s11210_s3 + $0xd78] sm:$0xff] }
  0xd8   :  { %12111 = vst [vmem:[#allocation422_spill] sm:$0xff] %v9517_v57  ;;  %12112 = vst [vmem:[#allocation423_spill] sm:$0xff] %v9522_v8  ;;  %v9527_v40 = vld [vmem:[%s11210_s3 + $0xd80] sm:$0xff]  ;;  %v9532_v41 = vld [vmem:[%s11210_s3 + $0xd88] sm:$0xff] }
  0xd9   :  { %12113 = vst [vmem:[#allocation424_spill] sm:$0xff] %v9527_v40  ;;  %12114 = vst [vmem:[#allocation425_spill] sm:$0xff] %v9532_v41  ;;  %v9537_v56 = vld [vmem:[%s11210_s3 + $0xd90] sm:$0xff]  ;;  %v9542_v57 = vld [vmem:[%s11210_s3 + $0xd98] sm:$0xff] }
  0xda   :  { %12115 = vst [vmem:[#allocation426_spill] sm:$0xff] %v9537_v56  ;;  %12116 = vst [vmem:[#allocation427_spill] sm:$0xff] %v9542_v57  ;;  %v9547_v8 = vld [vmem:[%s11210_s3 + $0xda0] sm:$0xff]  ;;  %v9552_v40 = vld [vmem:[%s11210_s3 + $0xda8] sm:$0xff] }
  0xdb   :  { %12117 = vst [vmem:[#allocation428_spill] sm:$0xff] %v9547_v8  ;;  %12118 = vst [vmem:[#allocation429_spill] sm:$0xff] %v9552_v40  ;;  %v9557_v41 = vld [vmem:[%s11210_s3 + $0xdb0] sm:$0xff]  ;;  %v9562_v56 = vld [vmem:[%s11210_s3 + $0xdb8] sm:$0xff] }
  0xdc   :  { %12119 = vst [vmem:[#allocation430_spill] sm:$0xff] %v9557_v41  ;;  %12120 = vst [vmem:[#allocation431_spill] sm:$0xff] %v9562_v56  ;;  %v9567_v57 = vld [vmem:[%s11210_s3 + $0xdc0] sm:$0xff]  ;;  %v9572_v8 = vld [vmem:[%s11210_s3 + $0xdc8] sm:$0xff] }
  0xdd   :  { %12121 = vst [vmem:[#allocation432_spill] sm:$0xff] %v9567_v57  ;;  %12122 = vst [vmem:[#allocation433_spill] sm:$0xff] %v9572_v8  ;;  %v9577_v40 = vld [vmem:[%s11210_s3 + $0xdd0] sm:$0xff]  ;;  %v9582_v41 = vld [vmem:[%s11210_s3 + $0xdd8] sm:$0xff] }
  0xde   :  { %12123 = vst [vmem:[#allocation434_spill] sm:$0xff] %v9577_v40  ;;  %12124 = vst [vmem:[#allocation435_spill] sm:$0xff] %v9582_v41  ;;  %v9587_v56 = vld [vmem:[%s11210_s3 + $0xde0] sm:$0xff]  ;;  %v9592_v57 = vld [vmem:[%s11210_s3 + $0xde8] sm:$0xff] }
  0xdf   :  { %12125 = vst [vmem:[#allocation436_spill] sm:$0xff] %v9587_v56  ;;  %12126 = vst [vmem:[#allocation437_spill] sm:$0xff] %v9592_v57  ;;  %v9597_v8 = vld [vmem:[%s11210_s3 + $0xdf0] sm:$0xff]  ;;  %v9602_v40 = vld [vmem:[%s11210_s3 + $0xdf8] sm:$0xff] }
  0xe0   :  { %12127 = vst [vmem:[#allocation438_spill] sm:$0xff] %v9597_v8  ;;  %12128 = vst [vmem:[#allocation439_spill] sm:$0xff] %v9602_v40  ;;  %v9607_v41 = vld [vmem:[%s11210_s3 + $0xe00] sm:$0xff]  ;;  %v9612_v56 = vld [vmem:[%s11210_s3 + $0xe08] sm:$0xff] }
  0xe1   :  { %12129 = vst [vmem:[#allocation440_spill] sm:$0xff] %v9607_v41  ;;  %12130 = vst [vmem:[#allocation441_spill] sm:$0xff] %v9612_v56  ;;  %v9617_v57 = vld [vmem:[%s11210_s3 + $0xe10] sm:$0xff]  ;;  %v9622_v8 = vld [vmem:[%s11210_s3 + $0xe18] sm:$0xff] }
  0xe2   :  { %12131 = vst [vmem:[#allocation442_spill] sm:$0xff] %v9617_v57  ;;  %12132 = vst [vmem:[#allocation443_spill] sm:$0xff] %v9622_v8  ;;  %v9627_v40 = vld [vmem:[%s11210_s3 + $0xe20] sm:$0xff]  ;;  %v9632_v41 = vld [vmem:[%s11210_s3 + $0xe28] sm:$0xff] }
  0xe3   :  { %12133 = vst [vmem:[#allocation444_spill] sm:$0xff] %v9627_v40  ;;  %12134 = vst [vmem:[#allocation445_spill] sm:$0xff] %v9632_v41  ;;  %v9637_v56 = vld [vmem:[%s11210_s3 + $0xe30] sm:$0xff]  ;;  %v9642_v57 = vld [vmem:[%s11210_s3 + $0xe38] sm:$0xff] }
  0xe4   :  { %12135 = vst [vmem:[#allocation446_spill] sm:$0xff] %v9637_v56  ;;  %12136 = vst [vmem:[#allocation447_spill] sm:$0xff] %v9642_v57  ;;  %v9647_v8 = vld [vmem:[%s11210_s3 + $0xe40] sm:$0xff]  ;;  %v9652_v40 = vld [vmem:[%s11210_s3 + $0xe48] sm:$0xff] }
  0xe5   :  { %12137 = vst [vmem:[#allocation448_spill] sm:$0xff] %v9647_v8  ;;  %12138 = vst [vmem:[#allocation449_spill] sm:$0xff] %v9652_v40  ;;  %v9657_v41 = vld [vmem:[%s11210_s3 + $0xe50] sm:$0xff]  ;;  %v9662_v56 = vld [vmem:[%s11210_s3 + $0xe58] sm:$0xff] }
  0xe6   :  { %12139 = vst [vmem:[#allocation450_spill] sm:$0xff] %v9657_v41  ;;  %12140 = vst [vmem:[#allocation451_spill] sm:$0xff] %v9662_v56  ;;  %v9667_v57 = vld [vmem:[%s11210_s3 + $0xe60] sm:$0xff]  ;;  %v9672_v8 = vld [vmem:[%s11210_s3 + $0xe68] sm:$0xff] }
  0xe7   :  { %12141 = vst [vmem:[#allocation452_spill] sm:$0xff] %v9667_v57  ;;  %12142 = vst [vmem:[#allocation453_spill] sm:$0xff] %v9672_v8  ;;  %v9677_v40 = vld [vmem:[%s11210_s3 + $0xe70] sm:$0xff]  ;;  %v9682_v41 = vld [vmem:[%s11210_s3 + $0xe78] sm:$0xff] }
  0xe8   :  { %12143 = vst [vmem:[#allocation454_spill] sm:$0xff] %v9677_v40  ;;  %12144 = vst [vmem:[#allocation455_spill] sm:$0xff] %v9682_v41  ;;  %v9687_v56 = vld [vmem:[%s11210_s3 + $0xe80] sm:$0xff]  ;;  %v9692_v57 = vld [vmem:[%s11210_s3 + $0xe88] sm:$0xff] }
  0xe9   :  { %12145 = vst [vmem:[#allocation456_spill] sm:$0xff] %v9687_v56  ;;  %12146 = vst [vmem:[#allocation457_spill] sm:$0xff] %v9692_v57  ;;  %v9697_v8 = vld [vmem:[%s11210_s3 + $0xe90] sm:$0xff]  ;;  %v9702_v40 = vld [vmem:[%s11210_s3 + $0xe98] sm:$0xff] }
  0xea   :  { %12147 = vst [vmem:[#allocation458_spill] sm:$0xff] %v9697_v8  ;;  %12148 = vst [vmem:[#allocation459_spill] sm:$0xff] %v9702_v40  ;;  %v9707_v41 = vld [vmem:[%s11210_s3 + $0xea0] sm:$0xff]  ;;  %v9712_v56 = vld [vmem:[%s11210_s3 + $0xea8] sm:$0xff] }
  0xeb   :  { %12149 = vst [vmem:[#allocation460_spill] sm:$0xff] %v9707_v41  ;;  %12150 = vst [vmem:[#allocation461_spill] sm:$0xff] %v9712_v56  ;;  %v9717_v57 = vld [vmem:[%s11210_s3 + $0xeb0] sm:$0xff]  ;;  %v9722_v8 = vld [vmem:[%s11210_s3 + $0xeb8] sm:$0xff] }
  0xec   :  { %12151 = vst [vmem:[#allocation462_spill] sm:$0xff] %v9717_v57  ;;  %12152 = vst [vmem:[#allocation463_spill] sm:$0xff] %v9722_v8  ;;  %v9727_v40 = vld [vmem:[%s11210_s3 + $0xec0] sm:$0xff]  ;;  %v9732_v41 = vld [vmem:[%s11210_s3 + $0xec8] sm:$0xff] }
  0xed   :  { %12153 = vst [vmem:[#allocation464_spill] sm:$0xff] %v9727_v40  ;;  %12154 = vst [vmem:[#allocation465_spill] sm:$0xff] %v9732_v41  ;;  %v9737_v56 = vld [vmem:[%s11210_s3 + $0xed0] sm:$0xff]  ;;  %v9742_v57 = vld [vmem:[%s11210_s3 + $0xed8] sm:$0xff] }
  0xee   :  { %12155 = vst [vmem:[#allocation466_spill] sm:$0xff] %v9737_v56  ;;  %12156 = vst [vmem:[#allocation467_spill] sm:$0xff] %v9742_v57  ;;  %v9747_v8 = vld [vmem:[%s11210_s3 + $0xee0] sm:$0xff]  ;;  %v9752_v40 = vld [vmem:[%s11210_s3 + $0xee8] sm:$0xff] }
  0xef   :  { %12157 = vst [vmem:[#allocation468_spill] sm:$0xff] %v9747_v8  ;;  %12158 = vst [vmem:[#allocation469_spill] sm:$0xff] %v9752_v40  ;;  %v9757_v41 = vld [vmem:[%s11210_s3 + $0xef0] sm:$0xff]  ;;  %v9762_v56 = vld [vmem:[%s11210_s3 + $0xef8] sm:$0xff] }
  0xf0   :  { %12159 = vst [vmem:[#allocation470_spill] sm:$0xff] %v9757_v41  ;;  %12160 = vst [vmem:[#allocation471_spill] sm:$0xff] %v9762_v56  ;;  %v9767_v57 = vld [vmem:[%s11210_s3 + $0xf00] sm:$0xff]  ;;  %v9772_v8 = vld [vmem:[%s11210_s3 + $0xf08] sm:$0xff] }
  0xf1   :  { %12161 = vst [vmem:[#allocation472_spill] sm:$0xff] %v9767_v57  ;;  %12162 = vst [vmem:[#allocation473_spill] sm:$0xff] %v9772_v8  ;;  %v9777_v40 = vld [vmem:[%s11210_s3 + $0xf10] sm:$0xff]  ;;  %v9782_v41 = vld [vmem:[%s11210_s3 + $0xf18] sm:$0xff] }
  0xf2   :  { %12163 = vst [vmem:[#allocation474_spill] sm:$0xff] %v9777_v40  ;;  %12164 = vst [vmem:[#allocation475_spill] sm:$0xff] %v9782_v41  ;;  %v9787_v56 = vld [vmem:[%s11210_s3 + $0xf20] sm:$0xff]  ;;  %v9792_v57 = vld [vmem:[%s11210_s3 + $0xf28] sm:$0xff] }
  0xf3   :  { %12165 = vst [vmem:[#allocation476_spill] sm:$0xff] %v9787_v56  ;;  %12166 = vst [vmem:[#allocation477_spill] sm:$0xff] %v9792_v57  ;;  %v9797_v8 = vld [vmem:[%s11210_s3 + $0xf30] sm:$0xff]  ;;  %v9802_v40 = vld [vmem:[%s11210_s3 + $0xf38] sm:$0xff] }
  0xf4   :  { %12167 = vst [vmem:[#allocation478_spill] sm:$0xff] %v9797_v8  ;;  %12168 = vst [vmem:[#allocation479_spill] sm:$0xff] %v9802_v40  ;;  %v9807_v41 = vld [vmem:[%s11210_s3 + $0xf40] sm:$0xff]  ;;  %v9812_v56 = vld [vmem:[%s11210_s3 + $0xf48] sm:$0xff] }
  0xf5   :  { %12169 = vst [vmem:[#allocation480_spill] sm:$0xff] %v9807_v41  ;;  %12170 = vst [vmem:[#allocation481_spill] sm:$0xff] %v9812_v56  ;;  %v9817_v57 = vld [vmem:[%s11210_s3 + $0xf50] sm:$0xff]  ;;  %v9822_v8 = vld [vmem:[%s11210_s3 + $0xf58] sm:$0xff] }
  0xf6   :  { %12171 = vst [vmem:[#allocation482_spill] sm:$0xff] %v9817_v57  ;;  %12172 = vst [vmem:[#allocation483_spill] sm:$0xff] %v9822_v8  ;;  %v9827_v40 = vld [vmem:[%s11210_s3 + $0xf60] sm:$0xff]  ;;  %v9832_v41 = vld [vmem:[%s11210_s3 + $0xf68] sm:$0xff] }
  0xf7   :  { %12173 = vst [vmem:[#allocation484_spill] sm:$0xff] %v9827_v40  ;;  %12174 = vst [vmem:[#allocation485_spill] sm:$0xff] %v9832_v41  ;;  %v9837_v56 = vld [vmem:[%s11210_s3 + $0xf70] sm:$0xff]  ;;  %v9842_v57 = vld [vmem:[%s11210_s3 + $0xf78] sm:$0xff] }
  0xf8   :  { %12175 = vst [vmem:[#allocation486_spill] sm:$0xff] %v9837_v56  ;;  %12176 = vst [vmem:[#allocation487_spill] sm:$0xff] %v9842_v57  ;;  %v9847_v8 = vld [vmem:[%s11210_s3 + $0xf80] sm:$0xff]  ;;  %v9852_v40 = vld [vmem:[%s11210_s3 + $0xf88] sm:$0xff] }
  0xf9   :  { %12177 = vst [vmem:[#allocation488_spill] sm:$0xff] %v9847_v8  ;;  %12178 = vst [vmem:[#allocation489_spill] sm:$0xff] %v9852_v40  ;;  %v9857_v41 = vld [vmem:[%s11210_s3 + $0xf90] sm:$0xff]  ;;  %v9862_v56 = vld [vmem:[%s11210_s3 + $0xf98] sm:$0xff] }
  0xfa   :  { %12179 = vst [vmem:[#allocation490_spill] sm:$0xff] %v9857_v41  ;;  %12180 = vst [vmem:[#allocation491_spill] sm:$0xff] %v9862_v56  ;;  %v9867_v57 = vld [vmem:[%s11210_s3 + $0xfa0] sm:$0xff]  ;;  %v9872_v8 = vld [vmem:[%s11210_s3 + $0xfa8] sm:$0xff] }
  0xfb   :  { %12181 = vst [vmem:[#allocation492_spill] sm:$0xff] %v9867_v57  ;;  %12182 = vst [vmem:[#allocation493_spill] sm:$0xff] %v9872_v8  ;;  %v9877_v40 = vld [vmem:[%s11210_s3 + $0xfb0] sm:$0xff]  ;;  %v9882_v41 = vld [vmem:[%s11210_s3 + $0xfb8] sm:$0xff] }
  0xfc   :  { %12183 = vst [vmem:[#allocation494_spill] sm:$0xff] %v9877_v40  ;;  %12184 = vst [vmem:[#allocation495_spill] sm:$0xff] %v9882_v41  ;;  %v9887_v56 = vld [vmem:[%s11210_s3 + $0xfc0] sm:$0xff]  ;;  %v9892_v57 = vld [vmem:[%s11210_s3 + $0xfc8] sm:$0xff] }
  0xfd   :  { %12185 = vst [vmem:[#allocation496_spill] sm:$0xff] %v9887_v56  ;;  %12186 = vst [vmem:[#allocation497_spill] sm:$0xff] %v9892_v57  ;;  %v9897_v8 = vld [vmem:[%s11210_s3 + $0xfd0] sm:$0xff]  ;;  %v9902_v40 = vld [vmem:[%s11210_s3 + $0xfd8] sm:$0xff] }
  0xfe   :  { %12187 = vst [vmem:[#allocation498_spill] sm:$0xff] %v9897_v8  ;;  %12188 = vst [vmem:[#allocation499_spill] sm:$0xff] %v9902_v40  ;;  %v9907_v41 = vld [vmem:[%s11210_s3 + $0xfe0] sm:$0xff]  ;;  %v9912_v56 = vld [vmem:[%s11210_s3 + $0xfe8] sm:$0xff] }
  0xff   :  { %12189 = vst [vmem:[#allocation500_spill] sm:$0xff] %v9907_v41  ;;  %12190 = vst [vmem:[#allocation501_spill] sm:$0xff] %v9912_v56  ;;  %v9917_v57 = vld [vmem:[%s11210_s3 + $0xff0] sm:$0xff]  ;;  %v9922_v8 = vld [vmem:[%s11210_s3 + $0xff8] sm:$0xff] }
 0x100   :  { %12191 = vst [vmem:[#allocation502_spill] sm:$0xff] %v9917_v57  ;;  %12192 = vst [vmem:[#allocation503_spill] sm:$0xff] %v9922_v8 }
 0x101   :  { %1222 = vsyncadd [#allocation5 + $0x3], 16384  ;;  %v7240_v40 = vld [vmem:[%s11208_s1 + $0x74] ss:$8 sps:$4 sm:$0xff]   ;;  %v7242_v41 = vld [vmem:[%s11208_s1 + $0x70] ss:$8 sps:$4 sm:$0xff]  }
 0x102   :  { %v11669_v56 = vmov 0   ;;  %v7243_v57 = vld [vmem:[%s11208_s1 + $0x64] ss:$8 sps:$4 sm:$0xff]   ;;  %1335 = vmatprep.subr.bf16.mxu0 %v7240_v40  ;;  %1405 = vmatprep.subr.bf16.mxu1 %v7240_v40  ;;  %v7245_v8 = vld [vmem:[%s11208_s1 + $0x60] ss:$8 sps:$4 sm:$0xff]   ;;  %v7265_v45 = vld [vmem:[%s11207_s0 + $0x10] sm:$0xff]  }
 0x103   :  { %1367 = vmatprep.mubr.bf16.mxu0 %v11669_v56  ;;  %1437 = vmatprep.mubr.bf16.mxu1 %v11669_v56  ;;  %v7246_v9 = vld [vmem:[%s11208_s1 + $0x54] ss:$8 sps:$4 sm:$0xff]   ;;  %v7248_v56 = vld [vmem:[%s11208_s1 + $0x50] ss:$8 sps:$4 sm:$0xff]   ;;  %v7249_v24 = vld [vmem:[%s11208_s1 + $0x44] ss:$8 sps:$4 sm:$0xff]  }
 0x104   :  { %1336 = vmatpush1.bf16.msra.mxu0 %v7242_v41  ;;  %1406 = vmatpush1.bf16.msra.mxu1 %v7242_v41  ;;  %v7251_v25 = vld [vmem:[%s11208_s1 + $0x40] ss:$8 sps:$4 sm:$0xff]   ;;  %v7252_v42 = vld [vmem:[%s11208_s1 + $0x34] ss:$8 sps:$4 sm:$0xff]   ;;  %v7254_v43 = vld [vmem:[%s11208_s1 + $0x30] ss:$8 sps:$4 sm:$0xff]  }
 0x105   :  { %1337 = vmatprep.subr.bf16.mxu0 %v7243_v57  ;;  %1407 = vmatprep.subr.bf16.mxu1 %v7243_v57  ;;  %v7255_v58 = vld [vmem:[%s11208_s1 + $0x24] ss:$8 sps:$4 sm:$0xff]   ;;  %v7257_v59 = vld [vmem:[%s11208_s1 + $0x20] ss:$8 sps:$4 sm:$0xff]   ;;  %v7258_v10 = vld [vmem:[%s11208_s1 + $0x14] ss:$8 sps:$4 sm:$0xff]  }
 0x106   :  { %v7260_v11 = vld [vmem:[%s11208_s1 + $0x10] ss:$8 sps:$4 sm:$0xff]   ;;  %v7261_v26 = vld [vmem:[%s11208_s1 + $0x4] ss:$8 sps:$4 sm:$0xff]   ;;  %v7263_v27 = vld [vmem:[%s11208_s1] ss:$8 sps:$4 sm:$0xff]  }
 0x107   :  { %v7264_v44 = vld [vmem:[%s11207_s0] sm:$0xff]   ;;  %v12193_v60 = vmov 0   ;;  %v7266_v61 = vld [vmem:[%s11207_s0 + $0x8] sm:$0xff]   ;;  %v7267_v12 = vld [vmem:[%s11207_s0 + $0x18] sm:$0xff]  }
 0x108   :  { %1338 = vmatpush1.bf16.msra.mxu0 %v7245_v8  ;;  %1408 = vmatpush1.bf16.msra.mxu1 %v7245_v8 }
 0x109   :  { %1339 = vmatprep.subr.bf16.mxu0 %v7246_v9  ;;  %1409 = vmatprep.subr.bf16.mxu1 %v7246_v9 }
 0x10c   :  { %1340 = vmatpush1.bf16.msra.mxu0 %v7248_v56  ;;  %1410 = vmatpush1.bf16.msra.mxu1 %v7248_v56 }
 0x10d   :  { %1341 = vmatprep.subr.bf16.mxu0 %v7249_v24  ;;  %1411 = vmatprep.subr.bf16.mxu1 %v7249_v24 }
 0x110   :  { %1342 = vmatpush1.bf16.msra.mxu0 %v7251_v25  ;;  %1412 = vmatpush1.bf16.msra.mxu1 %v7251_v25 }
 0x111   :  { %1343 = vmatprep.subr.bf16.mxu0 %v7252_v42  ;;  %1413 = vmatprep.subr.bf16.mxu1 %v7252_v42 }
 0x114   :  { %1344 = vmatpush1.bf16.msra.mxu0 %v7254_v43  ;;  %1414 = vmatpush1.bf16.msra.mxu1 %v7254_v43 }
 0x115   :  { %1345 = vmatprep.subr.bf16.mxu0 %v7255_v58  ;;  %1415 = vmatprep.subr.bf16.mxu1 %v7255_v58 }
 0x118   :  { %1346 = vmatpush1.bf16.msra.mxu0 %v7257_v59  ;;  %1416 = vmatpush1.bf16.msra.mxu1 %v7257_v59 }
 0x119   :  { %1347 = vmatprep.subr.bf16.mxu0 %v7258_v10  ;;  %1417 = vmatprep.subr.bf16.mxu1 %v7258_v10 }
 0x11c   :  { %1348 = vmatpush1.bf16.msra.mxu0 %v7260_v11  ;;  %1418 = vmatpush1.bf16.msra.mxu1 %v7260_v11 }
 0x11d   :  { %1349 = vmatprep.subr.bf16.mxu0 %v7261_v26  ;;  %1419 = vmatprep.subr.bf16.mxu1 %v7261_v26 }
 0x120   :  { %1350 = vmatpush1.bf16.msra.mxu0 %v7263_v27  ;;  %1420 = vmatpush1.bf16.msra.mxu1 %v7263_v27 }
 0x121   :  { %1483 = vmatprep.subr.bf16.mxu0 %v7240_v40  ;;  %1561 = vmatprep.subr.bf16.mxu1 %v7240_v40 }
 0x123   :  { %1368 = vmatmul.mubr.bf16.vlgmr.msra.gmra.mxu0 %v7264_v44  ;;  %1438 = vmatmul.mubr.bf16.vlgmr.msra.gmra.mxu1 %v7265_v45  ;;  %v1624_v45 = vlaneseq }
 0x124   :  { %1484 = vmatpush1.bf16.msra.mxu0 %v7242_v41  ;;  %1562 = vmatpush1.bf16.msra.mxu1 %v7242_v41 }
 0x125   :  { %1485 = vmatprep.subr.bf16.mxu0 %v7243_v57  ;;  %1563 = vmatprep.subr.bf16.mxu1 %v7243_v57 }
 0x126   :  { %1377 = vmatprep.mubr.bf16.mxu0 %v12193_v60  ;;  %1447 = vmatprep.mubr.bf16.mxu1 %v12193_v60 }
 0x128   :  { %1486 = vmatpush1.bf16.msra.mxu0 %v7245_v8  ;;  %1564 = vmatpush1.bf16.msra.mxu1 %v7245_v8  ;;  %v7268_v8 = vld [vmem:[%s11207_s0 + $0x20] sm:$0xff]  }
 0x129   :  { %1487 = vmatprep.subr.bf16.mxu0 %v7246_v9  ;;  %1565 = vmatprep.subr.bf16.mxu1 %v7246_v9  ;;  %v7269_v9 = vld [vmem:[%s11207_s0 + $0x30] sm:$0xff]  }
 0x12b   :  { %1378 = vmatmul.mubr.bf16.gmra.mxu0 %v7266_v61  ;;  %1448 = vmatmul.mubr.bf16.gmra.mxu1 %v7267_v12 }
 0x12c   :  { %1488 = vmatpush1.bf16.msra.mxu0 %v7248_v56  ;;  %1566 = vmatpush1.bf16.msra.mxu1 %v7248_v56 }
 0x12d   :  { %1489 = vmatprep.subr.bf16.mxu0 %v7249_v24  ;;  %1567 = vmatprep.subr.bf16.mxu1 %v7249_v24 }
 0x12e   :  { %1515 = vmatprep.mubr.bf16.mxu0 %v12193_v60  ;;  %1593 = vmatprep.mubr.bf16.mxu1 %v12193_v60 }
 0x130   :  { %1490 = vmatpush1.bf16.msra.mxu0 %v7251_v25  ;;  %1568 = vmatpush1.bf16.msra.mxu1 %v7251_v25 }
 0x131   :  { %1491 = vmatprep.subr.bf16.mxu0 %v7252_v42  ;;  %1569 = vmatprep.subr.bf16.mxu1 %v7252_v42 }
 0x134   :  { %1492 = vmatpush1.bf16.msra.mxu0 %v7254_v43  ;;  %1570 = vmatpush1.bf16.msra.mxu1 %v7254_v43 }
 0x135   :  { %1493 = vmatprep.subr.bf16.mxu0 %v7255_v58  ;;  %1571 = vmatprep.subr.bf16.mxu1 %v7255_v58  ;;  %v10004_v58 = vshrl.u32 %v1624_v45, 7 }
 0x137   :  { %v11702_v61 = vsub.s32 0, %v10004_v58  ;;  %v11705_v13 = vsub.s32 1, %v10004_v58 }
 0x138   :  { %1494 = vmatpush1.bf16.msra.mxu0 %v7257_v59  ;;  %1572 = vmatpush1.bf16.msra.mxu1 %v7257_v59 }
 0x139   :  { %1495 = vmatprep.subr.bf16.mxu0 %v7258_v10  ;;  %1573 = vmatprep.subr.bf16.mxu1 %v7258_v10  ;;  %v7270_v10 = vld [vmem:[%s11207_s0 + $0x28] sm:$0xff]  }
 0x13c   :  { %1496 = vmatpush1.bf16.msra.mxu0 %v7260_v11  ;;  %1574 = vmatpush1.bf16.msra.mxu1 %v7260_v11  ;;  %v7271_v11 = vld [vmem:[%s11207_s0 + $0x38] sm:$0xff]  }
 0x13d   :  { %1497 = vmatprep.subr.bf16.mxu0 %v7261_v26  ;;  %1575 = vmatprep.subr.bf16.mxu1 %v7261_v26 }
 0x140   :  { %1498 = vmatpush1.bf16.msra.mxu0 %v7263_v27  ;;  %1576 = vmatpush1.bf16.msra.mxu1 %v7263_v27 }
 0x143   :  { %1516 = vmatmul.mubr.bf16.vlgmr.msra.gmra.mxu0 %v7268_v8  ;;  %1594 = vmatmul.mubr.bf16.vlgmr.msra.gmra.mxu1 %v7269_v9 }
 0x144   :  { %1525 = vmatprep.mubr.bf16.mxu0 %v12193_v60  ;;  %1603 = vmatprep.mubr.bf16.mxu1 %v12193_v60 }
 0x14b   :  { %1526 = vmatmul.mubr.bf16.gmra.mxu0 %v7270_v10  ;;  %1604 = vmatmul.mubr.bf16.gmra.mxu1 %v7271_v11  ;;  %v1622_v10 = vld [vmem:[%s11209_s2] sm:$0x3] }
 0x14c   :  { %v1627_v45 = vrot.slane %v1622_v10, %v11702_v61  ;;  %v1631_v31 = vrot.slane %v1622_v10, %v11705_v13  ;;  %v7322_v10 = vmov 1966171168  }
 0x14d   :  { %v1725_v13 = vunpack.c.l.s4 %v7322_v10 }
 0x1e3   :  { %v1369_v12 = vpop.f32.mrf.mxu0  ;;  %v1439_v24 = vpop.f32.mrf.mxu1 }
 0x1e4   :  { %v1458_v11 = vmax.f32 %v1369_v12, %v1439_v24 }
 0x1e5   :  { %v1371_v25 = vpop.f32.mrf.mxu0  ;;  %v1441_v26 = vpop.f32.mrf.mxu1 }
 0x1e6   :  { %v1459_v46 = vmax.f32 %v1371_v25, %v1441_v26 }
 0x1e7   :  { %v1373_v27 = vpop.f32.mrf.mxu0  ;;  %v1443_v40 = vpop.f32.mrf.mxu1 }
 0x1e8   :  { %v1460_v14 = vmax.f32 %v1373_v27, %v1443_v40 }
 0x1e9   :  { %v1375_v41 = vpop.f32.mrf.mxu0  ;;  %v1445_v42 = vpop.f32.mrf.mxu1 }
 0x1ea   :  { %v1461_v12 = vmax.f32 %v1375_v41, %v1445_v42 }
 0x1eb   :  { %v1379_v43 = vpop.f32.mrf.mxu0  ;;  %v1449_v44 = vpop.f32.mrf.mxu1 }
 0x1ed   :  { %v1381_v56 = vpop.f32.mrf.mxu0  ;;  %v1451_v57 = vpop.f32.mrf.mxu1 }
 0x1ee   :  { %v1463_v40 = vmax.f32 %v1381_v56, %v1451_v57  ;;  %v1726_v56 = vunpack.c.0.s8 %v1725_v13 }
 0x1ef   :  { %v1383_v59 = vpop.f32.mrf.mxu0  ;;  %v1453_v60 = vpop.f32.mrf.mxu1 }
 0x1f1   :  { %v1385_v8 = vpop.f32.mrf.mxu0  ;;  %v1455_v9 = vpop.f32.mrf.mxu1 }
 0x203   :  { %v1517_v28 = vpop.f32.mrf.mxu0  ;;  %v1595_v29 = vpop.f32.mrf.mxu1 }
 0x204   :  { %v1536_v47 = vmax.f32 %v1458_v11, %v1517_v28  ;;  %v1462_v28 = vmax.f32 %v1379_v43, %v1449_v44 }
 0x205   :  { %v1519_v62 = vpop.f32.mrf.mxu0  ;;  %v1597_v63 = vpop.f32.mrf.mxu1 }
 0x206   :  { %v1614_v15 = vmax.f32 %v1536_v47, %v1595_v29  ;;  %v1537_v30 = vmax.f32 %v1459_v46, %v1519_v62 }
 0x207   :  { %v1521_v32 = vpop.f32.mrf.mxu0  ;;  %v1599_v33 = vpop.f32.mrf.mxu1 }
 0x208   :  { %v1634_v24 = vadd.f32 %v1627_v45, %v1614_v15  ;;  %v1615_v50 = vmax.f32 %v1537_v30, %v1597_v63  ;;  %v1538_v48 = vmax.f32 %v1460_v14, %v1521_v32  ;;  %v1464_v30 = vmax.f32 %v1383_v59, %v1453_v60 }
 0x209   :  { %v1523_v0 = vpop.f32.mrf.mxu0  ;;  %v1601_v25 = vpop.f32.mrf.mxu1 }
 0x20a   :  { %v1635_v26 = vadd.f32 %v1631_v31, %v1615_v50  ;;  %v1616_v11 = vmax.f32 %v1538_v48, %v1599_v33  ;;  %v1539_v61 = vmax.f32 %v1461_v12, %v1523_v0  ;;  %v1642_v1 = vmax.f32 %v1634_v24, 0.0 }
 0x20b   :  { %v1527_v49 = vpop.f32.mrf.mxu0  ;;  %v1605_v27 = vpop.f32.mrf.mxu1  ;;  %v1465_v0 = vmax.f32 %v1385_v8, %v1455_v9  ;;  %v10016_v8 = vsub.s32 %v1726_v56, %v10004_v58 }
 0x20c   :  { %v1643_v29 = vmax.f32 %v1635_v26, 0.0  ;;  %v1636_v46 = vadd.f32 %v1627_v45, %v1616_v11  ;;  %v1617_v47 = vmax.f32 %v1539_v61, %v1601_v25  ;;  %v1540_v62 = vmax.f32 %v1462_v28, %v1527_v49 }
 0x20d   :  { %v1529_v41 = vpop.f32.mrf.mxu0  ;;  %v1607_v15 = vpop.f32.mrf.mxu1 }
 0x20e   :  { %v7211_v14 = vpack.c.bf16 %v1643_v29, %v1642_v1  ;;  %v1637_v32 = vadd.f32 %v1631_v31, %v1617_v47  ;;  %v1618_v63 = vmax.f32 %v1540_v62, %v1605_v27  ;;  %v1541_v42 = vmax.f32 %v1463_v40, %v1529_v41 }
 0x20f   :  { %v1531_v50 = vpop.f32.mrf.mxu0  ;;  %v1609_v33 = vpop.f32.mrf.mxu1  ;;  %v1644_v48 = vmax.f32 %v1636_v46, 0.0 }
 0x210   :  { %1674 = vst [vmem:[#allocation4] sm:$0xff] %v7211_v14  ;;  %v1645_v43 = vmax.f32 %v1637_v32, 0.0  ;;  %v1542_v44 = vmax.f32 %v1464_v30, %v1531_v50  ;;  %v1638_v12 = vadd.f32 %v1627_v45, %v1618_v63  ;;  %v1619_v61 = vmax.f32 %v1541_v42, %v1607_v15 }
 0x211   :  { %v1533_v49 = vpop.f32.mrf.mxu0  ;;  %v1611_v59 = vpop.f32.mrf.mxu1 }
 0x212   :  { %v7212_v57 = vpack.c.bf16 %v1645_v43, %v1644_v48  ;;  %v1620_v24 = vmax.f32 %v1542_v44, %v1609_v33  ;;  %v1543_v25 = vmax.f32 %v1465_v0, %v1533_v49  ;;  %v1639_v28 = vadd.f32 %v1631_v31, %v1619_v61 }
 0x213   :  { %v1646_v26 = vmax.f32 %v1638_v12, 0.0 }
 0x214   :  { %1675 = vst [vmem:[#allocation4 + $0x8] sm:$0xff] %v7212_v57  ;;  %v1640_v1 = vadd.f32 %v1627_v45, %v1620_v24  ;;  %v1621_v60 = vmax.f32 %v1543_v25, %v1611_v59  ;;  %v1647_v11 = vmax.f32 %v1639_v28, 0.0 }
 0x216   :  { %v1641_v9 = vadd.f32 %v1631_v31, %v1621_v60  ;;  %v7213_v29 = vpack.c.bf16 %v1647_v11, %v1646_v26  ;;  %v1648_v47 = vmax.f32 %v1640_v1, 0.0 }
 0x217   :  { %v6654_v27 = vld.sshfl [vmem:[#allocation4] sm:$0x5 pattern:$0x75316420] }
 0x218   :  { %6655 = vst.sshfl [vmem:[#allocation3] sm:$0x5 pattern:$0x73625140] %v6654_v27  ;;  %v1649_v13 = vmax.f32 %v1641_v9, 0.0  ;;  %1676 = vst [vmem:[#allocation4 + $0x10] sm:$0xff] %v7213_v29 }
 0x219   :  { %v6656_v46 = vld.sshfl [vmem:[#allocation4] sm:$0x50 pattern:$0x75316420] }
 0x21a   :  { %v1705_v62 = vcombine.high %v6656_v46, %v6656_v46  ;;  %v6658_v40 = vld.sshfl [vmem:[#allocation4] sm:$0xa pattern:$0x75316420]  ;;  %v7214_v45 = vpack.c.bf16 %v1649_v13, %v1648_v47 }
 0x21b   :  { %v1730_v10 = vrot.slane %v6658_v40, %v10016_v8  ;;  %v6659_v41 = vld.sshfl [vmem:[#allocation4] sm:$0xa0 pattern:$0x75316420] }
 0x21c   :  { %6657 = vst.sshfl [vmem:[#allocation3 + $0x2] sm:$0x5 pattern:$0x73625140] %v1705_v62  ;;  %v1743_v15 = vcombine.high %v6659_v41, %v6659_v41  ;;  %1677 = vst [vmem:[#allocation4 + $0x18] sm:$0xff] %v7214_v45 }
 0x21d   :  { %v6660_v30 = vld.sshfl [vmem:[#allocation4 + $0x8] sm:$0x5 pattern:$0x75316420]  ;;  %v1731_v14 = vcombine.high %v1730_v10, %v1730_v10 }
 0x21e   :  { %6661 = vst.sshfl [vmem:[#allocation3 + $0x8] sm:$0x5 pattern:$0x73625140] %v6660_v30  ;;  %v1750_v31 = vrot.slane %v1743_v15, %v10016_v8 }
 0x21f   :  { %v6662_v32 = vld.sshfl [vmem:[#allocation4 + $0x8] sm:$0x50 pattern:$0x75316420]  ;;  %1733 = vst [vmem:[#allocation3 + $0x4] sm:$0x3] %v1731_v14 }
 0x220   :  { %v1781_v63 = vcombine.high %v6662_v32, %v6662_v32  ;;  %v6664_v42 = vld.sshfl [vmem:[#allocation4 + $0x8] sm:$0xa pattern:$0x75316420]  ;;  %v1751_v0 = vcombine.high %v1750_v31, %v1750_v31 }
 0x221   :  { %v1806_v50 = vrot.slane %v6664_v42, %v10016_v8  ;;  %v6665_v33 = vld.sshfl [vmem:[#allocation4 + $0x8] sm:$0xa0 pattern:$0x75316420] }
 0x222   :  { %6663 = vst.sshfl [vmem:[#allocation3 + $0xa] sm:$0x5 pattern:$0x73625140] %v1781_v63  ;;  %v1819_v48 = vcombine.high %v6665_v33, %v6665_v33  ;;  %1753 = vst [vmem:[#allocation3 + $0x6] sm:$0x3] %v1751_v0 }
 0x223   :  { %v1807_v43 = vcombine.high %v1806_v50, %v1806_v50  ;;  %v6666_v44 = vld.sshfl [vmem:[#allocation4 + $0x10] sm:$0x5 pattern:$0x75316420] }
 0x224   :  { %v1826_v12 = vrot.slane %v1819_v48, %v10016_v8  ;;  %6667 = vst.sshfl [vmem:[#allocation3 + $0x10] sm:$0x5 pattern:$0x73625140] %v6666_v44 }
 0x225   :  { %v6668_v61 = vld.sshfl [vmem:[#allocation4 + $0x10] sm:$0x50 pattern:$0x75316420]  ;;  %1809 = vst [vmem:[#allocation3 + $0xc] sm:$0x3] %v1807_v43 }
 0x226   :  { %v1857_v49 = vcombine.high %v6668_v61, %v6668_v61  ;;  %v6670_v56 = vld.sshfl [vmem:[#allocation4 + $0x10] sm:$0xa pattern:$0x75316420]  ;;  %v1827_v57 = vcombine.high %v1826_v12, %v1826_v12 }
 0x227   :  { %v1882_v24 = vrot.slane %v6670_v56, %v10016_v8  ;;  %v6671_v25 = vld.sshfl [vmem:[#allocation4 + $0x10] sm:$0xa0 pattern:$0x75316420] }
 0x228   :  { %6669 = vst.sshfl [vmem:[#allocation3 + $0x12] sm:$0x5 pattern:$0x73625140] %v1857_v49  ;;  %v1895_v28 = vcombine.high %v6671_v25, %v6671_v25  ;;  %1829 = vst [vmem:[#allocation3 + $0xe] sm:$0x3] %v1827_v57 }
 0x229   :  { %v6672_v59 = vld.sshfl [vmem:[#allocation4 + $0x18] sm:$0x5 pattern:$0x75316420]  ;;  %v1883_v1 = vcombine.high %v1882_v24, %v1882_v24 }
 0x22a   :  { %6673 = vst.sshfl [vmem:[#allocation3 + $0x18] sm:$0x5 pattern:$0x73625140] %v6672_v59  ;;  %v1902_v26 = vrot.slane %v1895_v28, %v10016_v8 }
 0x22b   :  { %v6674_v60 = vld.sshfl [vmem:[#allocation4 + $0x18] sm:$0x50 pattern:$0x75316420]  ;;  %1885 = vst [vmem:[#allocation3 + $0x14] sm:$0x3] %v1883_v1 }
 0x22c   :  { %v1933_v11 = vcombine.high %v6674_v60, %v6674_v60  ;;  %v6676_v9 = vld.sshfl [vmem:[#allocation4 + $0x18] sm:$0xa pattern:$0x75316420]  ;;  %v1903_v46 = vcombine.high %v1902_v26, %v1902_v26 }
 0x22d   :  { %v1958_v27 = vrot.slane %v6676_v9, %v10016_v8  ;;  %v6677_v29 = vld.sshfl [vmem:[#allocation4 + $0x18] sm:$0xa0 pattern:$0x75316420] }
 0x22e   :  { %6675 = vst.sshfl [vmem:[#allocation3 + $0x1a] sm:$0x5 pattern:$0x73625140] %v1933_v11  ;;  %v1971_v47 = vcombine.high %v6677_v29, %v6677_v29  ;;  %1905 = vst [vmem:[#allocation3 + $0x16] sm:$0x3] %v1903_v46 }
 0x22f   :  { %v1959_v13 = vcombine.high %v1958_v27, %v1958_v27 }
 0x230   :  { %v1978_v62 = vrot.slane %v1971_v47, %v10016_v8 }
 0x231   :  { %1961 = vst [vmem:[#allocation3 + $0x1c] sm:$0x3] %v1959_v13 }
 0x232   :  { %v1979_v40 = vcombine.high %v1978_v62, %v1978_v62 }
 0x234   :  { %1981 = vst [vmem:[#allocation3 + $0x1e] sm:$0x3] %v1979_v40 }
 0x235   :  { %7311 = dma.done.wait [#allocation5], 16384 }
 0x236   :  { %7312 = vsyncadd [#allocation5], 4294950912  ;;  %v10026_v10 = vld [vmem:[#allocation3] sm:$0xff]  ;;  %v6693_v41 = vcombine.high %v8077_v22, %v8082_v23  ;;  %v6725_v45 = vcombine.high %v8237_v6, %v8242_v7  ;;  %v6692_v15 = vcombine.low %v8077_v22, %v8082_v23  ;;  %v6724_v30 = vcombine.low %v8237_v6, %v8242_v7 }
 0x237   :  { %7313 = dma.done.wait [#allocation5 + $0x1], 16384 }
 0x238   :  { %7314 = vsyncadd [#allocation5 + $0x1], 4294950912  ;;  %v6691_v14 = vcombine.high %v8067_v54, %v8072_v55  ;;  %v6723_v32 = vcombine.high %v8227_v38, %v8232_v39  ;;  %2944 = vmatprep.subr.bf16.mxu0 %v6693_v41  ;;  %2985 = vmatprep.subr.bf16.mxu1 %v6725_v45  ;;  %v6690_v31 = vcombine.low %v8067_v54, %v8072_v55  ;;  %v12195_v50 = vld [vmem:[#allocation167_spill] sm:$0xff]  ;;  %v12196_v33 = vld [vmem:[#allocation166_spill] sm:$0xff] }
 0x239   :  { %2945 = vmatpush1.bf16.msra.mxu0 %v6692_v15  ;;  %2986 = vmatpush1.bf16.msra.mxu1 %v6724_v30  ;;  %v6722_v22 = vcombine.low %v8227_v38, %v8232_v39  ;;  %v6689_v6 = vcombine.high %v8057_v20, %v8062_v21  ;;  %v6721_v7 = vcombine.high %v8217_v4, %v8222_v5  ;;  %v12198_v43 = vld [vmem:[#allocation145_spill] sm:$0xff]  ;;  %v12200_v61 = vld [vmem:[#allocation164_spill] sm:$0xff]  ;;  %v12201_v57 = vld [vmem:[#allocation163_spill] sm:$0xff] }
 0x23a   :  { %2946 = vmatprep.subr.bf16.mxu0 %v6691_v14  ;;  %2987 = vmatprep.subr.bf16.mxu1 %v6723_v32  ;;  %v6688_v23 = vcombine.low %v8057_v20, %v8062_v21  ;;  %v6720_v63 = vcombine.low %v8217_v4, %v8222_v5  ;;  %v6687_v38 = vcombine.high %v8047_v52, %v8052_v53  ;;  %v10064_v20 = vld [vmem:[#allocation3 + $0x8] sm:$0xff]  ;;  %v12203_v28 = vld [vmem:[#allocation183_spill] sm:$0xff]  ;;  %v12206_v9 = vld [vmem:[#allocation160_spill] sm:$0xff] }
 0x23b   :  { %v6719_v39 = vcombine.high %v8207_v36, %v8212_v37  ;;  %v6686_v54 = vcombine.low %v8047_v52, %v8052_v53  ;;  %v6718_v55 = vcombine.low %v8207_v36, %v8212_v37  ;;  %v6685_v4 = vcombine.high %v8037_v18, %v8042_v19  ;;  %v12199_v12 = vld [vmem:[#allocation165_spill] sm:$0xff]  ;;  %v12202_v24 = vld [vmem:[#allocation162_spill] sm:$0xff]  ;;  %v12208_v46 = vld [vmem:[#allocation180_spill] sm:$0xff] }
 0x23c   :  { %v6717_v5 = vcombine.high %v8197_v2, %v8202_v3  ;;  %v6684_v21 = vcombine.low %v8037_v18, %v8042_v19  ;;  %v6716_v52 = vcombine.low %v8197_v2, %v8202_v3  ;;  %v10072_v36 = vrot.slane %v10064_v20, %v10016_v8  ;;  %v12194_v19 = vld [vmem:[#allocation147_spill] sm:$0xff]  ;;  %v12204_v59 = vld [vmem:[#allocation182_spill] sm:$0xff]  ;;  %v12205_v11 = vld [vmem:[#allocation161_spill] sm:$0xff] }
 0x23d   :  { %2947 = vmatpush1.bf16.msra.mxu0 %v6690_v31  ;;  %2988 = vmatpush1.bf16.msra.mxu1 %v6722_v22  ;;  %v6683_v37 = vcombine.high %v8027_v17, %v8032_v51  ;;  %v6715_v53 = vcombine.high %v8187_v34, %v8192_v35  ;;  %v6682_v18 = vcombine.low %v8027_v17, %v8032_v51  ;;  %v12197_v51 = vld [vmem:[#allocation146_spill] sm:$0xff]  ;;  %v12207_v29 = vld [vmem:[#allocation181_spill] sm:$0xff]  ;;  %v12209_v40 = vld [vmem:[#allocation159_spill] sm:$0xff] }
 0x23e   :  { %2948 = vmatprep.subr.bf16.mxu0 %v6689_v6  ;;  %2989 = vmatprep.subr.bf16.mxu1 %v6721_v7  ;;  %v6714_v2 = vcombine.low %v8187_v34, %v8192_v35  ;;  %v2262_v3 = vcombine.high %v10072_v36, %v10072_v36  ;;  %v6681_v42 = vcombine.high %v12194_v19, %v8022_v16  ;;  %v12210_v41 = vld [vmem:[#allocation158_spill] sm:$0xff]  ;;  %v12211_v15 = vld [vmem:[#allocation179_spill] sm:$0xff]  ;;  %v12213_v22 = vld [vmem:[#allocation157_spill] sm:$0xff] }
 0x23f   :  { %v6713_v0 = vcombine.high %v12196_v33, %v12195_v50  ;;  %v6680_v17 = vcombine.low %v12194_v19, %v8022_v16  ;;  %v6712_v34 = vcombine.low %v12196_v33, %v12195_v50  ;;  %v6679_v44 = vcombine.high %v12198_v43, %v12197_v51  ;;  %v12212_v30 = vld [vmem:[#allocation178_spill] sm:$0xff]  ;;  %v12214_v6 = vld [vmem:[#allocation156_spill] sm:$0xff] }
 0x240   :  { %v2284_v48 = vrot.slane %v2262_v3, %v10016_v8  ;;  %v6711_v49 = vcombine.high %v12200_v61, %v12199_v12  ;;  %v6678_v56 = vcombine.low %v12198_v43, %v12197_v51  ;;  %v6710_v16 = vcombine.low %v12200_v61, %v12199_v12  ;;  %v12222_v3 = vld [vmem:[#allocation152_spill] sm:$0xff]  ;;  %v12227_v43 = vld [vmem:[#allocation171_spill] sm:$0xff] }
 0x241   :  { %2949 = vmatpush1.bf16.msra.mxu0 %v6688_v23  ;;  %2990 = vmatpush1.bf16.msra.mxu1 %v6720_v63  ;;  %v6709_v25 = vcombine.high %v12202_v24, %v12201_v57  ;;  %v6741_v1 = vcombine.high %v12204_v59, %v12203_v28  ;;  %v6708_v60 = vcombine.low %v12202_v24, %v12201_v57  ;;  %v12215_v23 = vld [vmem:[#allocation177_spill] sm:$0xff]  ;;  %v12216_v63 = vld [vmem:[#allocation176_spill] sm:$0xff] }
 0x242   :  { %2950 = vmatprep.subr.bf16.mxu0 %v6687_v38  ;;  %2991 = vmatprep.subr.bf16.mxu1 %v6719_v39  ;;  %v2294_v35 = vcombine.high %v2284_v48, %v2284_v48  ;;  %v6740_v26 = vcombine.low %v12204_v59, %v12203_v28  ;;  %v6707_v27 = vcombine.high %v12206_v9, %v12205_v11  ;;  %v12224_v50 = vld [vmem:[#allocation172_spill] sm:$0xff]  ;;  %v12231_v24 = vld [vmem:[#allocation169_spill] sm:$0xff] }
 0x243   :  { %2976 = vmatprep.mubr.bf16.mxu0 %v2284_v48  ;;  %v6739_v47 = vcombine.high %v12208_v46, %v12207_v29  ;;  %v6706_v13 = vcombine.low %v12206_v9, %v12205_v11  ;;  %v6738_v62 = vcombine.low %v12208_v46, %v12207_v29  ;;  %v6705_v45 = vcombine.high %v12210_v41, %v12209_v40  ;;  %v12233_v11 = vld [vmem:[#allocation199_spill] sm:$0xff]  ;;  %v12234_v9 = vld [vmem:[#allocation198_spill] sm:$0xff] }
 0x244   :  { %3017 = vmatprep.mubr.bf16.mxu1 %v2294_v35  ;;  %v6737_v14 = vcombine.high %v12212_v30, %v12211_v15  ;;  %v6704_v32 = vcombine.low %v12210_v41, %v12209_v40  ;;  %v6736_v31 = vcombine.low %v12212_v30, %v12211_v15  ;;  %v6703_v7 = vcombine.high %v12214_v6, %v12213_v22  ;;  %v12226_v35 = vld [vmem:[#allocation150_spill] sm:$0xff]  ;;  %v12235_v29 = vld [vmem:[#allocation231_spill] sm:$0xff]  ;;  %v12237_v41 = vld [vmem:[#allocation197_spill] sm:$0xff] }
 0x245   :  { %2951 = vmatpush1.bf16.msra.mxu0 %v6686_v54  ;;  %2992 = vmatpush1.bf16.msra.mxu1 %v6718_v55  ;;  %v6735_v38 = vcombine.high %v12216_v63, %v12215_v23  ;;  %v6702_v39 = vcombine.low %v12214_v6, %v12213_v22  ;;  %v6734_v54 = vcombine.low %v12216_v63, %v12215_v23  ;;  %v12217_v55 = vld [vmem:[#allocation155_spill] sm:$0xff]  ;;  %v12236_v46 = vld [vmem:[#allocation230_spill] sm:$0xff]  ;;  %v12239_v30 = vld [vmem:[#allocation229_spill] sm:$0xff] }
 0x246   :  { %2952 = vmatprep.subr.bf16.mxu0 %v6685_v4  ;;  %2993 = vmatprep.subr.bf16.mxu1 %v6717_v5  ;;  %v12218_v4 = vld [vmem:[#allocation154_spill] sm:$0xff]  ;;  %v6788_v40 = vcombine.low %v12236_v46, %v12235_v29 }
 0x247   :  { %v6701_v5 = vcombine.high %v12218_v4, %v12217_v55  ;;  %v12242_v23 = vld [vmem:[#allocation194_spill] sm:$0xff] }
 0x249   :  { %2953 = vmatpush1.bf16.msra.mxu0 %v6684_v21  ;;  %2994 = vmatpush1.bf16.msra.mxu1 %v6716_v52  ;;  %v12219_v21 = vld [vmem:[#allocation175_spill] sm:$0xff]  ;;  %v12220_v52 = vld [vmem:[#allocation174_spill] sm:$0xff] }
 0x24a   :  { %2954 = vmatprep.subr.bf16.mxu0 %v6683_v37  ;;  %2995 = vmatprep.subr.bf16.mxu1 %v6715_v53  ;;  %v6733_v37 = vcombine.high %v12220_v52, %v12219_v21  ;;  %v6700_v53 = vcombine.low %v12218_v4, %v12217_v55 }
 0x24d   :  { %2955 = vmatpush1.bf16.msra.mxu0 %v6682_v18  ;;  %2996 = vmatpush1.bf16.msra.mxu1 %v6714_v2  ;;  %v6732_v18 = vcombine.low %v12220_v52, %v12219_v21  ;;  %v12221_v2 = vld [vmem:[#allocation153_spill] sm:$0xff]  ;;  %v12246_v21 = vld [vmem:[#allocation192_spill] sm:$0xff] }
 0x24e   :  { %2956 = vmatprep.subr.bf16.mxu0 %v6681_v42  ;;  %2997 = vmatprep.subr.bf16.mxu1 %v6713_v0  ;;  %v6699_v19 = vcombine.high %v12222_v3, %v12221_v2  ;;  %v12223_v42 = vld [vmem:[#allocation173_spill] sm:$0xff]  ;;  %v2247_v0 = vcombine.high %v10064_v20, %v10064_v20  ;;  %v6698_v48 = vcombine.low %v12222_v3, %v12221_v2 }
 0x24f   :  { %v6731_v33 = vcombine.high %v12224_v50, %v12223_v42 }
 0x250   :  { %v10156_v61 = vrot.slane %v2247_v0, %v10016_v8  ;;  %v12252_v0 = vld [vmem:[#allocation222_spill] sm:$0xff] }
 0x251   :  { %2957 = vmatpush1.bf16.msra.mxu0 %v6680_v17  ;;  %2998 = vmatpush1.bf16.msra.mxu1 %v6712_v34  ;;  %v6730_v17 = vcombine.low %v12224_v50, %v12223_v42  ;;  %v12225_v34 = vld [vmem:[#allocation151_spill] sm:$0xff]  ;;  %v12250_v42 = vld [vmem:[#allocation190_spill] sm:$0xff] }
 0x252   :  { %2958 = vmatprep.subr.bf16.mxu0 %v6679_v44  ;;  %2999 = vmatprep.subr.bf16.mxu1 %v6711_v49  ;;  %v6697_v51 = vcombine.high %v12226_v35, %v12225_v34  ;;  %v12228_v44 = vld [vmem:[#allocation170_spill] sm:$0xff]  ;;  %v6696_v20 = vcombine.low %v12226_v35, %v12225_v34  ;;  %v2263_v59 = vcombine.high %v10156_v61, %v10156_v61  ;;  %v12253_v35 = vld [vmem:[#allocation189_spill] sm:$0xff] }
 0x253   :  { %v6729_v12 = vcombine.high %v12228_v44, %v12227_v43  ;;  %v6728_v49 = vcombine.low %v12228_v44, %v12227_v43  ;;  %v12255_v44 = vld [vmem:[#allocation221_spill] sm:$0xff] }
 0x255   :  { %2959 = vmatpush1.bf16.msra.mxu0 %v6678_v56  ;;  %3000 = vmatpush1.bf16.msra.mxu1 %v6710_v16  ;;  %v12229_v56 = vld [vmem:[#allocation149_spill] sm:$0xff]  ;;  %v12230_v16 = vld [vmem:[#allocation148_spill] sm:$0xff] }
 0x256   :  { %2960 = vmatprep.subr.bf16.mxu0 %v6709_v25  ;;  %3001 = vmatprep.subr.bf16.mxu1 %v6741_v1  ;;  %v6695_v57 = vcombine.high %v12230_v16, %v12229_v56  ;;  %v12232_v25 = vld [vmem:[#allocation168_spill] sm:$0xff]  ;;  %v2270_v1 = vrot.slane %v10072_v36, %v10016_v8  ;;  %v6756_v36 = vcombine.low %v12234_v9, %v12233_v11 }
 0x257   :  { %v6727_v28 = vcombine.high %v12232_v25, %v12231_v24 }
 0x259   :  { %2961 = vmatpush2.bf16.msra.mxu0 %v6708_v60  ;;  %3002 = vmatpush2.bf16.msra.mxu1 %v6740_v26  ;;  %v6694_v60 = vcombine.low %v12230_v16, %v12229_v56  ;;  %v6726_v26 = vcombine.low %v12232_v25, %v12231_v24  ;;  %v12257_v16 = vld [vmem:[#allocation187_spill] sm:$0xff] }
 0x25a   :  { %2962 = vmatprep.subr.bf16.mxu0 %v6707_v27  ;;  %3003 = vmatprep.subr.bf16.mxu1 %v6739_v47  ;;  %v6757_v27 = vcombine.high %v12234_v9, %v12233_v11  ;;  %v6789_v47 = vcombine.high %v12236_v46, %v12235_v29  ;;  %v12259_v25 = vld [vmem:[#allocation219_spill] sm:$0xff]  ;;  %v12262_v11 = vld [vmem:[#allocation184_spill] sm:$0xff] }
 0x25b   :  { %v12264_v29 = vld [vmem:[#allocation216_spill] sm:$0xff] }
 0x25d   :  { %2963 = vmatpush2.bf16.msra.mxu0 %v6706_v13  ;;  %3004 = vmatpush2.bf16.msra.mxu1 %v6738_v62  ;;  %v2291_v13 = vrot.slane %v2263_v59, %v10016_v8  ;;  %v2292_v62 = vcombine.high %v2270_v1, %v2270_v1 }
 0x25e   :  { %2964 = vmatprep.subr.bf16.mxu0 %v6705_v45  ;;  %3005 = vmatprep.subr.bf16.mxu1 %v6737_v14  ;;  %v12238_v45 = vld [vmem:[#allocation196_spill] sm:$0xff] }
 0x25f   :  { %v6755_v15 = vcombine.high %v12238_v45, %v12237_v41  ;;  %v12240_v14 = vld [vmem:[#allocation228_spill] sm:$0xff]  ;;  %v6754_v22 = vcombine.low %v12238_v45, %v12237_v41  ;;  %v12267_v41 = vld [vmem:[#allocation247_spill] sm:$0xff]  ;;  %v12268_v45 = vld [vmem:[#allocation246_spill] sm:$0xff] }
 0x260   :  { %v6786_v6 = vcombine.low %v12240_v14, %v12239_v30 }
 0x261   :  { %2965 = vmatpush2.bf16.msra.mxu0 %v6704_v32  ;;  %3006 = vmatpush2.bf16.msra.mxu1 %v6736_v31  ;;  %v6787_v32 = vcombine.high %v12240_v14, %v12239_v30  ;;  %v2295_v31 = vcombine.high %v2291_v13, %v2291_v13  ;;  %v6804_v14 = vcombine.low %v12268_v45, %v12267_v41 }
 0x262   :  { %2966 = vmatprep.subr.bf16.mxu0 %v6703_v7  ;;  %3007 = vmatprep.subr.bf16.mxu1 %v6735_v38  ;;  %v12241_v7 = vld [vmem:[#allocation195_spill] sm:$0xff] }
 0x263   :  { %v6753_v63 = vcombine.high %v12242_v23, %v12241_v7  ;;  %v12243_v38 = vld [vmem:[#allocation227_spill] sm:$0xff]  ;;  %v6752_v55 = vcombine.low %v12242_v23, %v12241_v7  ;;  %v12272_v7 = vld [vmem:[#allocation244_spill] sm:$0xff] }
 0x265   :  { %2967 = vmatpush2.bf16.msra.mxu0 %v6702_v39  ;;  %3008 = vmatpush2.bf16.msra.mxu1 %v6734_v54  ;;  %v12244_v39 = vld [vmem:[#allocation226_spill] sm:$0xff] }
 0x266   :  { %2968 = vmatprep.subr.bf16.mxu0 %v6701_v5  ;;  %3009 = vmatprep.subr.bf16.mxu1 %v6733_v37  ;;  %v6785_v54 = vcombine.high %v12244_v39, %v12243_v38  ;;  %v6784_v4 = vcombine.low %v12244_v39, %v12243_v38  ;;  %v12245_v5 = vld [vmem:[#allocation193_spill] sm:$0xff]  ;;  %v12273_v39 = vld [vmem:[#allocation211_spill] sm:$0xff] }
 0x267   :  { %v6751_v52 = vcombine.high %v12246_v21, %v12245_v5  ;;  %v12247_v37 = vld [vmem:[#allocation225_spill] sm:$0xff]  ;;  %v6750_v2 = vcombine.low %v12246_v21, %v12245_v5  ;;  %v12276_v5 = vld [vmem:[#allocation242_spill] sm:$0xff] }
 0x269   :  { %2969 = vmatpush2.bf16.msra.mxu0 %v6700_v53  ;;  %3010 = vmatpush2.bf16.msra.mxu1 %v6732_v18  ;;  %v12248_v53 = vld [vmem:[#allocation224_spill] sm:$0xff] }
 0x26a   :  { %2970 = vmatprep.subr.bf16.mxu0 %v6699_v19  ;;  %3011 = vmatprep.subr.bf16.mxu1 %v6731_v33  ;;  %v6783_v18 = vcombine.high %v12248_v53, %v12247_v37  ;;  %v6782_v3 = vcombine.low %v12248_v53, %v12247_v37  ;;  %v12249_v19 = vld [vmem:[#allocation191_spill] sm:$0xff]  ;;  %v12277_v53 = vld [vmem:[#allocation209_spill] sm:$0xff] }
 0x26b   :  { %v6749_v50 = vcombine.high %v12250_v42, %v12249_v19  ;;  %v12251_v33 = vld [vmem:[#allocation223_spill] sm:$0xff] }
 0x26c   :  { %v6780_v34 = vcombine.low %v12252_v0, %v12251_v33 }
 0x26d   :  { %2971 = vmatpush2.bf16.msra.mxu0 %v6698_v48  ;;  %3012 = vmatpush2.bf16.msra.mxu1 %v6730_v17  ;;  %v6781_v48 = vcombine.high %v12252_v0, %v12251_v33  ;;  %v6748_v17 = vcombine.low %v12250_v42, %v12249_v19  ;;  %v12280_v19 = vld [vmem:[#allocation240_spill] sm:$0xff]  ;;  %v12281_v0 = vld [vmem:[#allocation207_spill] sm:$0xff] }
 0x26e   :  { %2972 = vmatprep.subr.bf16.mxu0 %v6697_v51  ;;  %3013 = vmatprep.subr.bf16.mxu1 %v6729_v12  ;;  %v12254_v51 = vld [vmem:[#allocation188_spill] sm:$0xff] }
 0x26f   :  { %v6747_v43 = vcombine.high %v12254_v51, %v12253_v35  ;;  %v12256_v12 = vld [vmem:[#allocation220_spill] sm:$0xff] }
 0x270   :  { %v6778_v56 = vcombine.low %v12256_v12, %v12255_v44 }
 0x271   :  { %2973 = vmatpush2.bf16.msra.mxu0 %v6696_v20  ;;  %3014 = vmatpush2.bf16.msra.mxu1 %v6728_v49  ;;  %v6779_v20 = vcombine.high %v12256_v12, %v12255_v44  ;;  %v6746_v49 = vcombine.low %v12254_v51, %v12253_v35  ;;  %v12284_v35 = vld [vmem:[#allocation238_spill] sm:$0xff]  ;;  %v12285_v12 = vld [vmem:[#allocation205_spill] sm:$0xff] }
 0x272   :  { %2974 = vmatprep.subr.bf16.mxu0 %v6695_v57  ;;  %3015 = vmatprep.subr.bf16.mxu1 %v6727_v28  ;;  %v12258_v57 = vld [vmem:[#allocation186_spill] sm:$0xff] }
 0x273   :  { %v6745_v24 = vcombine.high %v12258_v57, %v12257_v16  ;;  %v12260_v28 = vld [vmem:[#allocation218_spill] sm:$0xff] }
 0x274   :  { %v6777_v59 = vcombine.high %v12260_v28, %v12259_v25 }
 0x275   :  { %2975 = vmatpush2.bf16.msra.mxu0 %v6694_v60  ;;  %3016 = vmatpush2.bf16.msra.mxu1 %v6726_v26  ;;  %v6776_v60 = vcombine.low %v12260_v28, %v12259_v25  ;;  %v12261_v26 = vld [vmem:[#allocation185_spill] sm:$0xff]  ;;  %v12289_v28 = vld [vmem:[#allocation203_spill] sm:$0xff] }
 0x276   :  { %3026 = vmatprep.subr.bf16.mxu0 %v6757_v27  ;;  %3067 = vmatprep.subr.bf16.mxu1 %v6789_v47  ;;  %v6743_v9 = vcombine.high %v12262_v11, %v12261_v26  ;;  %v12263_v27 = vld [vmem:[#allocation217_spill] sm:$0xff]  ;;  %v6742_v47 = vcombine.low %v12262_v11, %v12261_v26  ;;  %v12292_v26 = vld [vmem:[#allocation234_spill] sm:$0xff] }
 0x277   :  { %v6775_v46 = vcombine.high %v12264_v29, %v12263_v27 }
 0x278   :  { %2977 = vmatmul.mubr.bf16.vlgmr.msra.gmra.mxu0 %v2270_v1  ;;  %3018 = vmatmul.mubr.bf16.vlgmr.msra.gmra.mxu1 %v2292_v62  ;;  %v6744_v1 = vcombine.low %v12258_v57, %v12257_v16  ;;  %v12265_v62 = vld [vmem:[#allocation215_spill] sm:$0xff]  ;;  %v12288_v16 = vld [vmem:[#allocation236_spill] sm:$0xff] }
 0x279   :  { %3027 = vmatpush1.bf16.msra.mxu0 %v6756_v36  ;;  %3068 = vmatpush1.bf16.msra.mxu1 %v6788_v40  ;;  %v12266_v36 = vld [vmem:[#allocation214_spill] sm:$0xff] }
 0x27a   :  { %3028 = vmatprep.subr.bf16.mxu0 %v6755_v15  ;;  %3069 = vmatprep.subr.bf16.mxu1 %v6787_v32  ;;  %v6773_v40 = vcombine.high %v12266_v36, %v12265_v62  ;;  %v6805_v15 = vcombine.high %v12268_v45, %v12267_v41  ;;  %v6772_v30 = vcombine.low %v12266_v36, %v12265_v62  ;;  %v12269_v32 = vld [vmem:[#allocation213_spill] sm:$0xff]  ;;  %v12296_v36 = vld [vmem:[#allocation232_spill] sm:$0xff] }
 0x27b   :  { %3058 = vmatprep.mubr.bf16.mxu0 %v2291_v13  ;;  %3099 = vmatprep.mubr.bf16.mxu1 %v2295_v31  ;;  %v6774_v13 = vcombine.low %v12264_v29, %v12263_v27  ;;  %v12270_v31 = vld [vmem:[#allocation212_spill] sm:$0xff]  ;;  %v12295_v62 = vld [vmem:[#allocation233_spill] sm:$0xff]  ;;  %v2277_v45 = vrot.slane %v10156_v61, %v10016_v8 }
 0x27d   :  { %3029 = vmatpush1.bf16.msra.mxu0 %v6754_v22  ;;  %3070 = vmatpush1.bf16.msra.mxu1 %v6786_v6  ;;  %v6771_v22 = vcombine.high %v12270_v31, %v12269_v32  ;;  %v12271_v6 = vld [vmem:[#allocation245_spill] sm:$0xff] }
 0x27e   :  { %3030 = vmatprep.subr.bf16.mxu0 %v6753_v63  ;;  %3071 = vmatprep.subr.bf16.mxu1 %v6785_v54  ;;  %v6803_v23 = vcombine.high %v12272_v7, %v12271_v6  ;;  %v6770_v63 = vcombine.low %v12270_v31, %v12269_v32  ;;  %v6802_v38 = vcombine.low %v12272_v7, %v12271_v6  ;;  %v12274_v54 = vld [vmem:[#allocation210_spill] sm:$0xff]  ;;  %v12298_v32 = vld [vmem:[#allocation31_spill] sm:$0xff] }
 0x27f   :  { %v12300_v6 = vld [vmem:[#allocation63_spill] sm:$0xff] }
 0x281   :  { %3031 = vmatpush1.bf16.msra.mxu0 %v6752_v55  ;;  %3072 = vmatpush1.bf16.msra.mxu1 %v6784_v4  ;;  %v6769_v55 = vcombine.high %v12274_v54, %v12273_v39  ;;  %v12275_v4 = vld [vmem:[#allocation243_spill] sm:$0xff] }
 0x282   :  { %3032 = vmatprep.subr.bf16.mxu0 %v6751_v52  ;;  %3073 = vmatprep.subr.bf16.mxu1 %v6783_v18  ;;  %v6801_v21 = vcombine.high %v12276_v5, %v12275_v4  ;;  %v6768_v52 = vcombine.low %v12274_v54, %v12273_v39  ;;  %v6800_v37 = vcombine.low %v12276_v5, %v12275_v4  ;;  %v12278_v18 = vld [vmem:[#allocation208_spill] sm:$0xff]  ;;  %v12301_v39 = vld [vmem:[#allocation30_spill] sm:$0xff]  ;;  %v12302_v54 = vld [vmem:[#allocation29_spill] sm:$0xff] }
 0x283   :  { %v12303_v4 = vld [vmem:[#allocation62_spill] sm:$0xff]  ;;  %v12304_v5 = vld [vmem:[#allocation61_spill] sm:$0xff] }
 0x285   :  { %3033 = vmatpush1.bf16.msra.mxu0 %v6750_v2  ;;  %3074 = vmatpush1.bf16.msra.mxu1 %v6782_v3  ;;  %v6767_v2 = vcombine.high %v12278_v18, %v12277_v53  ;;  %v12279_v3 = vld [vmem:[#allocation241_spill] sm:$0xff] }
 0x286   :  { %3034 = vmatprep.subr.bf16.mxu0 %v6749_v50  ;;  %3075 = vmatprep.subr.bf16.mxu1 %v6781_v48  ;;  %v6799_v42 = vcombine.high %v12280_v19, %v12279_v3  ;;  %v6766_v50 = vcombine.low %v12278_v18, %v12277_v53  ;;  %v6798_v33 = vcombine.low %v12280_v19, %v12279_v3  ;;  %v12282_v48 = vld [vmem:[#allocation206_spill] sm:$0xff]  ;;  %v12305_v18 = vld [vmem:[#allocation28_spill] sm:$0xff] }
 0x287   :  { %v6850_v53 = vcombine.low %v12304_v5, %v12303_v4  ;;  %v12307_v19 = vld [vmem:[#allocation60_spill] sm:$0xff] }
 0x289   :  { %3035 = vmatpush1.bf16.msra.mxu0 %v6748_v17  ;;  %3076 = vmatpush1.bf16.msra.mxu1 %v6780_v34  ;;  %v6765_v17 = vcombine.high %v12282_v48, %v12281_v0  ;;  %v12283_v34 = vld [vmem:[#allocation239_spill] sm:$0xff] }
 0x28a   :  { %3036 = vmatprep.subr.bf16.mxu0 %v6747_v43  ;;  %3077 = vmatprep.subr.bf16.mxu1 %v6779_v20  ;;  %v6797_v51 = vcombine.high %v12284_v35, %v12283_v34  ;;  %v6764_v43 = vcombine.low %v12282_v48, %v12281_v0  ;;  %v6796_v44 = vcombine.low %v12284_v35, %v12283_v34  ;;  %v12286_v20 = vld [vmem:[#allocation204_spill] sm:$0xff]  ;;  %v12309_v48 = vld [vmem:[#allocation26_spill] sm:$0xff] }
 0x28b   :  { %v12311_v35 = vld [vmem:[#allocation58_spill] sm:$0xff] }
 0x28d   :  { %3037 = vmatpush1.bf16.msra.mxu0 %v6746_v49  ;;  %3078 = vmatpush1.bf16.msra.mxu1 %v6778_v56  ;;  %v6763_v49 = vcombine.high %v12286_v20, %v12285_v12  ;;  %v12287_v56 = vld [vmem:[#allocation237_spill] sm:$0xff] }
 0x28e   :  { %3038 = vmatprep.subr.bf16.mxu0 %v6745_v24  ;;  %3079 = vmatprep.subr.bf16.mxu1 %v6777_v59  ;;  %v6795_v57 = vcombine.high %v12288_v16, %v12287_v56  ;;  %v6762_v24 = vcombine.low %v12286_v20, %v12285_v12  ;;  %v6794_v25 = vcombine.low %v12288_v16, %v12287_v56  ;;  %v12290_v59 = vld [vmem:[#allocation202_spill] sm:$0xff]  ;;  %v12313_v20 = vld [vmem:[#allocation24_spill] sm:$0xff] }
 0x28f   :  { %v6760_v27 = vcombine.low %v12290_v59, %v12289_v28  ;;  %v12315_v16 = vld [vmem:[#allocation56_spill] sm:$0xff] }
 0x291   :  { %3039 = vmatpush1.bf16.msra.mxu0 %v6744_v1  ;;  %3080 = vmatpush1.bf16.msra.mxu1 %v6776_v60  ;;  %v6761_v1 = vcombine.high %v12290_v59, %v12289_v28  ;;  %v12291_v60 = vld [vmem:[#allocation235_spill] sm:$0xff]  ;;  %v12317_v59 = vld [vmem:[#allocation22_spill] sm:$0xff] }
 0x292   :  { %3040 = vmatprep.subr.bf16.mxu0 %v6743_v9  ;;  %3081 = vmatprep.subr.bf16.mxu1 %v6775_v46  ;;  %v6793_v11 = vcombine.high %v12292_v26, %v12291_v60  ;;  %v10293_v9 = vrot.slane %v10026_v10, %v10016_v8  ;;  %v6792_v29 = vcombine.low %v12292_v26, %v12291_v60  ;;  %v12293_v46 = vld [vmem:[#allocation201_spill] sm:$0xff]  ;;  %v12319_v26 = vld [vmem:[#allocation54_spill] sm:$0xff] }
 0x294   :  { %v3124_v41 = vcombine.high %v10293_v9, %v10293_v9 }
 0x295   :  { %3041 = vmatpush1.bf16.msra.mxu0 %v6742_v47  ;;  %3082 = vmatpush1.bf16.msra.mxu1 %v6774_v13  ;;  %v12294_v47 = vld [vmem:[#allocation200_spill] sm:$0xff] }
 0x296   :  { %3042 = vmatprep.subr.bf16.mxu0 %v6773_v40  ;;  %3083 = vmatprep.subr.bf16.mxu1 %v6805_v15  ;;  %v6759_v13 = vcombine.high %v12294_v47, %v12293_v46  ;;  %v6791_v40 = vcombine.high %v12296_v36, %v12295_v62  ;;  %v6758_v15 = vcombine.low %v12294_v47, %v12293_v46  ;;  %v12321_v47 = vld [vmem:[#allocation20_spill] sm:$0xff] }
 0x299   :  { %3043 = vmatpush2.bf16.msra.mxu0 %v6772_v30  ;;  %3084 = vmatpush2.bf16.msra.mxu1 %v6804_v14  ;;  %v6790_v30 = vcombine.low %v12296_v36, %v12295_v62  ;;  %v12297_v14 = vld [vmem:[#allocation32_spill] sm:$0xff] }
 0x29a   :  { %3044 = vmatprep.subr.bf16.mxu0 %v6771_v22  ;;  %3085 = vmatprep.subr.bf16.mxu1 %v6803_v23  ;;  %v6821_v31 = vcombine.high %v12298_v32, %v12297_v14  ;;  %v12299_v22 = vld [vmem:[#allocation64_spill] sm:$0xff]  ;;  %v3146_v23 = vrot.slane %v3124_v41, %v10016_v8  ;;  %v6820_v61 = vcombine.low %v12298_v32, %v12297_v14  ;;  %v12326_v14 = vld [vmem:[#allocation17_spill] sm:$0xff] }
 0x29b   :  { %v6853_v7 = vcombine.high %v12300_v6, %v12299_v22  ;;  %v12323_v36 = vld [vmem:[#allocation52_spill] sm:$0xff] }
 0x29d   :  { %3045 = vmatpush2.bf16.msra.mxu0 %v6770_v63  ;;  %3086 = vmatpush2.bf16.msra.mxu1 %v6802_v38  ;;  %v2293_v63 = vcombine.high %v2277_v45, %v2277_v45  ;;  %v6852_v38 = vcombine.low %v12300_v6, %v12299_v22  ;;  %v12328_v22 = vld [vmem:[#allocation49_spill] sm:$0xff] }
 0x29e   :  { %3046 = vmatprep.subr.bf16.mxu0 %v6769_v55  ;;  %3087 = vmatprep.subr.bf16.mxu1 %v6801_v21  ;;  %v6819_v55 = vcombine.high %v12302_v54, %v12301_v39  ;;  %v6851_v21 = vcombine.high %v12304_v5, %v12303_v4 }
 0x2a1   :  { %3047 = vmatpush2.bf16.msra.mxu0 %v6768_v52  ;;  %3088 = vmatpush2.bf16.msra.mxu1 %v6800_v37  ;;  %v3156_v52 = vcombine.high %v3146_v23, %v3146_v23  ;;  %v6818_v37 = vcombine.low %v12302_v54, %v12301_v39  ;;  %v12331_v39 = vld [vmem:[#allocation80_spill] sm:$0xff]  ;;  %v12332_v54 = vld [vmem:[#allocation79_spill] sm:$0xff] }
 0x2a2   :  { %3048 = vmatprep.subr.bf16.mxu0 %v6767_v2  ;;  %3089 = vmatprep.subr.bf16.mxu1 %v6799_v42  ;;  %v12306_v2 = vld [vmem:[#allocation27_spill] sm:$0xff]  ;;  %v6868_v5 = vcombine.low %v12332_v54, %v12331_v39 }
 0x2a3   :  { %v6817_v3 = vcombine.high %v12306_v2, %v12305_v18  ;;  %v12308_v42 = vld [vmem:[#allocation59_spill] sm:$0xff] }
 0x2a4   :  { %v6848_v0 = vcombine.low %v12308_v42, %v12307_v19 }
 0x2a5   :  { %3049 = vmatpush2.bf16.msra.mxu0 %v6766_v50  ;;  %3090 = vmatpush2.bf16.msra.mxu1 %v6798_v33  ;;  %v6849_v50 = vcombine.high %v12308_v42, %v12307_v19  ;;  %v6816_v33 = vcombine.low %v12306_v2, %v12305_v18  ;;  %v12336_v18 = vld [vmem:[#allocation77_spill] sm:$0xff]  ;;  %v12337_v42 = vld [vmem:[#allocation44_spill] sm:$0xff] }
 0x2a6   :  { %3050 = vmatprep.subr.bf16.mxu0 %v6765_v17  ;;  %3091 = vmatprep.subr.bf16.mxu1 %v6797_v51  ;;  %v12310_v17 = vld [vmem:[#allocation25_spill] sm:$0xff] }
 0x2a7   :  { %v6815_v34 = vcombine.high %v12310_v17, %v12309_v48  ;;  %v12312_v51 = vld [vmem:[#allocation57_spill] sm:$0xff] }
 0x2a8   :  { %v6846_v12 = vcombine.low %v12312_v51, %v12311_v35 }
 0x2a9   :  { %3051 = vmatpush2.bf16.msra.mxu0 %v6764_v43  ;;  %3092 = vmatpush2.bf16.msra.mxu1 %v6796_v44  ;;  %v6847_v43 = vcombine.high %v12312_v51, %v12311_v35  ;;  %v6814_v44 = vcombine.low %v12310_v17, %v12309_v48  ;;  %v12340_v48 = vld [vmem:[#allocation75_spill] sm:$0xff]  ;;  %v12341_v51 = vld [vmem:[#allocation42_spill] sm:$0xff] }
 0x2aa   :  { %3052 = vmatprep.subr.bf16.mxu0 %v6763_v49  ;;  %3093 = vmatprep.subr.bf16.mxu1 %v6795_v57  ;;  %v12314_v49 = vld [vmem:[#allocation23_spill] sm:$0xff] }
 0x2ab   :  { %v6813_v56 = vcombine.high %v12314_v49, %v12313_v20  ;;  %v12316_v57 = vld [vmem:[#allocation55_spill] sm:$0xff] }
 0x2ac   :  { %v6844_v28 = vcombine.low %v12316_v57, %v12315_v16 }
 0x2ad   :  { %3053 = vmatpush2.bf16.msra.mxu0 %v6762_v24  ;;  %3094 = vmatpush2.bf16.msra.mxu1 %v6794_v25  ;;  %v6845_v24 = vcombine.high %v12316_v57, %v12315_v16  ;;  %v6812_v25 = vcombine.low %v12314_v49, %v12313_v20  ;;  %v12344_v20 = vld [vmem:[#allocation73_spill] sm:$0xff]  ;;  %v12345_v57 = vld [vmem:[#allocation40_spill] sm:$0xff] }
 0x2ae   :  { %3054 = vmatprep.subr.bf16.mxu0 %v6761_v1  ;;  %3095 = vmatprep.subr.bf16.mxu1 %v6793_v11  ;;  %v12318_v1 = vld [vmem:[#allocation21_spill] sm:$0xff] }
 0x2af   :  { %v6811_v60 = vcombine.high %v12318_v1, %v12317_v59  ;;  %v12320_v11 = vld [vmem:[#allocation53_spill] sm:$0xff] }
 0x2b0   :  { %v6842_v46 = vcombine.low %v12320_v11, %v12319_v26 }
 0x2b1   :  { %3055 = vmatpush2.bf16.msra.mxu0 %v6760_v27  ;;  %3096 = vmatpush2.bf16.msra.mxu1 %v6792_v29  ;;  %v6843_v27 = vcombine.high %v12320_v11, %v12319_v26  ;;  %v6810_v29 = vcombine.low %v12318_v1, %v12317_v59  ;;  %v12348_v59 = vld [vmem:[#allocation71_spill] sm:$0xff]  ;;  %v12349_v11 = vld [vmem:[#allocation38_spill] sm:$0xff] }
 0x2b2   :  { %3056 = vmatprep.subr.bf16.mxu0 %v6759_v13  ;;  %3097 = vmatprep.subr.bf16.mxu1 %v6791_v40  ;;  %v12322_v13 = vld [vmem:[#allocation19_spill] sm:$0xff] }
 0x2b3   :  { %v6809_v62 = vcombine.high %v12322_v13, %v12321_v47  ;;  %v12324_v40 = vld [vmem:[#allocation51_spill] sm:$0xff] }
 0x2b4   :  { %v6841_v41 = vcombine.high %v12324_v40, %v12323_v36 }
 0x2b5   :  { %3057 = vmatpush2.bf16.msra.mxu0 %v6758_v15  ;;  %3098 = vmatpush2.bf16.msra.mxu1 %v6790_v30  ;;  %v6840_v15 = vcombine.low %v12324_v40, %v12323_v36  ;;  %v12325_v30 = vld [vmem:[#allocation18_spill] sm:$0xff] }
 0x2b6   :  { %3806 = vmatprep.subr.bf16.mxu0 %v6821_v31  ;;  %3847 = vmatprep.subr.bf16.mxu1 %v6853_v7  ;;  %v6807_v32 = vcombine.high %v12326_v14, %v12325_v30  ;;  %v12327_v31 = vld [vmem:[#allocation50_spill] sm:$0xff]  ;;  %v6806_v7 = vcombine.low %v12326_v14, %v12325_v30  ;;  %v12355_v30 = vld [vmem:[#allocation68_spill] sm:$0xff]  ;;  %v12356_v14 = vld [vmem:[#allocation67_spill] sm:$0xff] }
 0x2b7   :  { %v6839_v6 = vcombine.high %v12328_v22, %v12327_v31 }
 0x2b8   :  { %3059 = vmatmul.mubr.bf16.vlgmr.msra.gmra.mxu0 %v2277_v45  ;;  %3100 = vmatmul.mubr.bf16.vlgmr.msra.gmra.mxu1 %v2293_v63  ;;  %v6808_v45 = vcombine.low %v12322_v13, %v12321_v47  ;;  %v12329_v63 = vld [vmem:[#allocation48_spill] sm:$0xff]  ;;  %v12352_v47 = vld [vmem:[#allocation69_spill] sm:$0xff] }
 0x2b9   :  { %3807 = vmatpush1.bf16.msra.mxu0 %v6820_v61  ;;  %3848 = vmatpush1.bf16.msra.mxu1 %v6852_v38  ;;  %v12330_v61 = vld [vmem:[#allocation47_spill] sm:$0xff] }
 0x2ba   :  { %3808 = vmatprep.subr.bf16.mxu0 %v6819_v55  ;;  %3849 = vmatprep.subr.bf16.mxu1 %v6851_v21  ;;  %v6837_v38 = vcombine.high %v12330_v61, %v12329_v63  ;;  %v6869_v55 = vcombine.high %v12332_v54, %v12331_v39  ;;  %v6836_v4 = vcombine.low %v12330_v61, %v12329_v63  ;;  %v12333_v21 = vld [vmem:[#allocation46_spill] sm:$0xff]  ;;  %v12360_v61 = vld [vmem:[#allocation65_spill] sm:$0xff] }
 0x2bb   :  { %3838 = vmatprep.mubr.bf16.mxu0 %v3146_v23  ;;  %3879 = vmatprep.mubr.bf16.mxu1 %v3156_v52  ;;  %v6838_v23 = vcombine.low %v12328_v22, %v12327_v31  ;;  %v12334_v52 = vld [vmem:[#allocation45_spill] sm:$0xff]  ;;  %v6856_v22 = vcombine.low %v12356_v14, %v12355_v30  ;;  %v12359_v63 = vld [vmem:[#allocation66_spill] sm:$0xff]  ;;  %v3132_v54 = vrot.slane %v10293_v9, %v10016_v8 }
 0x2bd   :  { %3809 = vmatpush1.bf16.msra.mxu0 %v6818_v37  ;;  %3850 = vmatpush1.bf16.msra.mxu1 %v6850_v53  ;;  %v6835_v37 = vcombine.high %v12334_v52, %v12333_v21  ;;  %v12335_v53 = vld [vmem:[#allocation78_spill] sm:$0xff] }
 0x2be   :  { %3810 = vmatprep.subr.bf16.mxu0 %v6817_v3  ;;  %3851 = vmatprep.subr.bf16.mxu1 %v6849_v50  ;;  %v6867_v2 = vcombine.high %v12336_v18, %v12335_v53  ;;  %v6834_v3 = vcombine.low %v12334_v52, %v12333_v21  ;;  %v6866_v19 = vcombine.low %v12336_v18, %v12335_v53  ;;  %v12338_v50 = vld [vmem:[#allocation43_spill] sm:$0xff] }
 0x2bf   :  { %v12362_v21 = vld [vmem:[#allocation95_spill] sm:$0xff] }
 0x2c0   :  { %v12364_v53 = vld [vmem:[#allocation127_spill] sm:$0xff] }
 0x2c1   :  { %3811 = vmatpush1.bf16.msra.mxu0 %v6816_v33  ;;  %3852 = vmatpush1.bf16.msra.mxu1 %v6848_v0  ;;  %v6833_v33 = vcombine.high %v12338_v50, %v12337_v42  ;;  %v12339_v0 = vld [vmem:[#allocation76_spill] sm:$0xff] }
 0x2c2   :  { %3812 = vmatprep.subr.bf16.mxu0 %v6815_v34  ;;  %3853 = vmatprep.subr.bf16.mxu1 %v6847_v43  ;;  %v6865_v17 = vcombine.high %v12340_v48, %v12339_v0  ;;  %v6832_v34 = vcombine.low %v12338_v50, %v12337_v42  ;;  %v6864_v35 = vcombine.low %v12340_v48, %v12339_v0  ;;  %v12342_v43 = vld [vmem:[#allocation41_spill] sm:$0xff]  ;;  %v12365_v42 = vld [vmem:[#allocation94_spill] sm:$0xff] }
 0x2c3   :  { %v12366_v50 = vld [vmem:[#allocation93_spill] sm:$0xff]  ;;  %v12367_v0 = vld [vmem:[#allocation126_spill] sm:$0xff] }
 0x2c4   :  { %v12368_v48 = vld [vmem:[#allocation125_spill] sm:$0xff] }
 0x2c5   :  { %3813 = vmatpush1.bf16.msra.mxu0 %v6814_v44  ;;  %3854 = vmatpush1.bf16.msra.mxu1 %v6846_v12  ;;  %v6831_v44 = vcombine.high %v12342_v43, %v12341_v51  ;;  %v12343_v12 = vld [vmem:[#allocation74_spill] sm:$0xff] }
 0x2c6   :  { %3814 = vmatprep.subr.bf16.mxu0 %v6813_v56  ;;  %3855 = vmatprep.subr.bf16.mxu1 %v6845_v24  ;;  %v6863_v49 = vcombine.high %v12344_v20, %v12343_v12  ;;  %v6830_v56 = vcombine.low %v12342_v43, %v12341_v51  ;;  %v6862_v16 = vcombine.low %v12344_v20, %v12343_v12  ;;  %v12346_v24 = vld [vmem:[#allocation39_spill] sm:$0xff]  ;;  %v12369_v43 = vld [vmem:[#allocation92_spill] sm:$0xff] }
 0x2c7   :  { %v6914_v51 = vcombine.low %v12368_v48, %v12367_v0  ;;  %v12371_v20 = vld [vmem:[#allocation124_spill] sm:$0xff] }
 0x2c9   :  { %3815 = vmatpush1.bf16.msra.mxu0 %v6812_v25  ;;  %3856 = vmatpush1.bf16.msra.mxu1 %v6844_v28  ;;  %v6829_v25 = vcombine.high %v12346_v24, %v12345_v57  ;;  %v12347_v28 = vld [vmem:[#allocation72_spill] sm:$0xff] }
 0x2ca   :  { %3816 = vmatprep.subr.bf16.mxu0 %v6811_v60  ;;  %3857 = vmatprep.subr.bf16.mxu1 %v6843_v27  ;;  %v6861_v1 = vcombine.high %v12348_v59, %v12347_v28  ;;  %v6828_v60 = vcombine.low %v12346_v24, %v12345_v57  ;;  %v6860_v26 = vcombine.low %v12348_v59, %v12347_v28  ;;  %v12350_v27 = vld [vmem:[#allocation37_spill] sm:$0xff]  ;;  %v12373_v24 = vld [vmem:[#allocation90_spill] sm:$0xff] }
 0x2cb   :  { %v6826_v36 = vcombine.low %v12350_v27, %v12349_v11  ;;  %v12375_v59 = vld [vmem:[#allocation122_spill] sm:$0xff] }
 0x2cd   :  { %3817 = vmatpush1.bf16.msra.mxu0 %v6810_v29  ;;  %3858 = vmatpush1.bf16.msra.mxu1 %v6842_v46  ;;  %v6827_v29 = vcombine.high %v12350_v27, %v12349_v11  ;;  %v12351_v46 = vld [vmem:[#allocation70_spill] sm:$0xff]  ;;  %v12377_v27 = vld [vmem:[#allocation88_spill] sm:$0xff] }
 0x2ce   :  { %3818 = vmatprep.subr.bf16.mxu0 %v6809_v62  ;;  %3859 = vmatprep.subr.bf16.mxu1 %v6841_v41  ;;  %v6859_v13 = vcombine.high %v12352_v47, %v12351_v46  ;;  %v3109_v62 = vcombine.high %v10026_v10, %v10026_v10  ;;  %v6858_v40 = vcombine.low %v12352_v47, %v12351_v46  ;;  %v12353_v41 = vld [vmem:[#allocation36_spill] sm:$0xff] }
 0x2cf   :  { %v12379_v47 = vld [vmem:[#allocation120_spill] sm:$0xff] }
 0x2d0   :  { %v10431_v31 = vrot.slane %v3109_v62, %v10016_v8 }
 0x2d1   :  { %3819 = vmatpush1.bf16.msra.mxu0 %v6808_v45  ;;  %3860 = vmatpush1.bf16.msra.mxu1 %v6840_v15  ;;  %v12354_v45 = vld [vmem:[#allocation35_spill] sm:$0xff] }
 0x2d2   :  { %3820 = vmatprep.subr.bf16.mxu0 %v6807_v32  ;;  %3861 = vmatprep.subr.bf16.mxu1 %v6839_v6  ;;  %v6825_v15 = vcombine.high %v12354_v45, %v12353_v41  ;;  %v6857_v32 = vcombine.high %v12356_v14, %v12355_v30  ;;  %v6824_v10 = vcombine.low %v12354_v45, %v12353_v41  ;;  %v12357_v6 = vld [vmem:[#allocation34_spill] sm:$0xff]  ;;  %v12382_v45 = vld [vmem:[#allocation85_spill] sm:$0xff] }
 0x2d3   :  { %v3125_v39 = vcombine.high %v10431_v31, %v10431_v31  ;;  %v12381_v41 = vld [vmem:[#allocation86_spill] sm:$0xff]  ;;  %v12384_v14 = vld [vmem:[#allocation117_spill] sm:$0xff] }
 0x2d4   :  { %v12383_v30 = vld [vmem:[#allocation118_spill] sm:$0xff] }
 0x2d5   :  { %3821 = vmatpush1.bf16.msra.mxu0 %v6806_v7  ;;  %3862 = vmatpush1.bf16.msra.mxu1 %v6838_v23  ;;  %v12358_v7 = vld [vmem:[#allocation33_spill] sm:$0xff] }
 0x2d6   :  { %3822 = vmatprep.subr.bf16.mxu0 %v6837_v38  ;;  %3863 = vmatprep.subr.bf16.mxu1 %v6869_v55  ;;  %v6823_v23 = vcombine.high %v12358_v7, %v12357_v6  ;;  %v6855_v38 = vcombine.high %v12360_v61, %v12359_v63  ;;  %v6822_v55 = vcombine.low %v12358_v7, %v12357_v6  ;;  %v12385_v6 = vld [vmem:[#allocation84_spill] sm:$0xff]  ;;  %v12386_v7 = vld [vmem:[#allocation83_spill] sm:$0xff] }
 0x2d9   :  { %3823 = vmatpush2.bf16.msra.mxu0 %v6836_v4  ;;  %3864 = vmatpush2.bf16.msra.mxu1 %v6868_v5  ;;  %v6854_v4 = vcombine.low %v12360_v61, %v12359_v63  ;;  %v12361_v5 = vld [vmem:[#allocation96_spill] sm:$0xff]  ;;  %v12388_v61 = vld [vmem:[#allocation115_spill] sm:$0xff] }
 0x2da   :  { %3824 = vmatprep.subr.bf16.mxu0 %v6835_v37  ;;  %3865 = vmatprep.subr.bf16.mxu1 %v6867_v2  ;;  %v6885_v52 = vcombine.high %v12362_v21, %v12361_v5  ;;  %v12363_v37 = vld [vmem:[#allocation128_spill] sm:$0xff]  ;;  %v3153_v2 = vrot.slane %v3125_v39, %v10016_v8  ;;  %v6884_v9 = vcombine.low %v12362_v21, %v12361_v5  ;;  %v12391_v21 = vld [vmem:[#allocation114_spill] sm:$0xff] }
 0x2db   :  { %v6917_v18 = vcombine.high %v12364_v53, %v12363_v37  ;;  %v12387_v63 = vld [vmem:[#allocation116_spill] sm:$0xff]  ;;  %v6872_v39 = vcombine.low %v12386_v7, %v12385_v6 }
 0x2dd   :  { %3825 = vmatpush2.bf16.msra.mxu0 %v6834_v3  ;;  %3866 = vmatpush2.bf16.msra.mxu1 %v6866_v19  ;;  %v3154_v3 = vcombine.high %v3132_v54, %v3132_v54  ;;  %v6916_v19 = vcombine.low %v12364_v53, %v12363_v37 }
 0x2de   :  { %3826 = vmatprep.subr.bf16.mxu0 %v6833_v33  ;;  %3867 = vmatprep.subr.bf16.mxu1 %v6865_v17  ;;  %v6883_v33 = vcombine.high %v12366_v50, %v12365_v42  ;;  %v6915_v17 = vcombine.high %v12368_v48, %v12367_v0  ;;  %v12397_v48 = vld [vmem:[#allocation110_spill] sm:$0xff] }
 0x2e1   :  { %3827 = vmatpush2.bf16.msra.mxu0 %v6832_v34  ;;  %3868 = vmatpush2.bf16.msra.mxu1 %v6864_v35  ;;  %v3157_v34 = vcombine.high %v3153_v2, %v3153_v2  ;;  %v6882_v35 = vcombine.low %v12366_v50, %v12365_v42  ;;  %v12396_v42 = vld [vmem:[#allocation143_spill] sm:$0xff] }
 0x2e2   :  { %3828 = vmatprep.subr.bf16.mxu0 %v6831_v44  ;;  %3869 = vmatprep.subr.bf16.mxu1 %v6863_v49  ;;  %v12370_v44 = vld [vmem:[#allocation91_spill] sm:$0xff] }
 0x2e3   :  { %v6881_v12 = vcombine.high %v12370_v44, %v12369_v43  ;;  %v12372_v49 = vld [vmem:[#allocation123_spill] sm:$0xff] }
 0x2e4   :  { %v6912_v57 = vcombine.low %v12372_v49, %v12371_v20 }
 0x2e5   :  { %3829 = vmatpush2.bf16.msra.mxu0 %v6830_v56  ;;  %3870 = vmatpush2.bf16.msra.mxu1 %v6862_v16  ;;  %v6913_v56 = vcombine.high %v12372_v49, %v12371_v20  ;;  %v6880_v16 = vcombine.low %v12370_v44, %v12369_v43  ;;  %v12401_v20 = vld [vmem:[#allocation108_spill] sm:$0xff]  ;;  %v12402_v49 = vld [vmem:[#allocation107_spill] sm:$0xff] }
 0x2e6   :  { %3830 = vmatprep.subr.bf16.mxu0 %v6829_v25  ;;  %3871 = vmatprep.subr.bf16.mxu1 %v6861_v1  ;;  %v12374_v25 = vld [vmem:[#allocation89_spill] sm:$0xff] }
 0x2e7   :  { %v6879_v28 = vcombine.high %v12374_v25, %v12373_v24  ;;  %v12376_v1 = vld [vmem:[#allocation121_spill] sm:$0xff] }
 0x2e8   :  { %v6910_v11 = vcombine.low %v12376_v1, %v12375_v59 }
 0x2e9   :  { %3831 = vmatpush2.bf16.msra.mxu0 %v6828_v60  ;;  %3872 = vmatpush2.bf16.msra.mxu1 %v6860_v26  ;;  %v6911_v60 = vcombine.high %v12376_v1, %v12375_v59  ;;  %v6878_v26 = vcombine.low %v12374_v25, %v12373_v24  ;;  %v6896_v25 = vcombine.low %v12402_v49, %v12401_v20  ;;  %v12405_v59 = vld [vmem:[#allocation106_spill] sm:$0xff]  ;;  %v12406_v1 = vld [vmem:[#allocation105_spill] sm:$0xff] }
 0x2ea   :  { %3832 = vmatprep.subr.bf16.mxu0 %v6827_v29  ;;  %3873 = vmatprep.subr.bf16.mxu1 %v6859_v13  ;;  %v12378_v29 = vld [vmem:[#allocation87_spill] sm:$0xff] }
 0x2eb   :  { %v6877_v46 = vcombine.high %v12378_v29, %v12377_v27  ;;  %v12380_v13 = vld [vmem:[#allocation119_spill] sm:$0xff] }
 0x2ec   :  { %v6909_v62 = vcombine.high %v12380_v13, %v12379_v47 }
 0x2ed   :  { %3833 = vmatpush2.bf16.msra.mxu0 %v6826_v36  ;;  %3874 = vmatpush2.bf16.msra.mxu1 %v6858_v40  ;;  %v6876_v36 = vcombine.low %v12378_v29, %v12377_v27  ;;  %v6908_v40 = vcombine.low %v12380_v13, %v12379_v47  ;;  %v6894_v29 = vcombine.low %v12406_v1, %v12405_v59  ;;  %v12409_v47 = vld [vmem:[#allocation104_spill] sm:$0xff]  ;;  %v12410_v13 = vld [vmem:[#allocation103_spill] sm:$0xff] }
 0x2ee   :  { %3834 = vmatprep.subr.bf16.mxu0 %v6825_v15  ;;  %3875 = vmatprep.subr.bf16.mxu1 %v6857_v32  ;;  %v6875_v15 = vcombine.high %v12382_v45, %v12381_v41  ;;  %v6907_v32 = vcombine.high %v12384_v14, %v12383_v30 }
 0x2f1   :  { %3835 = vmatpush2.bf16.msra.mxu0 %v6824_v10  ;;  %3876 = vmatpush2.bf16.msra.mxu1 %v6856_v22  ;;  %v6874_v10 = vcombine.low %v12382_v45, %v12381_v41  ;;  %v6906_v22 = vcombine.low %v12384_v14, %v12383_v30  ;;  %v6892_v45 = vcombine.low %v12410_v13, %v12409_v47  ;;  %v12413_v30 = vld [vmem:[#allocation102_spill] sm:$0xff]  ;;  %v12414_v14 = vld [vmem:[#allocation101_spill] sm:$0xff] }
 0x2f2   :  { %3836 = vmatprep.subr.bf16.mxu0 %v6823_v23  ;;  %3877 = vmatprep.subr.bf16.mxu1 %v6855_v38  ;;  %v6873_v23 = vcombine.high %v12386_v7, %v12385_v6  ;;  %v6905_v38 = vcombine.high %v12388_v61, %v12387_v63  ;;  %v6890_v7 = vcombine.low %v12414_v14, %v12413_v30 }
 0x2f5   :  { %3837 = vmatpush2.bf16.msra.mxu0 %v6822_v55  ;;  %3878 = vmatpush2.bf16.msra.mxu1 %v6854_v4  ;;  %v12389_v55 = vld [vmem:[#allocation82_spill] sm:$0xff]  ;;  %v12390_v4 = vld [vmem:[#allocation81_spill] sm:$0xff] }
 0x2f6   :  { %3888 = vmatprep.subr.bf16.mxu0 %v6885_v52  ;;  %3929 = vmatprep.subr.bf16.mxu1 %v6917_v18  ;;  %v6871_v5 = vcombine.high %v12390_v4, %v12389_v55  ;;  %v12392_v52 = vld [vmem:[#allocation113_spill] sm:$0xff]  ;;  %v6870_v53 = vcombine.low %v12390_v4, %v12389_v55 }
 0x2f7   :  { %v6903_v37 = vcombine.high %v12392_v52, %v12391_v21  ;;  %v6902_v18 = vcombine.low %v12392_v52, %v12391_v21  ;;  %v12421_v21 = vld [vmem:[#allocation98_spill] sm:$0xff]  ;;  %v12422_v52 = vld [vmem:[#allocation97_spill] sm:$0xff] }
 0x2f8   :  { %3839 = vmatmul.mubr.bf16.vlgmr.msra.gmra.mxu0 %v3132_v54  ;;  %3880 = vmatmul.mubr.bf16.vlgmr.msra.gmra.mxu1 %v3154_v3  ;;  %v6904_v54 = vcombine.low %v12388_v61, %v12387_v63  ;;  %v12394_v3 = vld [vmem:[#allocation111_spill] sm:$0xff]  ;;  %v12417_v63 = vld [vmem:[#allocation100_spill] sm:$0xff] }
 0x2f9   :  { %3889 = vmatpush1.bf16.msra.mxu0 %v6884_v9  ;;  %3930 = vmatpush1.bf16.msra.mxu1 %v6916_v19  ;;  %v12395_v19 = vld [vmem:[#allocation144_spill] sm:$0xff]  ;;  %v12418_v61 = vld [vmem:[#allocation99_spill] sm:$0xff] }
 0x2fa   :  { %3890 = vmatprep.subr.bf16.mxu0 %v6883_v33  ;;  %3931 = vmatprep.subr.bf16.mxu1 %v6915_v17  ;;  %v6933_v50 = vcombine.high %v12396_v42, %v12395_v19  ;;  %v6932_v0 = vcombine.low %v12396_v42, %v12395_v19  ;;  %v12398_v17 = vld [vmem:[#allocation109_spill] sm:$0xff]  ;;  %v6888_v4 = vcombine.low %v12418_v61, %v12417_v63 }
 0x2fb   :  { %3920 = vmatprep.mubr.bf16.mxu0 %v3153_v2  ;;  %3961 = vmatprep.mubr.bf16.mxu1 %v3157_v34  ;;  %v12393_v2 = vld [vmem:[#allocation112_spill] sm:$0xff]  ;;  %v6899_v34 = vcombine.high %v12398_v17, %v12397_v48  ;;  %v6898_v44 = vcombine.low %v12398_v17, %v12397_v48 }
 0x2fc   :  { %v6901_v9 = vcombine.high %v12394_v3, %v12393_v2  ;;  %v6900_v33 = vcombine.low %v12394_v3, %v12393_v2  ;;  %v3139_v3 = vrot.slane %v10431_v31, %v10016_v8 }
 0x2fd   :  { %3891 = vmatpush1.bf16.msra.mxu0 %v6882_v35  ;;  %3932 = vmatpush1.bf16.msra.mxu1 %v6914_v51  ;;  %v12399_v35 = vld [vmem:[#allocation142_spill] sm:$0xff]  ;;  %v12400_v51 = vld [vmem:[#allocation141_spill] sm:$0xff] }
 0x2fe   :  { %3892 = vmatprep.subr.bf16.mxu0 %v6881_v12  ;;  %3933 = vmatprep.subr.bf16.mxu1 %v6913_v56  ;;  %v6931_v43 = vcombine.high %v12400_v51, %v12399_v35  ;;  %v6930_v12 = vcombine.low %v12400_v51, %v12399_v35  ;;  %v6897_v56 = vcombine.high %v12402_v49, %v12401_v20 }
 0x2ff   :  { %v3155_v42 = vcombine.high %v3139_v3, %v3139_v3 }
 0x301   :  { %3893 = vmatpush1.bf16.msra.mxu0 %v6880_v16  ;;  %3934 = vmatpush1.bf16.msra.mxu1 %v6912_v57  ;;  %v12403_v16 = vld [vmem:[#allocation140_spill] sm:$0xff]  ;;  %v12404_v57 = vld [vmem:[#allocation139_spill] sm:$0xff] }
 0x302   :  { %3894 = vmatprep.subr.bf16.mxu0 %v6879_v28  ;;  %3935 = vmatprep.subr.bf16.mxu1 %v6911_v60  ;;  %v6929_v24 = vcombine.high %v12404_v57, %v12403_v16  ;;  %v6928_v28 = vcombine.low %v12404_v57, %v12403_v16  ;;  %v6895_v60 = vcombine.high %v12406_v1, %v12405_v59 }
 0x305   :  { %3895 = vmatpush1.bf16.msra.mxu0 %v6878_v26  ;;  %3936 = vmatpush1.bf16.msra.mxu1 %v6910_v11  ;;  %v12407_v26 = vld [vmem:[#allocation138_spill] sm:$0xff]  ;;  %v12408_v11 = vld [vmem:[#allocation137_spill] sm:$0xff] }
 0x306   :  { %3896 = vmatprep.subr.bf16.mxu0 %v6877_v46  ;;  %3937 = vmatprep.subr.bf16.mxu1 %v6909_v62  ;;  %v6927_v27 = vcombine.high %v12408_v11, %v12407_v26  ;;  %v6926_v46 = vcombine.low %v12408_v11, %v12407_v26  ;;  %v6893_v62 = vcombine.high %v12410_v13, %v12409_v47 }
 0x309   :  { %3897 = vmatpush1.bf16.msra.mxu0 %v6876_v36  ;;  %3938 = vmatpush1.bf16.msra.mxu1 %v6908_v40  ;;  %v12411_v36 = vld [vmem:[#allocation136_spill] sm:$0xff]  ;;  %v12412_v40 = vld [vmem:[#allocation135_spill] sm:$0xff] }
 0x30a   :  { %3898 = vmatprep.subr.bf16.mxu0 %v6875_v15  ;;  %3939 = vmatprep.subr.bf16.mxu1 %v6907_v32  ;;  %v6925_v41 = vcombine.high %v12412_v40, %v12411_v36  ;;  %v6924_v15 = vcombine.low %v12412_v40, %v12411_v36  ;;  %v6891_v32 = vcombine.high %v12414_v14, %v12413_v30 }
 0x30d   :  { %3899 = vmatpush1.bf16.msra.mxu0 %v6874_v10  ;;  %3940 = vmatpush1.bf16.msra.mxu1 %v6906_v22  ;;  %v12415_v10 = vld [vmem:[#allocation134_spill] sm:$0xff]  ;;  %v12416_v22 = vld [vmem:[#allocation133_spill] sm:$0xff] }
 0x30e   :  { %3900 = vmatprep.subr.bf16.mxu0 %v6873_v23  ;;  %3941 = vmatprep.subr.bf16.mxu1 %v6905_v38  ;;  %v6923_v6 = vcombine.high %v12416_v22, %v12415_v10  ;;  %v6922_v23 = vcombine.low %v12416_v22, %v12415_v10  ;;  %v6889_v38 = vcombine.high %v12418_v61, %v12417_v63 }
 0x311   :  { %3901 = vmatpush1.bf16.msra.mxu0 %v6872_v39  ;;  %3942 = vmatpush1.bf16.msra.mxu1 %v6904_v54  ;;  %v12419_v39 = vld [vmem:[#allocation132_spill] sm:$0xff]  ;;  %v12420_v54 = vld [vmem:[#allocation131_spill] sm:$0xff] }
 0x312   :  { %3902 = vmatprep.subr.bf16.mxu0 %v6871_v5  ;;  %3943 = vmatprep.subr.bf16.mxu1 %v6903_v37  ;;  %v6921_v55 = vcombine.high %v12420_v54, %v12419_v39  ;;  %v6920_v5 = vcombine.low %v12420_v54, %v12419_v39  ;;  %v6887_v37 = vcombine.high %v12422_v52, %v12421_v21  ;;  %v12426_v39 = vld [vmem:[#allocation262_spill] sm:$0xff] }
 0x315   :  { %3903 = vmatpush1.bf16.msra.mxu0 %v6870_v53  ;;  %3944 = vmatpush1.bf16.msra.mxu1 %v6902_v18  ;;  %v12423_v53 = vld [vmem:[#allocation130_spill] sm:$0xff]  ;;  %v12424_v18 = vld [vmem:[#allocation129_spill] sm:$0xff] }
 0x316   :  { %3904 = vmatprep.subr.bf16.mxu0 %v6901_v9  ;;  %3945 = vmatprep.subr.bf16.mxu1 %v6933_v50  ;;  %v6919_v2 = vcombine.high %v12424_v18, %v12423_v53  ;;  %v6886_v9 = vcombine.low %v12422_v52, %v12421_v21  ;;  %v6918_v19 = vcombine.low %v12424_v18, %v12423_v53 }
 0x319   :  { %3905 = vmatpush2.bf16.msra.mxu0 %v6900_v33  ;;  %3946 = vmatpush2.bf16.msra.mxu1 %v6932_v0 }
 0x31a   :  { %3906 = vmatprep.subr.bf16.mxu0 %v6899_v34  ;;  %3947 = vmatprep.subr.bf16.mxu1 %v6931_v43 }
 0x31d   :  { %3907 = vmatpush2.bf16.msra.mxu0 %v6898_v44  ;;  %3948 = vmatpush2.bf16.msra.mxu1 %v6930_v12 }
 0x31e   :  { %3908 = vmatprep.subr.bf16.mxu0 %v6897_v56  ;;  %3949 = vmatprep.subr.bf16.mxu1 %v6929_v24 }
 0x321   :  { %3909 = vmatpush2.bf16.msra.mxu0 %v6896_v25  ;;  %3950 = vmatpush2.bf16.msra.mxu1 %v6928_v28 }
 0x322   :  { %3910 = vmatprep.subr.bf16.mxu0 %v6895_v60  ;;  %3951 = vmatprep.subr.bf16.mxu1 %v6927_v27 }
 0x325   :  { %3911 = vmatpush2.bf16.msra.mxu0 %v6894_v29  ;;  %3952 = vmatpush2.bf16.msra.mxu1 %v6926_v46 }
 0x326   :  { %3912 = vmatprep.subr.bf16.mxu0 %v6893_v62  ;;  %3953 = vmatprep.subr.bf16.mxu1 %v6925_v41 }
 0x329   :  { %3913 = vmatpush2.bf16.msra.mxu0 %v6892_v45  ;;  %3954 = vmatpush2.bf16.msra.mxu1 %v6924_v15 }
 0x32a   :  { %3914 = vmatprep.subr.bf16.mxu0 %v6891_v32  ;;  %3955 = vmatprep.subr.bf16.mxu1 %v6923_v6 }
 0x32d   :  { %3915 = vmatpush2.bf16.msra.mxu0 %v6890_v7  ;;  %3956 = vmatpush2.bf16.msra.mxu1 %v6922_v23 }
 0x32e   :  { %3916 = vmatprep.subr.bf16.mxu0 %v6889_v38  ;;  %3957 = vmatprep.subr.bf16.mxu1 %v6921_v55  ;;  %v12425_v38 = vld [vmem:[#allocation263_spill] sm:$0xff] }
 0x32f   :  { %v6949_v54 = vcombine.high %v12426_v39, %v12425_v38  ;;  %v12427_v55 = vld [vmem:[#allocation295_spill] sm:$0xff]  ;;  %v6948_v21 = vcombine.low %v12426_v39, %v12425_v38 }
 0x331   :  { %3917 = vmatpush2.bf16.msra.mxu0 %v6888_v4  ;;  %3958 = vmatpush2.bf16.msra.mxu1 %v6920_v5  ;;  %v12428_v4 = vld [vmem:[#allocation294_spill] sm:$0xff] }
 0x332   :  { %3918 = vmatprep.subr.bf16.mxu0 %v6887_v37  ;;  %3959 = vmatprep.subr.bf16.mxu1 %v6919_v2  ;;  %v6981_v5 = vcombine.high %v12428_v4, %v12427_v55  ;;  %v6980_v52 = vcombine.low %v12428_v4, %v12427_v55 }
 0x335   :  { %3919 = vmatpush2.bf16.msra.mxu0 %v6886_v9  ;;  %3960 = vmatpush2.bf16.msra.mxu1 %v6918_v19 }
 0x338   :  { %v2978_v50 = vpop.f32.mrf.mxu0  ;;  %v3019_v33 = vpop.f32.mrf.mxu1  ;;  %3921 = vmatmul.mubr.bf16.vlgmr.msra.gmra.mxu0 %v3139_v3  ;;  %3962 = vmatmul.mubr.bf16.vlgmr.msra.gmra.mxu1 %v3155_v42 }
 0x339   :  { %v3020_v0 = vadd.f32 %v3019_v33, %v2978_v50 }
 0x33a   :  { %v2980_v48 = vpop.f32.mrf.mxu0  ;;  %v3021_v31 = vpop.f32.mrf.mxu1 }
 0x33b   :  { %v3022_v17 = vadd.f32 %v3021_v31, %v2980_v48 }
 0x33c   :  { %v2982_v34 = vpop.f32.mrf.mxu0  ;;  %v3023_v35 = vpop.f32.mrf.mxu1 }
 0x33e   :  { %v2983_v51 = vpop.f32.mrf.mxu0  ;;  %v3024_v43 = vpop.f32.mrf.mxu1 }
 0x378   :  { %v3060_v44 = vpop.f32.mrf.mxu0  ;;  %v3101_v12 = vpop.f32.mrf.mxu1 }
 0x379   :  { %v3061_v20 = vadd.f32 %v3060_v44, %v3020_v0 }
 0x37a   :  { %v3062_v49 = vpop.f32.mrf.mxu0  ;;  %v3103_v56 = vpop.f32.mrf.mxu1 }
 0x37b   :  { %v3102_v16 = vadd.f32 %v3101_v12, %v3061_v20  ;;  %v3063_v57 = vadd.f32 %v3062_v49, %v3022_v17 }
 0x37c   :  { %v3064_v24 = vpop.f32.mrf.mxu0  ;;  %v3105_v25 = vpop.f32.mrf.mxu1 }
 0x37d   :  { %v3104_v28 = vadd.f32 %v3103_v56, %v3063_v57 }
 0x37e   :  { %v3065_v59 = vpop.f32.mrf.mxu0  ;;  %v3106_v1 = vpop.f32.mrf.mxu1 }
 0x3b8   :  { %v3840_v60 = vpop.f32.mrf.mxu0  ;;  %v3881_v26 = vpop.f32.mrf.mxu1 }
 0x3b9   :  { %v3841_v11 = vadd.f32 %v3840_v60, %v3102_v16 }
 0x3ba   :  { %v3842_v27 = vpop.f32.mrf.mxu0  ;;  %v3883_v29 = vpop.f32.mrf.mxu1 }
 0x3bb   :  { %v3882_v46 = vadd.f32 %v3881_v26, %v3841_v11  ;;  %v3843_v40 = vadd.f32 %v3842_v27, %v3104_v28 }
 0x3bc   :  { %v3844_v47 = vpop.f32.mrf.mxu0  ;;  %v3885_v13 = vpop.f32.mrf.mxu1 }
 0x3bd   :  { %v3884_v15 = vadd.f32 %v3883_v29, %v3843_v40 }
 0x3be   :  { %v3845_v62 = vpop.f32.mrf.mxu0  ;;  %v3886_v36 = vpop.f32.mrf.mxu1 }
 0x3f8   :  { %v3922_v41 = vpop.f32.mrf.mxu0  ;;  %v3963_v45 = vpop.f32.mrf.mxu1 }
 0x3f9   :  { %v3923_v30 = vadd.f32 %v3922_v41, %v3882_v46 }
 0x3fa   :  { %v3924_v14 = vpop.f32.mrf.mxu0  ;;  %v3965_v32 = vpop.f32.mrf.mxu1 }
 0x3fb   :  { %v10580_v10 = vadd.f32 %v3963_v45, %v3923_v30  ;;  %v3925_v22 = vadd.f32 %v3924_v14, %v3884_v15 }
 0x3fc   :  { %v3926_v6 = vpop.f32.mrf.mxu0  ;;  %v3967_v7 = vpop.f32.mrf.mxu1 }
 0x3fd   :  { %v10582_v23 = vadd.f32 %v3965_v32, %v3925_v22 }
 0x3fe   :  { %v3927_v63 = vpop.f32.mrf.mxu0  ;;  %v3968_v61 = vpop.f32.mrf.mxu1 }
 0x3ff   :  { %7315 = dma.done.wait [#allocation5 + $0x2], 16384 }
 0x400   :  { %7316 = vsyncadd [#allocation5 + $0x2], 4294950912  ;;  %v12429_v37 = vld [vmem:[#allocation261_spill] sm:$0xff]  ;;  %v12430_v53 = vld [vmem:[#allocation260_spill] sm:$0xff]  ;;  %4799 = vmatprep.subr.bf16.mxu0 %v6949_v54  ;;  %4840 = vmatprep.subr.bf16.mxu1 %v6981_v5 }
 0x401   :  { %v6947_v18 = vcombine.high %v12430_v53, %v12429_v37  ;;  %v12431_v2 = vld [vmem:[#allocation293_spill] sm:$0xff]  ;;  %v12432_v3 = vld [vmem:[#allocation292_spill] sm:$0xff]  ;;  %4800 = vmatpush1.bf16.msra.mxu0 %v6948_v21  ;;  %4841 = vmatpush1.bf16.msra.mxu1 %v6980_v52  ;;  %v6946_v19 = vcombine.low %v12430_v53, %v12429_v37  ;;  %v12433_v50 = vld [vmem:[#allocation259_spill] sm:$0xff] }
 0x402   :  { %v6979_v9 = vcombine.high %v12432_v3, %v12431_v2  ;;  %v6978_v42 = vcombine.low %v12432_v3, %v12431_v2  ;;  %v12434_v33 = vld [vmem:[#allocation258_spill] sm:$0xff]  ;;  %v12435_v48 = vld [vmem:[#allocation291_spill] sm:$0xff]  ;;  %v12437_v51 = vld [vmem:[#allocation257_spill] sm:$0xff] }
 0x403   :  { %4801 = vmatprep.subr.bf16.mxu0 %v6947_v18  ;;  %v6945_v0 = vcombine.high %v12434_v33, %v12433_v50  ;;  %v12436_v31 = vld [vmem:[#allocation290_spill] sm:$0xff]  ;;  %v6944_v34 = vcombine.low %v12434_v33, %v12433_v50  ;;  %v12438_v43 = vld [vmem:[#allocation256_spill] sm:$0xff]  ;;  %v12439_v12 = vld [vmem:[#allocation289_spill] sm:$0xff] }
 0x404   :  { %4842 = vmatprep.subr.bf16.mxu1 %v6979_v9  ;;  %v6977_v17 = vcombine.high %v12436_v31, %v12435_v48  ;;  %v6976_v35 = vcombine.low %v12436_v31, %v12435_v48  ;;  %v6943_v44 = vcombine.high %v12438_v43, %v12437_v51  ;;  %v12440_v20 = vld [vmem:[#allocation288_spill] sm:$0xff]  ;;  %v6942_v56 = vcombine.low %v12438_v43, %v12437_v51  ;;  %v12441_v57 = vld [vmem:[#allocation255_spill] sm:$0xff]  ;;  %v12442_v24 = vld [vmem:[#allocation254_spill] sm:$0xff] }
 0x405   :  { %4802 = vmatpush1.bf16.msra.mxu0 %v6946_v19  ;;  %4843 = vmatpush1.bf16.msra.mxu1 %v6978_v42  ;;  %v6975_v49 = vcombine.high %v12440_v20, %v12439_v12  ;;  %v6974_v16 = vcombine.low %v12440_v20, %v12439_v12  ;;  %v6941_v25 = vcombine.high %v12442_v24, %v12441_v57  ;;  %v12443_v28 = vld [vmem:[#allocation287_spill] sm:$0xff]  ;;  %v12444_v59 = vld [vmem:[#allocation286_spill] sm:$0xff]  ;;  %v12445_v29 = vld [vmem:[#allocation253_spill] sm:$0xff] }
 0x406   :  { %4803 = vmatprep.subr.bf16.mxu0 %v6945_v0  ;;  %4844 = vmatprep.subr.bf16.mxu1 %v6977_v17  ;;  %v6973_v1 = vcombine.high %v12444_v59, %v12443_v28  ;;  %v10620_v60 = vld [vmem:[#allocation3 + $0x10] sm:$0xff]  ;;  %v6940_v26 = vcombine.low %v12442_v24, %v12441_v57  ;;  %v6972_v11 = vcombine.low %v12444_v59, %v12443_v28  ;;  %v12446_v46 = vld [vmem:[#allocation252_spill] sm:$0xff]  ;;  %v12447_v13 = vld [vmem:[#allocation285_spill] sm:$0xff] }
 0x407   :  { %v10628_v27 = vrot.slane %v10620_v60, %v10016_v8  ;;  %v6939_v47 = vcombine.high %v12446_v46, %v12445_v29  ;;  %v12448_v62 = vld [vmem:[#allocation284_spill] sm:$0xff]  ;;  %v6938_v40 = vcombine.low %v12446_v46, %v12445_v29  ;;  %v12449_v15 = vld [vmem:[#allocation251_spill] sm:$0xff]  ;;  %v12450_v30 = vld [vmem:[#allocation250_spill] sm:$0xff] }
 0x408   :  { %v6971_v36 = vcombine.high %v12448_v62, %v12447_v13  ;;  %v6970_v41 = vcombine.low %v12448_v62, %v12447_v13  ;;  %v6937_v14 = vcombine.high %v12450_v30, %v12449_v15  ;;  %v12451_v32 = vld [vmem:[#allocation283_spill] sm:$0xff]  ;;  %v12452_v22 = vld [vmem:[#allocation282_spill] sm:$0xff]  ;;  %v6936_v63 = vcombine.low %v12450_v30, %v12449_v15  ;;  %v12453_v39 = vld [vmem:[#allocation249_spill] sm:$0xff] }
 0x409   :  { %4804 = vmatpush1.bf16.msra.mxu0 %v6944_v34  ;;  %4845 = vmatpush1.bf16.msra.mxu1 %v6976_v35  ;;  %v4117_v45 = vcombine.high %v10628_v27, %v10628_v27  ;;  %v6969_v6 = vcombine.high %v12452_v22, %v12451_v32  ;;  %v6968_v61 = vcombine.low %v12452_v22, %v12451_v32  ;;  %v12454_v54 = vld [vmem:[#allocation248_spill] sm:$0xff]  ;;  %v12455_v4 = vld [vmem:[#allocation281_spill] sm:$0xff]  ;;  %v12457_v53 = vld [vmem:[#allocation279_spill] sm:$0xff] }
 0x40a   :  { %4805 = vmatprep.subr.bf16.mxu0 %v6943_v44  ;;  %4846 = vmatprep.subr.bf16.mxu1 %v6975_v49  ;;  %v6935_v55 = vcombine.high %v12454_v54, %v12453_v39  ;;  %v12456_v5 = vld [vmem:[#allocation280_spill] sm:$0xff]  ;;  %v6934_v52 = vcombine.low %v12454_v54, %v12453_v39  ;;  %v12458_v18 = vld [vmem:[#allocation278_spill] sm:$0xff]  ;;  %v12459_v3 = vld [vmem:[#allocation311_spill] sm:$0xff] }
 0x40b   :  { %v4139_v7 = vrot.slane %v4117_v45, %v10016_v8  ;;  %v6967_v21 = vcombine.high %v12456_v5, %v12455_v4  ;;  %v6966_v37 = vcombine.low %v12456_v5, %v12455_v4  ;;  %v6965_v2 = vcombine.high %v12458_v18, %v12457_v53  ;;  %v12460_v9 = vld [vmem:[#allocation310_spill] sm:$0xff]  ;;  %v12461_v33 = vld [vmem:[#allocation277_spill] sm:$0xff]  ;;  %v12462_v0 = vld [vmem:[#allocation276_spill] sm:$0xff] }
 0x40c   :  { %v6997_v19 = vcombine.high %v12460_v9, %v12459_v3  ;;  %v6964_v42 = vcombine.low %v12458_v18, %v12457_v53  ;;  %v6996_v50 = vcombine.low %v12460_v9, %v12459_v3  ;;  %v6963_v48 = vcombine.high %v12462_v0, %v12461_v33  ;;  %v12463_v31 = vld [vmem:[#allocation309_spill] sm:$0xff]  ;;  %v12464_v17 = vld [vmem:[#allocation308_spill] sm:$0xff]  ;;  %v12465_v43 = vld [vmem:[#allocation275_spill] sm:$0xff] }
 0x40d   :  { %4806 = vmatpush1.bf16.msra.mxu0 %v6942_v56  ;;  %4847 = vmatpush1.bf16.msra.mxu1 %v6974_v16  ;;  %v4149_v38 = vcombine.high %v4139_v7, %v4139_v7  ;;  %v6995_v34 = vcombine.high %v12464_v17, %v12463_v31  ;;  %v6962_v35 = vcombine.low %v12462_v0, %v12461_v33  ;;  %v12466_v44 = vld [vmem:[#allocation274_spill] sm:$0xff]  ;;  %v12467_v20 = vld [vmem:[#allocation307_spill] sm:$0xff]  ;;  %v12469_v24 = vld [vmem:[#allocation273_spill] sm:$0xff] }
 0x40e   :  { %4807 = vmatprep.subr.bf16.mxu0 %v6941_v25  ;;  %4848 = vmatprep.subr.bf16.mxu1 %v6973_v1  ;;  %v6994_v51 = vcombine.low %v12464_v17, %v12463_v31  ;;  %v6961_v12 = vcombine.high %v12466_v44, %v12465_v43  ;;  %v12468_v49 = vld [vmem:[#allocation306_spill] sm:$0xff]  ;;  %v6960_v16 = vcombine.low %v12466_v44, %v12465_v43  ;;  %v12470_v25 = vld [vmem:[#allocation272_spill] sm:$0xff]  ;;  %v12471_v59 = vld [vmem:[#allocation305_spill] sm:$0xff] }
 0x40f   :  { %4831 = vmatprep.mubr.bf16.mxu0 %v4139_v7  ;;  %4872 = vmatprep.mubr.bf16.mxu1 %v4149_v38  ;;  %v6993_v56 = vcombine.high %v12468_v49, %v12467_v20  ;;  %v6992_v57 = vcombine.low %v12468_v49, %v12467_v20  ;;  %v6959_v28 = vcombine.high %v12470_v25, %v12469_v24  ;;  %v12472_v1 = vld [vmem:[#allocation304_spill] sm:$0xff]  ;;  %v12473_v46 = vld [vmem:[#allocation271_spill] sm:$0xff]  ;;  %v12477_v15 = vld [vmem:[#allocation269_spill] sm:$0xff] }
 0x410   :  { %v6990_v29 = vcombine.low %v12472_v1, %v12471_v59  ;;  %v12475_v62 = vld [vmem:[#allocation303_spill] sm:$0xff]  ;;  %v12478_v30 = vld [vmem:[#allocation268_spill] sm:$0xff]  ;;  %v12479_v32 = vld [vmem:[#allocation301_spill] sm:$0xff]  ;;  %v4102_v7 = vcombine.high %v10620_v60, %v10620_v60 }
 0x411   :  { %4808 = vmatpush1.bf16.msra.mxu0 %v6940_v26  ;;  %4849 = vmatpush1.bf16.msra.mxu1 %v6972_v11  ;;  %v6991_v26 = vcombine.high %v12472_v1, %v12471_v59  ;;  %v6958_v11 = vcombine.low %v12470_v25, %v12469_v24  ;;  %v12480_v22 = vld [vmem:[#allocation300_spill] sm:$0xff]  ;;  %v12481_v38 = vld [vmem:[#allocation267_spill] sm:$0xff]  ;;  %v12482_v39 = vld [vmem:[#allocation266_spill] sm:$0xff] }
 0x412   :  { %4809 = vmatprep.subr.bf16.mxu0 %v6939_v47  ;;  %4850 = vmatprep.subr.bf16.mxu1 %v6971_v36  ;;  %v12474_v47 = vld [vmem:[#allocation270_spill] sm:$0xff]  ;;  %v6953_v54 = vcombine.high %v12482_v39, %v12481_v38  ;;  %v6952_v60 = vcombine.low %v12482_v39, %v12481_v38  ;;  %v12486_v53 = vld [vmem:[#allocation264_spill] sm:$0xff]  ;;  %v12489_v0 = vld [vmem:[#allocation327_spill] sm:$0xff] }
 0x413   :  { %v6957_v13 = vcombine.high %v12474_v47, %v12473_v46  ;;  %v12476_v36 = vld [vmem:[#allocation302_spill] sm:$0xff]  ;;  %v12488_v3 = vld [vmem:[#allocation296_spill] sm:$0xff]  ;;  %v12491_v17 = vld [vmem:[#allocation359_spill] sm:$0xff] }
 0x414   :  { %v6988_v45 = vcombine.low %v12476_v36, %v12475_v62  ;;  %v12484_v4 = vld [vmem:[#allocation298_spill] sm:$0xff]  ;;  %v12494_v20 = vld [vmem:[#allocation324_spill] sm:$0xff]  ;;  %v12497_v59 = vld [vmem:[#allocation323_spill] sm:$0xff] }
 0x415   :  { %4810 = vmatpush1.bf16.msra.mxu0 %v6938_v40  ;;  %4851 = vmatpush1.bf16.msra.mxu1 %v6970_v41  ;;  %v6989_v40 = vcombine.high %v12476_v36, %v12475_v62  ;;  %v6956_v41 = vcombine.low %v12474_v47, %v12473_v46  ;;  %v12498_v1 = vld [vmem:[#allocation322_spill] sm:$0xff]  ;;  %v12501_v62 = vld [vmem:[#allocation321_spill] sm:$0xff]  ;;  %v12502_v36 = vld [vmem:[#allocation320_spill] sm:$0xff] }
 0x416   :  { %4811 = vmatprep.subr.bf16.mxu0 %v6937_v14  ;;  %4852 = vmatprep.subr.bf16.mxu1 %v6969_v6  ;;  %v6955_v14 = vcombine.high %v12478_v30, %v12477_v15  ;;  %v6987_v6 = vcombine.high %v12480_v22, %v12479_v32  ;;  %v7008_v47 = vcombine.low %v12498_v1, %v12497_v59 }
 0x419   :  { %4812 = vmatpush1.bf16.msra.mxu0 %v6936_v63  ;;  %4853 = vmatpush1.bf16.msra.mxu1 %v6968_v61  ;;  %v6954_v63 = vcombine.low %v12478_v30, %v12477_v15  ;;  %v6986_v61 = vcombine.low %v12480_v22, %v12479_v32  ;;  %v7006_v30 = vcombine.low %v12502_v36, %v12501_v62  ;;  %v12505_v32 = vld [vmem:[#allocation319_spill] sm:$0xff]  ;;  %v12506_v22 = vld [vmem:[#allocation318_spill] sm:$0xff] }
 0x41a   :  { %4813 = vmatprep.subr.bf16.mxu0 %v6935_v55  ;;  %4854 = vmatprep.subr.bf16.mxu1 %v6967_v21  ;;  %v12483_v55 = vld [vmem:[#allocation299_spill] sm:$0xff]  ;;  %v10712_v21 = vrot.slane %v4102_v7, %v10016_v8  ;;  %v7004_v38 = vcombine.low %v12506_v22, %v12505_v32 }
 0x41b   :  { %v6985_v5 = vcombine.high %v12484_v4, %v12483_v55  ;;  %v12507_v7 = vld [vmem:[#allocation351_spill] sm:$0xff] }
 0x41d   :  { %4814 = vmatpush1.bf16.msra.mxu0 %v6934_v52  ;;  %4855 = vmatpush1.bf16.msra.mxu1 %v6966_v37  ;;  %v6984_v52 = vcombine.low %v12484_v4, %v12483_v55  ;;  %v12485_v37 = vld [vmem:[#allocation265_spill] sm:$0xff]  ;;  %v12510_v55 = vld [vmem:[#allocation316_spill] sm:$0xff] }
 0x41e   :  { %4815 = vmatprep.subr.bf16.mxu0 %v6965_v2  ;;  %4856 = vmatprep.subr.bf16.mxu1 %v6997_v19  ;;  %v6951_v18 = vcombine.high %v12486_v53, %v12485_v37  ;;  %v12487_v2 = vld [vmem:[#allocation297_spill] sm:$0xff]  ;;  %v4118_v19 = vcombine.high %v10712_v21, %v10712_v21 }
 0x41f   :  { %v6983_v9 = vcombine.high %v12488_v3, %v12487_v2  ;;  %v6982_v33 = vcombine.low %v12488_v3, %v12487_v2  ;;  %v12514_v2 = vld [vmem:[#allocation314_spill] sm:$0xff] }
 0x421   :  { %4816 = vmatpush2.bf16.msra.mxu0 %v6964_v42  ;;  %4857 = vmatpush2.bf16.msra.mxu1 %v6996_v50  ;;  %v4125_v42 = vrot.slane %v10628_v27, %v10016_v8  ;;  %v6950_v50 = vcombine.low %v12486_v53, %v12485_v37 }
 0x422   :  { %4817 = vmatprep.subr.bf16.mxu0 %v6963_v48  ;;  %4858 = vmatprep.subr.bf16.mxu1 %v6995_v34  ;;  %v12490_v48 = vld [vmem:[#allocation326_spill] sm:$0xff] }
 0x423   :  { %v7013_v31 = vcombine.high %v12490_v48, %v12489_v0  ;;  %v12492_v34 = vld [vmem:[#allocation358_spill] sm:$0xff]  ;;  %v4147_v43 = vcombine.high %v4125_v42, %v4125_v42  ;;  %v7012_v27 = vcombine.low %v12490_v48, %v12489_v0  ;;  %v12517_v0 = vld [vmem:[#allocation313_spill] sm:$0xff]  ;;  %v12518_v48 = vld [vmem:[#allocation312_spill] sm:$0xff] }
 0x424   :  { %v7044_v44 = vcombine.low %v12492_v34, %v12491_v17 }
 0x425   :  { %4818 = vmatpush2.bf16.msra.mxu0 %v6962_v35  ;;  %4859 = vmatpush2.bf16.msra.mxu1 %v6994_v51  ;;  %v7045_v35 = vcombine.high %v12492_v34, %v12491_v17  ;;  %v4146_v51 = vrot.slane %v4118_v19, %v10016_v8  ;;  %v12516_v19 = vld [vmem:[#allocation346_spill] sm:$0xff]  ;;  %v12519_v17 = vld [vmem:[#allocation345_spill] sm:$0xff]  ;;  %v12520_v34 = vld [vmem:[#allocation344_spill] sm:$0xff] }
 0x426   :  { %4819 = vmatprep.subr.bf16.mxu0 %v6961_v12  ;;  %4860 = vmatprep.subr.bf16.mxu1 %v6993_v56  ;;  %v12493_v12 = vld [vmem:[#allocation325_spill] sm:$0xff] }
 0x427   :  { %v7011_v49 = vcombine.high %v12494_v20, %v12493_v12  ;;  %v12495_v56 = vld [vmem:[#allocation357_spill] sm:$0xff]  ;;  %v4150_v24 = vcombine.high %v4146_v51, %v4146_v51  ;;  %v7010_v25 = vcombine.low %v12494_v20, %v12493_v12  ;;  %v12523_v20 = vld [vmem:[#allocation375_spill] sm:$0xff] }
 0x429   :  { %4820 = vmatpush2.bf16.msra.mxu0 %v6960_v16  ;;  %4861 = vmatpush2.bf16.msra.mxu1 %v6992_v57  ;;  %v12496_v16 = vld [vmem:[#allocation356_spill] sm:$0xff] }
 0x42a   :  { %4821 = vmatprep.subr.bf16.mxu0 %v6959_v28  ;;  %4862 = vmatprep.subr.bf16.mxu1 %v6991_v26  ;;  %v7043_v57 = vcombine.high %v12496_v16, %v12495_v56  ;;  %v7042_v28 = vcombine.low %v12496_v16, %v12495_v56  ;;  %v7009_v26 = vcombine.high %v12498_v1, %v12497_v59  ;;  %v12527_v59 = vld [vmem:[#allocation373_spill] sm:$0xff]  ;;  %v12528_v1 = vld [vmem:[#allocation372_spill] sm:$0xff] }
 0x42d   :  { %4822 = vmatpush2.bf16.msra.mxu0 %v6958_v11  ;;  %4863 = vmatpush2.bf16.msra.mxu1 %v6990_v29  ;;  %v12499_v11 = vld [vmem:[#allocation355_spill] sm:$0xff]  ;;  %v12500_v29 = vld [vmem:[#allocation354_spill] sm:$0xff] }
 0x42e   :  { %4823 = vmatprep.subr.bf16.mxu0 %v6957_v13  ;;  %4864 = vmatprep.subr.bf16.mxu1 %v6989_v40  ;;  %v7041_v46 = vcombine.high %v12500_v29, %v12499_v11  ;;  %v7040_v13 = vcombine.low %v12500_v29, %v12499_v11  ;;  %v7007_v40 = vcombine.high %v12502_v36, %v12501_v62  ;;  %v12531_v62 = vld [vmem:[#allocation371_spill] sm:$0xff]  ;;  %v12532_v36 = vld [vmem:[#allocation370_spill] sm:$0xff] }
 0x42f   :  { %v7058_v29 = vcombine.low %v12528_v1, %v12527_v59 }
 0x431   :  { %4824 = vmatpush2.bf16.msra.mxu0 %v6956_v41  ;;  %4865 = vmatpush2.bf16.msra.mxu1 %v6988_v45  ;;  %v12503_v41 = vld [vmem:[#allocation353_spill] sm:$0xff]  ;;  %v12504_v45 = vld [vmem:[#allocation352_spill] sm:$0xff] }
 0x432   :  { %4825 = vmatprep.subr.bf16.mxu0 %v6955_v14  ;;  %4866 = vmatprep.subr.bf16.mxu1 %v6987_v6  ;;  %v7039_v15 = vcombine.high %v12504_v45, %v12503_v41  ;;  %v7038_v14 = vcombine.low %v12504_v45, %v12503_v41  ;;  %v7005_v6 = vcombine.high %v12506_v22, %v12505_v32  ;;  %v12535_v32 = vld [vmem:[#allocation369_spill] sm:$0xff]  ;;  %v12536_v22 = vld [vmem:[#allocation368_spill] sm:$0xff] }
 0x433   :  { %v7056_v45 = vcombine.low %v12532_v36, %v12531_v62 }
 0x435   :  { %4826 = vmatpush2.bf16.msra.mxu0 %v6954_v63  ;;  %4867 = vmatpush2.bf16.msra.mxu1 %v6986_v61  ;;  %v12508_v63 = vld [vmem:[#allocation350_spill] sm:$0xff] }
 0x436   :  { %4827 = vmatprep.subr.bf16.mxu0 %v6953_v54  ;;  %4868 = vmatprep.subr.bf16.mxu1 %v6985_v5  ;;  %v7037_v61 = vcombine.high %v12508_v63, %v12507_v7  ;;  %v7036_v39 = vcombine.low %v12508_v63, %v12507_v7  ;;  %v12509_v54 = vld [vmem:[#allocation317_spill] sm:$0xff]  ;;  %v7054_v63 = vcombine.low %v12536_v22, %v12535_v32 }
 0x437   :  { %v7003_v4 = vcombine.high %v12510_v55, %v12509_v54  ;;  %v12511_v5 = vld [vmem:[#allocation349_spill] sm:$0xff]  ;;  %v7002_v37 = vcombine.low %v12510_v55, %v12509_v54  ;;  %v12539_v54 = vld [vmem:[#allocation367_spill] sm:$0xff]  ;;  %v12540_v55 = vld [vmem:[#allocation366_spill] sm:$0xff] }
 0x439   :  { %4828 = vmatpush2.bf16.msra.mxu0 %v6952_v60  ;;  %4869 = vmatpush2.bf16.msra.mxu1 %v6984_v52  ;;  %v12512_v60 = vld [vmem:[#allocation348_spill] sm:$0xff] }
 0x43a   :  { %4829 = vmatprep.subr.bf16.mxu0 %v6951_v18  ;;  %4870 = vmatprep.subr.bf16.mxu1 %v6983_v9  ;;  %v7035_v52 = vcombine.high %v12512_v60, %v12511_v5  ;;  %v7034_v53 = vcombine.low %v12512_v60, %v12511_v5  ;;  %v12513_v18 = vld [vmem:[#allocation315_spill] sm:$0xff]  ;;  %v7052_v60 = vcombine.low %v12540_v55, %v12539_v54 }
 0x43b   :  { %v7001_v3 = vcombine.high %v12514_v2, %v12513_v18  ;;  %v12515_v9 = vld [vmem:[#allocation347_spill] sm:$0xff] }
 0x43d   :  { %4830 = vmatpush2.bf16.msra.mxu0 %v6950_v50  ;;  %4871 = vmatpush2.bf16.msra.mxu1 %v6982_v33  ;;  %v7000_v50 = vcombine.low %v12514_v2, %v12513_v18  ;;  %v7032_v33 = vcombine.low %v12516_v19, %v12515_v9  ;;  %v12543_v18 = vld [vmem:[#allocation365_spill] sm:$0xff]  ;;  %v12544_v2 = vld [vmem:[#allocation364_spill] sm:$0xff] }
 0x43e   :  { %4881 = vmatprep.subr.bf16.mxu0 %v7013_v31  ;;  %4922 = vmatprep.subr.bf16.mxu1 %v7045_v35  ;;  %v6999_v31 = vcombine.high %v12518_v48, %v12517_v0  ;;  %v7031_v35 = vcombine.high %v12520_v34, %v12519_v17 }
 0x440   :  { %4832 = vmatmul.mubr.bf16.vlgmr.msra.gmra.mxu0 %v4125_v42  ;;  %4873 = vmatmul.mubr.bf16.vlgmr.msra.gmra.mxu1 %v4147_v43  ;;  %v7033_v42 = vcombine.high %v12516_v19, %v12515_v9  ;;  %v7030_v43 = vcombine.low %v12520_v34, %v12519_v17  ;;  %v7050_v19 = vcombine.low %v12544_v2, %v12543_v18 }
 0x441   :  { %4882 = vmatpush1.bf16.msra.mxu0 %v7012_v27  ;;  %4923 = vmatpush1.bf16.msra.mxu1 %v7044_v44  ;;  %v12521_v27 = vld [vmem:[#allocation343_spill] sm:$0xff]  ;;  %v12522_v44 = vld [vmem:[#allocation342_spill] sm:$0xff] }
 0x442   :  { %4883 = vmatprep.subr.bf16.mxu0 %v7011_v49  ;;  %4924 = vmatprep.subr.bf16.mxu1 %v7043_v57  ;;  %v7029_v12 = vcombine.high %v12522_v44, %v12521_v27  ;;  %v12524_v49 = vld [vmem:[#allocation374_spill] sm:$0xff]  ;;  %v7028_v16 = vcombine.low %v12522_v44, %v12521_v27  ;;  %v12551_v27 = vld [vmem:[#allocation361_spill] sm:$0xff]  ;;  %v12552_v44 = vld [vmem:[#allocation360_spill] sm:$0xff] }
 0x443   :  { %4913 = vmatprep.mubr.bf16.mxu0 %v4146_v51  ;;  %4954 = vmatprep.mubr.bf16.mxu1 %v4150_v24  ;;  %v6998_v51 = vcombine.low %v12518_v48, %v12517_v0  ;;  %v7061_v56 = vcombine.high %v12524_v49, %v12523_v20  ;;  %v7060_v57 = vcombine.low %v12524_v49, %v12523_v20  ;;  %v12525_v24 = vld [vmem:[#allocation341_spill] sm:$0xff]  ;;  %v12547_v0 = vld [vmem:[#allocation363_spill] sm:$0xff]  ;;  %v12548_v48 = vld [vmem:[#allocation362_spill] sm:$0xff] }
 0x444   :  { %v7048_v34 = vcombine.low %v12548_v48, %v12547_v0  ;;  %v4132_v20 = vrot.slane %v10712_v21, %v10016_v8 }
 0x445   :  { %4884 = vmatpush1.bf16.msra.mxu0 %v7010_v25  ;;  %4925 = vmatpush1.bf16.msra.mxu1 %v7042_v28  ;;  %v12526_v25 = vld [vmem:[#allocation340_spill] sm:$0xff] }
 0x446   :  { %4885 = vmatprep.subr.bf16.mxu0 %v7009_v26  ;;  %4926 = vmatprep.subr.bf16.mxu1 %v7041_v46  ;;  %v7027_v28 = vcombine.high %v12526_v25, %v12525_v24  ;;  %v7059_v26 = vcombine.high %v12528_v1, %v12527_v59  ;;  %v7026_v11 = vcombine.low %v12526_v25, %v12525_v24  ;;  %v12529_v46 = vld [vmem:[#allocation339_spill] sm:$0xff] }
 0x449   :  { %4886 = vmatpush1.bf16.msra.mxu0 %v7008_v47  ;;  %4927 = vmatpush1.bf16.msra.mxu1 %v7040_v13  ;;  %v12530_v47 = vld [vmem:[#allocation338_spill] sm:$0xff] }
 0x44a   :  { %4887 = vmatprep.subr.bf16.mxu0 %v7007_v40  ;;  %4928 = vmatprep.subr.bf16.mxu1 %v7039_v15  ;;  %v7025_v13 = vcombine.high %v12530_v47, %v12529_v46  ;;  %v7057_v40 = vcombine.high %v12532_v36, %v12531_v62  ;;  %v7024_v41 = vcombine.low %v12530_v47, %v12529_v46  ;;  %v12533_v15 = vld [vmem:[#allocation337_spill] sm:$0xff] }
 0x44d   :  { %4888 = vmatpush1.bf16.msra.mxu0 %v7006_v30  ;;  %4929 = vmatpush1.bf16.msra.mxu1 %v7038_v14  ;;  %v12534_v30 = vld [vmem:[#allocation336_spill] sm:$0xff] }
 0x44e   :  { %4889 = vmatprep.subr.bf16.mxu0 %v7005_v6  ;;  %4930 = vmatprep.subr.bf16.mxu1 %v7037_v61  ;;  %v7023_v14 = vcombine.high %v12534_v30, %v12533_v15  ;;  %v7055_v6 = vcombine.high %v12536_v22, %v12535_v32  ;;  %v7022_v7 = vcombine.low %v12534_v30, %v12533_v15  ;;  %v12537_v61 = vld [vmem:[#allocation335_spill] sm:$0xff] }
 0x451   :  { %4890 = vmatpush1.bf16.msra.mxu0 %v7004_v38  ;;  %4931 = vmatpush1.bf16.msra.mxu1 %v7036_v39  ;;  %v12538_v38 = vld [vmem:[#allocation334_spill] sm:$0xff] }
 0x452   :  { %4891 = vmatprep.subr.bf16.mxu0 %v7003_v4  ;;  %4932 = vmatprep.subr.bf16.mxu1 %v7035_v52  ;;  %v7021_v39 = vcombine.high %v12538_v38, %v12537_v61  ;;  %v7053_v4 = vcombine.high %v12540_v55, %v12539_v54  ;;  %v7020_v5 = vcombine.low %v12538_v38, %v12537_v61  ;;  %v12541_v52 = vld [vmem:[#allocation333_spill] sm:$0xff]  ;;  %v12555_v38 = vld [vmem:[#allocation423_spill] sm:$0xff] }
 0x455   :  { %4892 = vmatpush1.bf16.msra.mxu0 %v7002_v37  ;;  %4933 = vmatpush1.bf16.msra.mxu1 %v7034_v53  ;;  %v12542_v37 = vld [vmem:[#allocation332_spill] sm:$0xff] }
 0x456   :  { %4893 = vmatprep.subr.bf16.mxu0 %v7001_v3  ;;  %4934 = vmatprep.subr.bf16.mxu1 %v7033_v42  ;;  %v7019_v53 = vcombine.high %v12542_v37, %v12541_v52  ;;  %v7051_v3 = vcombine.high %v12544_v2, %v12543_v18  ;;  %v7018_v9 = vcombine.low %v12542_v37, %v12541_v52  ;;  %v12545_v42 = vld [vmem:[#allocation331_spill] sm:$0xff] }
 0x459   :  { %4894 = vmatpush1.bf16.msra.mxu0 %v7000_v50  ;;  %4935 = vmatpush1.bf16.msra.mxu1 %v7032_v33  ;;  %v12546_v50 = vld [vmem:[#allocation330_spill] sm:$0xff] }
 0x45a   :  { %4895 = vmatprep.subr.bf16.mxu0 %v6999_v31  ;;  %4936 = vmatprep.subr.bf16.mxu1 %v7031_v35  ;;  %v7017_v33 = vcombine.high %v12546_v50, %v12545_v42  ;;  %v7049_v31 = vcombine.high %v12548_v48, %v12547_v0  ;;  %v7016_v17 = vcombine.low %v12546_v50, %v12545_v42  ;;  %v12549_v35 = vld [vmem:[#allocation329_spill] sm:$0xff] }
 0x45d   :  { %4896 = vmatpush1.bf16.msra.mxu0 %v6998_v51  ;;  %4937 = vmatpush1.bf16.msra.mxu1 %v7030_v43  ;;  %v12550_v51 = vld [vmem:[#allocation328_spill] sm:$0xff] }
 0x45e   :  { %4897 = vmatprep.subr.bf16.mxu0 %v7029_v12  ;;  %4938 = vmatprep.subr.bf16.mxu1 %v7061_v56  ;;  %v7015_v43 = vcombine.high %v12550_v51, %v12549_v35  ;;  %v7047_v12 = vcombine.high %v12552_v44, %v12551_v27  ;;  %v7014_v49 = vcombine.low %v12550_v51, %v12549_v35 }
 0x45f   :  { %v7046_v56 = vcombine.low %v12552_v44, %v12551_v27 }
 0x461   :  { %4898 = vmatpush2.bf16.msra.mxu0 %v7028_v16  ;;  %4939 = vmatpush2.bf16.msra.mxu1 %v7060_v57  ;;  %v4148_v16 = vcombine.high %v4132_v20, %v4132_v20 }
 0x462   :  { %4899 = vmatprep.subr.bf16.mxu0 %v7027_v28  ;;  %4940 = vmatprep.subr.bf16.mxu1 %v7059_v26 }
 0x465   :  { %4900 = vmatpush2.bf16.msra.mxu0 %v7026_v11  ;;  %4941 = vmatpush2.bf16.msra.mxu1 %v7058_v29 }
 0x466   :  { %4901 = vmatprep.subr.bf16.mxu0 %v7025_v13  ;;  %4942 = vmatprep.subr.bf16.mxu1 %v7057_v40 }
 0x469   :  { %4902 = vmatpush2.bf16.msra.mxu0 %v7024_v41  ;;  %4943 = vmatpush2.bf16.msra.mxu1 %v7056_v45 }
 0x46a   :  { %4903 = vmatprep.subr.bf16.mxu0 %v7023_v14  ;;  %4944 = vmatprep.subr.bf16.mxu1 %v7055_v6 }
 0x46d   :  { %4904 = vmatpush2.bf16.msra.mxu0 %v7022_v7  ;;  %4945 = vmatpush2.bf16.msra.mxu1 %v7054_v63  ;;  %v12553_v7 = vld [vmem:[#allocation391_spill] sm:$0xff]  ;;  %v12554_v63 = vld [vmem:[#allocation390_spill] sm:$0xff] }
 0x46e   :  { %4905 = vmatprep.subr.bf16.mxu0 %v7021_v39  ;;  %4946 = vmatprep.subr.bf16.mxu1 %v7053_v4  ;;  %v7077_v61 = vcombine.high %v12554_v63, %v12553_v7  ;;  %v12556_v39 = vld [vmem:[#allocation422_spill] sm:$0xff]  ;;  %v7076_v55 = vcombine.low %v12554_v63, %v12553_v7 }
 0x46f   :  { %v7109_v54 = vcombine.high %v12556_v39, %v12555_v38  ;;  %v7108_v4 = vcombine.low %v12556_v39, %v12555_v38 }
 0x471   :  { %4906 = vmatpush2.bf16.msra.mxu0 %v7020_v5  ;;  %4947 = vmatpush2.bf16.msra.mxu1 %v7052_v60 }
 0x472   :  { %4907 = vmatprep.subr.bf16.mxu0 %v7019_v53  ;;  %4948 = vmatprep.subr.bf16.mxu1 %v7051_v3 }
 0x475   :  { %4908 = vmatpush2.bf16.msra.mxu0 %v7018_v9  ;;  %4949 = vmatpush2.bf16.msra.mxu1 %v7050_v19 }
 0x476   :  { %4909 = vmatprep.subr.bf16.mxu0 %v7017_v33  ;;  %4950 = vmatprep.subr.bf16.mxu1 %v7049_v31 }
 0x479   :  { %4910 = vmatpush2.bf16.msra.mxu0 %v7016_v17  ;;  %4951 = vmatpush2.bf16.msra.mxu1 %v7048_v34 }
 0x47a   :  { %4911 = vmatprep.subr.bf16.mxu0 %v7015_v43  ;;  %4952 = vmatprep.subr.bf16.mxu1 %v7047_v12 }
 0x47d   :  { %4912 = vmatpush2.bf16.msra.mxu0 %v7014_v49  ;;  %4953 = vmatpush2.bf16.msra.mxu1 %v7046_v56 }
 0x480   :  { %4914 = vmatmul.mubr.bf16.vlgmr.msra.gmra.mxu0 %v4132_v20  ;;  %4955 = vmatmul.mubr.bf16.vlgmr.msra.gmra.mxu1 %v4148_v16 }
 0x500   :  { %v4833_v57 = vpop.f32.mrf.mxu0  ;;  %v4874_v24 = vpop.f32.mrf.mxu1 }
 0x501   :  { %v4875_v25 = vadd.f32 %v4874_v24, %v4833_v57 }
 0x502   :  { %v4835_v28 = vpop.f32.mrf.mxu0  ;;  %v4876_v21 = vpop.f32.mrf.mxu1 }
 0x503   :  { %v4877_v47 = vadd.f32 %v4876_v21, %v4835_v28 }
 0x504   :  { %v4837_v59 = vpop.f32.mrf.mxu0  ;;  %v4878_v1 = vpop.f32.mrf.mxu1 }
 0x506   :  { %v4838_v26 = vpop.f32.mrf.mxu0  ;;  %v4879_v11 = vpop.f32.mrf.mxu1 }
 0x540   :  { %v4915_v29 = vpop.f32.mrf.mxu0  ;;  %v4956_v46 = vpop.f32.mrf.mxu1 }
 0x541   :  { %v4916_v13 = vadd.f32 %v4915_v29, %v4875_v25 }
 0x542   :  { %v4917_v62 = vpop.f32.mrf.mxu0  ;;  %v4958_v36 = vpop.f32.mrf.mxu1 }
 0x543   :  { %v4957_v40 = vadd.f32 %v4956_v46, %v4916_v13  ;;  %v4918_v41 = vadd.f32 %v4917_v62, %v4877_v47 }
 0x544   :  { %v4919_v45 = vpop.f32.mrf.mxu0  ;;  %v4960_v15 = vpop.f32.mrf.mxu1 }
 0x545   :  { %v10862_v30 = vadd.f32 %v4957_v40, %v10580_v10  ;;  %v4959_v14 = vadd.f32 %v4958_v36, %v4918_v41 }
 0x546   :  { %v4920_v32 = vpop.f32.mrf.mxu0  ;;  %v4961_v22 = vpop.f32.mrf.mxu1 }
 0x547   :  { %v10865_v6 = vadd.f32 %v4959_v14, %v10582_v23 }
 0x548   :  { %7317 = dma.done.wait [#allocation5 + $0x3], 16384 }
 0x549   :  { %7318 = vsyncadd [#allocation5 + $0x3], 4294950912  ;;  %v12557_v10 = vld [vmem:[#allocation389_spill] sm:$0xff]  ;;  %v12558_v5 = vld [vmem:[#allocation388_spill] sm:$0xff]  ;;  %5794 = vmatprep.subr.bf16.mxu0 %v7077_v61  ;;  %5835 = vmatprep.subr.bf16.mxu1 %v7109_v54  ;;  %s7323_s3 = smov [#allocation6]  }
 0x54a   :  { %v7075_v60 = vcombine.high %v12558_v5, %v12557_v10  ;;  %v12559_v52 = vld [vmem:[#allocation421_spill] sm:$0xff]  ;;  %v12560_v23 = vld [vmem:[#allocation420_spill] sm:$0xff]  ;;  %5795 = vmatpush1.bf16.msra.mxu0 %v7076_v55  ;;  %5836 = vmatpush1.bf16.msra.mxu1 %v7108_v4  ;;  %v7074_v53 = vcombine.low %v12558_v5, %v12557_v10  ;;  %v12561_v2 = vld [vmem:[#allocation387_spill] sm:$0xff]  ;;  %s6160_s19 = sshll.u32 %s7323_s3, 4  ;;  %s6161_s19 = int_to_ptr.vmem [resolvable:$true] %s6160_s19 }
 0x54b   :  { %v7107_v37 = vcombine.high %v12560_v23, %v12559_v52  ;;  %v7106_v18 = vcombine.low %v12560_v23, %v12559_v52  ;;  %v12562_v3 = vld [vmem:[#allocation386_spill] sm:$0xff]  ;;  %v12563_v19 = vld [vmem:[#allocation419_spill] sm:$0xff]  ;;  %v12565_v48 = vld [vmem:[#allocation385_spill] sm:$0xff]  ;;  %s7291_s20 = scalar_lea.vmem %s6161_s19, 32  ;;  %p7296_p1 = scmp.lt.s32.totalorder %s6161_s19, %s6161_s19 }
 0x54c   :  { %5796 = vmatprep.subr.bf16.mxu0 %v7075_v60  ;;  %v7073_v9 = vcombine.high %v12562_v3, %v12561_v2  ;;  %v12564_v42 = vld [vmem:[#allocation418_spill] sm:$0xff]  ;;  %v7072_v33 = vcombine.low %v12562_v3, %v12561_v2  ;;  %v12566_v31 = vld [vmem:[#allocation384_spill] sm:$0xff]  ;;  %v12567_v34 = vld [vmem:[#allocation417_spill] sm:$0xff]  ;;  %p7292_p0 = scmp.ne.s32.totalorder %s6161_s19, %s7291_s20  ;;  %p7297_p2 = scmp.lt.s32.totalorder %s7291_s20, %s7291_s20 }
 0x54d   :  { %5837 = vmatprep.subr.bf16.mxu1 %v7107_v37  ;;  %v7105_v50 = vcombine.high %v12564_v42, %v12563_v19  ;;  %v7104_v0 = vcombine.low %v12564_v42, %v12563_v19  ;;  %v7071_v17 = vcombine.high %v12566_v31, %v12565_v48  ;;  %v12568_v35 = vld [vmem:[#allocation416_spill] sm:$0xff]  ;;  %v7070_v43 = vcombine.low %v12566_v31, %v12565_v48  ;;  %v12569_v44 = vld [vmem:[#allocation383_spill] sm:$0xff]  ;;  %v12570_v12 = vld [vmem:[#allocation382_spill] sm:$0xff] }
 0x54e   :  { %5797 = vmatpush1.bf16.msra.mxu0 %v7074_v53  ;;  %5838 = vmatpush1.bf16.msra.mxu1 %v7106_v18  ;;  %v7103_v51 = vcombine.high %v12568_v35, %v12567_v34  ;;  %v7102_v27 = vcombine.low %v12568_v35, %v12567_v34  ;;  %v7069_v20 = vcombine.high %v12570_v12, %v12569_v44  ;;  %v12571_v49 = vld [vmem:[#allocation415_spill] sm:$0xff]  ;;  %v12572_v56 = vld [vmem:[#allocation414_spill] sm:$0xff]  ;;  %v12573_v28 = vld [vmem:[#allocation381_spill] sm:$0xff]  ;;  %p7298_p3 = por %p7297_p2, %p7296_p1 }
 0x54f   :  { %5798 = vmatprep.subr.bf16.mxu0 %v7073_v9  ;;  %5839 = vmatprep.subr.bf16.mxu1 %v7105_v50  ;;  %v7101_v16 = vcombine.high %v12572_v56, %v12571_v49  ;;  %v10903_v57 = vld [vmem:[#allocation3 + $0x18] sm:$0xff]  ;;  %v7068_v24 = vcombine.low %v12570_v12, %v12569_v44  ;;  %v7100_v25 = vcombine.low %v12572_v56, %v12571_v49  ;;  %v12575_v1 = vld [vmem:[#allocation413_spill] sm:$0xff]  ;;  %v12578_v62 = vld [vmem:[#allocation378_spill] sm:$0xff] }
 0x550   :  { %v12574_v21 = vld [vmem:[#allocation380_spill] sm:$0xff]  ;;  %v10915_v29 = vrot.slane %v10903_v57, %v10016_v8  ;;  %v12577_v13 = vld [vmem:[#allocation379_spill] sm:$0xff]  ;;  %v12580_v41 = vld [vmem:[#allocation410_spill] sm:$0xff]  ;;  %p7299_p4 = pnand %p7298_p3, %p7292_p0 }
 0x551   :  { %v7067_v59 = vcombine.high %v12574_v21, %v12573_v28  ;;  %v12576_v26 = vld [vmem:[#allocation412_spill] sm:$0xff]  ;;  %v7066_v46 = vcombine.low %v12574_v21, %v12573_v28  ;;  %v7065_v36 = vcombine.high %v12578_v62, %v12577_v13  ;;  %v12579_v40 = vld [vmem:[#allocation411_spill] sm:$0xff]  ;;  %v7064_v32 = vcombine.low %v12578_v62, %v12577_v13  ;;  %v12581_v7 = vld [vmem:[#allocation377_spill] sm:$0xff] }
 0x552   :  { %5799 = vmatpush1.bf16.msra.mxu0 %v7072_v33  ;;  %5840 = vmatpush1.bf16.msra.mxu1 %v7104_v0  ;;  %v7099_v11 = vcombine.high %v12576_v26, %v12575_v1  ;;  %v7098_v47 = vcombine.low %v12576_v26, %v12575_v1  ;;  %v7097_v45 = vcombine.high %v12580_v41, %v12579_v40  ;;  %v12582_v63 = vld [vmem:[#allocation376_spill] sm:$0xff]  ;;  %v12583_v38 = vld [vmem:[#allocation409_spill] sm:$0xff]  ;;  %v12585_v5 = vld [vmem:[#allocation407_spill] sm:$0xff] }
 0x553   :  { %5800 = vmatprep.subr.bf16.mxu0 %v7071_v17  ;;  %5841 = vmatprep.subr.bf16.mxu1 %v7103_v51  ;;  %v5112_v15 = vcombine.high %v10915_v29, %v10915_v29  ;;  %v7096_v22 = vcombine.low %v12580_v41, %v12579_v40  ;;  %v7063_v61 = vcombine.high %v12582_v63, %v12581_v7  ;;  %v12584_v39 = vld [vmem:[#allocation408_spill] sm:$0xff]  ;;  %v12586_v60 = vld [vmem:[#allocation406_spill] sm:$0xff]  ;;  %v12587_v23 = vld [vmem:[#allocation439_spill] sm:$0xff] }
 0x554   :  { %v7095_v54 = vcombine.high %v12584_v39, %v12583_v38  ;;  %v7062_v4 = vcombine.low %v12582_v63, %v12581_v7  ;;  %v7094_v10 = vcombine.low %v12584_v39, %v12583_v38  ;;  %v7093_v52 = vcombine.high %v12586_v60, %v12585_v5  ;;  %v12588_v37 = vld [vmem:[#allocation438_spill] sm:$0xff]  ;;  %v12589_v3 = vld [vmem:[#allocation405_spill] sm:$0xff]  ;;  %v12590_v9 = vld [vmem:[#allocation404_spill] sm:$0xff] }
 0x555   :  { %v5134_v14 = vrot.slane %v5112_v15, %v10016_v8  ;;  %v7125_v53 = vcombine.high %v12588_v37, %v12587_v23  ;;  %v7092_v18 = vcombine.low %v12586_v60, %v12585_v5  ;;  %v7124_v2 = vcombine.low %v12588_v37, %v12587_v23  ;;  %v12591_v42 = vld [vmem:[#allocation437_spill] sm:$0xff]  ;;  %v12592_v50 = vld [vmem:[#allocation436_spill] sm:$0xff]  ;;  %v12593_v31 = vld [vmem:[#allocation403_spill] sm:$0xff] }
 0x556   :  { %5801 = vmatpush1.bf16.msra.mxu0 %v7070_v43  ;;  %5842 = vmatpush1.bf16.msra.mxu1 %v7102_v27  ;;  %v7091_v19 = vcombine.high %v12590_v9, %v12589_v3  ;;  %v7123_v33 = vcombine.high %v12592_v50, %v12591_v42  ;;  %v7090_v0 = vcombine.low %v12590_v9, %v12589_v3  ;;  %v12594_v17 = vld [vmem:[#allocation402_spill] sm:$0xff]  ;;  %v12595_v35 = vld [vmem:[#allocation435_spill] sm:$0xff]  ;;  %v12597_v12 = vld [vmem:[#allocation401_spill] sm:$0xff] }
 0x557   :  { %5802 = vmatprep.subr.bf16.mxu0 %v7069_v20  ;;  %5843 = vmatprep.subr.bf16.mxu1 %v7101_v16  ;;  %v5144_v55 = vcombine.high %v5134_v14, %v5134_v14  ;;  %v7122_v48 = vcombine.low %v12592_v50, %v12591_v42  ;;  %v7089_v34 = vcombine.high %v12594_v17, %v12593_v31  ;;  %v12596_v51 = vld [vmem:[#allocation434_spill] sm:$0xff]  ;;  %v12598_v20 = vld [vmem:[#allocation400_spill] sm:$0xff]  ;;  %v12599_v56 = vld [vmem:[#allocation433_spill] sm:$0xff] }
 0x558   :  { %5826 = vmatprep.mubr.bf16.mxu0 %v5134_v14  ;;  %v7121_v43 = vcombine.high %v12596_v51, %v12595_v35  ;;  %v7088_v27 = vcombine.low %v12594_v17, %v12593_v31  ;;  %v7120_v44 = vcombine.low %v12596_v51, %v12595_v35  ;;  %v7087_v49 = vcombine.high %v12598_v20, %v12597_v12  ;;  %v12600_v16 = vld [vmem:[#allocation432_spill] sm:$0xff]  ;;  %v12601_v21 = vld [vmem:[#allocation399_spill] sm:$0xff]  ;;  %v12605_v62 = vld [vmem:[#allocation397_spill] sm:$0xff] }
 0x559   :  { %5867 = vmatprep.mubr.bf16.mxu1 %v5144_v55  ;;  %v7118_v28 = vcombine.low %v12600_v16, %v12599_v56  ;;  %v12603_v26 = vld [vmem:[#allocation431_spill] sm:$0xff]  ;;  %v12607_v41 = vld [vmem:[#allocation429_spill] sm:$0xff]  ;;  %v5097_v14 = vcombine.high %v10903_v57, %v10903_v57  ;;  %v12610_v63 = vld [vmem:[#allocation394_spill] sm:$0xff] }
 0x55a   :  { %5803 = vmatpush1.bf16.msra.mxu0 %v7068_v24  ;;  %5844 = vmatpush1.bf16.msra.mxu1 %v7100_v25  ;;  %v7119_v24 = vcombine.high %v12600_v16, %v12599_v56  ;;  %v7086_v25 = vcombine.low %v12598_v20, %v12597_v12  ;;  %v12609_v7 = vld [vmem:[#allocation395_spill] sm:$0xff]  ;;  %v12612_v39 = vld [vmem:[#allocation426_spill] sm:$0xff]  ;;  %v12614_v5 = vld [vmem:[#allocation392_spill] sm:$0xff] }
 0x55b   :  { %5804 = vmatprep.subr.bf16.mxu0 %v7067_v59  ;;  %5845 = vmatprep.subr.bf16.mxu1 %v7099_v11  ;;  %v12602_v59 = vld [vmem:[#allocation398_spill] sm:$0xff]  ;;  %v12611_v38 = vld [vmem:[#allocation427_spill] sm:$0xff]  ;;  %v10995_v55 = vrot.slane %v5097_v14, %v10016_v8  ;;  %v7080_v57 = vcombine.low %v12610_v63, %v12609_v7  ;;  %v12616_v23 = vld [vmem:[#allocation424_spill] sm:$0xff] }
 0x55c   :  { %v7085_v1 = vcombine.high %v12602_v59, %v12601_v21  ;;  %v12604_v11 = vld [vmem:[#allocation430_spill] sm:$0xff]  ;;  %v12617_v9 = vld [vmem:[#allocation455_spill] sm:$0xff]  ;;  %v12622_v35 = vld [vmem:[#allocation452_spill] sm:$0xff] }
 0x55d   :  { %v7116_v13 = vcombine.low %v12604_v11, %v12603_v26  ;;  %v12619_v50 = vld [vmem:[#allocation487_spill] sm:$0xff]  ;;  %v12626_v16 = vld [vmem:[#allocation450_spill] sm:$0xff] }
 0x55e   :  { %5805 = vmatpush1.bf16.msra.mxu0 %v7066_v46  ;;  %5846 = vmatpush1.bf16.msra.mxu1 %v7098_v47  ;;  %v7117_v46 = vcombine.high %v12604_v11, %v12603_v26  ;;  %v7084_v47 = vcombine.low %v12602_v59, %v12601_v21  ;;  %v12625_v56 = vld [vmem:[#allocation451_spill] sm:$0xff]  ;;  %v12629_v26 = vld [vmem:[#allocation449_spill] sm:$0xff]  ;;  %v12630_v11 = vld [vmem:[#allocation448_spill] sm:$0xff] }
 0x55f   :  { %5806 = vmatprep.subr.bf16.mxu0 %v7065_v36  ;;  %5847 = vmatprep.subr.bf16.mxu1 %v7097_v45  ;;  %v12606_v36 = vld [vmem:[#allocation396_spill] sm:$0xff]  ;;  %v7136_v59 = vcombine.low %v12626_v16, %v12625_v56  ;;  %v12635_v14 = vld [vmem:[#allocation479_spill] sm:$0xff] }
 0x560   :  { %v7083_v40 = vcombine.high %v12606_v36, %v12605_v62  ;;  %v12608_v45 = vld [vmem:[#allocation428_spill] sm:$0xff] }
 0x561   :  { %v7115_v15 = vcombine.high %v12608_v45, %v12607_v41 }
 0x562   :  { %5807 = vmatpush1.bf16.msra.mxu0 %v7064_v32  ;;  %5848 = vmatpush1.bf16.msra.mxu1 %v7096_v22  ;;  %v7082_v32 = vcombine.low %v12606_v36, %v12605_v62  ;;  %v7114_v22 = vcombine.low %v12608_v45, %v12607_v41  ;;  %v7134_v36 = vcombine.low %v12630_v11, %v12629_v26  ;;  %v12633_v41 = vld [vmem:[#allocation447_spill] sm:$0xff]  ;;  %v12634_v45 = vld [vmem:[#allocation446_spill] sm:$0xff] }
 0x563   :  { %5808 = vmatprep.subr.bf16.mxu0 %v7063_v61  ;;  %5849 = vmatprep.subr.bf16.mxu1 %v7095_v54  ;;  %v7081_v61 = vcombine.high %v12610_v63, %v12609_v7  ;;  %v7113_v54 = vcombine.high %v12612_v39, %v12611_v38  ;;  %v7132_v7 = vcombine.low %v12634_v45, %v12633_v41 }
 0x566   :  { %5809 = vmatpush1.bf16.msra.mxu0 %v7062_v4  ;;  %5850 = vmatpush1.bf16.msra.mxu1 %v7094_v10  ;;  %v7112_v4 = vcombine.low %v12612_v39, %v12611_v38  ;;  %v12613_v10 = vld [vmem:[#allocation393_spill] sm:$0xff]  ;;  %v12638_v38 = vld [vmem:[#allocation444_spill] sm:$0xff] }
 0x567   :  { %5810 = vmatprep.subr.bf16.mxu0 %v7093_v52  ;;  %5851 = vmatprep.subr.bf16.mxu1 %v7125_v53  ;;  %v7079_v60 = vcombine.high %v12614_v5, %v12613_v10  ;;  %v12615_v52 = vld [vmem:[#allocation425_spill] sm:$0xff]  ;;  %v5113_v53 = vcombine.high %v10995_v55, %v10995_v55 }
 0x568   :  { %v7111_v37 = vcombine.high %v12616_v23, %v12615_v52  ;;  %v7110_v3 = vcombine.low %v12616_v23, %v12615_v52  ;;  %v12642_v52 = vld [vmem:[#allocation442_spill] sm:$0xff] }
 0x56a   :  { %5811 = vmatpush2.bf16.msra.mxu0 %v7092_v18  ;;  %5852 = vmatpush2.bf16.msra.mxu1 %v7124_v2  ;;  %v5120_v18 = vrot.slane %v10915_v29, %v10016_v8  ;;  %v7078_v2 = vcombine.low %v12614_v5, %v12613_v10 }
 0x56b   :  { %5812 = vmatprep.subr.bf16.mxu0 %v7091_v19  ;;  %5853 = vmatprep.subr.bf16.mxu1 %v7123_v33  ;;  %v12618_v19 = vld [vmem:[#allocation454_spill] sm:$0xff] }
 0x56c   :  { %v7141_v42 = vcombine.high %v12618_v19, %v12617_v9  ;;  %v12620_v33 = vld [vmem:[#allocation486_spill] sm:$0xff]  ;;  %v5142_v31 = vcombine.high %v5120_v18, %v5120_v18  ;;  %v7140_v29 = vcombine.low %v12618_v19, %v12617_v9  ;;  %v12645_v9 = vld [vmem:[#allocation441_spill] sm:$0xff]  ;;  %v12646_v19 = vld [vmem:[#allocation440_spill] sm:$0xff] }
 0x56d   :  { %v7172_v17 = vcombine.low %v12620_v33, %v12619_v50 }
 0x56e   :  { %5813 = vmatpush2.bf16.msra.mxu0 %v7090_v0  ;;  %5854 = vmatpush2.bf16.msra.mxu1 %v7122_v48  ;;  %v7173_v0 = vcombine.high %v12620_v33, %v12619_v50  ;;  %v5141_v48 = vrot.slane %v5113_v53, %v10016_v8  ;;  %v12644_v53 = vld [vmem:[#allocation474_spill] sm:$0xff]  ;;  %v12647_v50 = vld [vmem:[#allocation473_spill] sm:$0xff]  ;;  %v12648_v33 = vld [vmem:[#allocation472_spill] sm:$0xff] }
 0x56f   :  { %5814 = vmatprep.subr.bf16.mxu0 %v7089_v34  ;;  %5855 = vmatprep.subr.bf16.mxu1 %v7121_v43  ;;  %v12621_v34 = vld [vmem:[#allocation453_spill] sm:$0xff] }
 0x570   :  { %v7139_v51 = vcombine.high %v12622_v35, %v12621_v34  ;;  %v12623_v43 = vld [vmem:[#allocation485_spill] sm:$0xff]  ;;  %v5145_v12 = vcombine.high %v5141_v48, %v5141_v48  ;;  %v7138_v20 = vcombine.low %v12622_v35, %v12621_v34  ;;  %v12651_v35 = vld [vmem:[#allocation503_spill] sm:$0xff] }
 0x572   :  { %5815 = vmatpush2.bf16.msra.mxu0 %v7088_v27  ;;  %5856 = vmatpush2.bf16.msra.mxu1 %v7120_v44  ;;  %v12624_v27 = vld [vmem:[#allocation484_spill] sm:$0xff] }
 0x573   :  { %5816 = vmatprep.subr.bf16.mxu0 %v7087_v49  ;;  %5857 = vmatprep.subr.bf16.mxu1 %v7119_v24  ;;  %v7171_v44 = vcombine.high %v12624_v27, %v12623_v43  ;;  %v7170_v49 = vcombine.low %v12624_v27, %v12623_v43  ;;  %v7137_v24 = vcombine.high %v12626_v16, %v12625_v56  ;;  %v12655_v56 = vld [vmem:[#allocation501_spill] sm:$0xff]  ;;  %v12656_v16 = vld [vmem:[#allocation500_spill] sm:$0xff] }
 0x576   :  { %5817 = vmatpush2.bf16.msra.mxu0 %v7086_v25  ;;  %5858 = vmatpush2.bf16.msra.mxu1 %v7118_v28  ;;  %v12627_v25 = vld [vmem:[#allocation483_spill] sm:$0xff]  ;;  %v12628_v28 = vld [vmem:[#allocation482_spill] sm:$0xff] }
 0x577   :  { %5818 = vmatprep.subr.bf16.mxu0 %v7085_v1  ;;  %5859 = vmatprep.subr.bf16.mxu1 %v7117_v46  ;;  %v7169_v21 = vcombine.high %v12628_v28, %v12627_v25  ;;  %v7168_v1 = vcombine.low %v12628_v28, %v12627_v25  ;;  %v7135_v46 = vcombine.high %v12630_v11, %v12629_v26  ;;  %v12659_v26 = vld [vmem:[#allocation499_spill] sm:$0xff]  ;;  %v12660_v11 = vld [vmem:[#allocation498_spill] sm:$0xff] }
 0x578   :  { %v7186_v28 = vcombine.low %v12656_v16, %v12655_v56 }
 0x57a   :  { %5819 = vmatpush2.bf16.msra.mxu0 %v7084_v47  ;;  %5860 = vmatpush2.bf16.msra.mxu1 %v7116_v13  ;;  %v12631_v47 = vld [vmem:[#allocation481_spill] sm:$0xff]  ;;  %v12632_v13 = vld [vmem:[#allocation480_spill] sm:$0xff] }
 0x57b   :  { %5820 = vmatprep.subr.bf16.mxu0 %v7083_v40  ;;  %5861 = vmatprep.subr.bf16.mxu1 %v7115_v15  ;;  %v7167_v62 = vcombine.high %v12632_v13, %v12631_v47  ;;  %v7166_v40 = vcombine.low %v12632_v13, %v12631_v47  ;;  %v7133_v15 = vcombine.high %v12634_v45, %v12633_v41  ;;  %v12663_v41 = vld [vmem:[#allocation497_spill] sm:$0xff]  ;;  %v12664_v45 = vld [vmem:[#allocation496_spill] sm:$0xff] }
 0x57c   :  { %v7184_v13 = vcombine.low %v12660_v11, %v12659_v26 }
 0x57e   :  { %5821 = vmatpush2.bf16.msra.mxu0 %v7082_v32  ;;  %5862 = vmatpush2.bf16.msra.mxu1 %v7114_v22  ;;  %v12636_v32 = vld [vmem:[#allocation478_spill] sm:$0xff] }
 0x57f   :  { %5822 = vmatprep.subr.bf16.mxu0 %v7081_v61  ;;  %5863 = vmatprep.subr.bf16.mxu1 %v7113_v54  ;;  %v7165_v22 = vcombine.high %v12636_v32, %v12635_v14  ;;  %v7164_v63 = vcombine.low %v12636_v32, %v12635_v14  ;;  %v12637_v61 = vld [vmem:[#allocation445_spill] sm:$0xff]  ;;  %v7182_v32 = vcombine.low %v12664_v45, %v12663_v41 }
 0x580   :  { %v7131_v39 = vcombine.high %v12638_v38, %v12637_v61  ;;  %v12639_v54 = vld [vmem:[#allocation477_spill] sm:$0xff]  ;;  %v7130_v10 = vcombine.low %v12638_v38, %v12637_v61  ;;  %v12667_v61 = vld [vmem:[#allocation495_spill] sm:$0xff]  ;;  %v12668_v38 = vld [vmem:[#allocation494_spill] sm:$0xff] }
 0x582   :  { %5823 = vmatpush2.bf16.msra.mxu0 %v7080_v57  ;;  %5864 = vmatpush2.bf16.msra.mxu1 %v7112_v4  ;;  %v12640_v57 = vld [vmem:[#allocation476_spill] sm:$0xff] }
 0x583   :  { %5824 = vmatprep.subr.bf16.mxu0 %v7079_v60  ;;  %5865 = vmatprep.subr.bf16.mxu1 %v7111_v37  ;;  %v7163_v4 = vcombine.high %v12640_v57, %v12639_v54  ;;  %v7162_v5 = vcombine.low %v12640_v57, %v12639_v54  ;;  %v12641_v60 = vld [vmem:[#allocation443_spill] sm:$0xff]  ;;  %v7180_v57 = vcombine.low %v12668_v38, %v12667_v61 }
 0x584   :  { %v7129_v23 = vcombine.high %v12642_v52, %v12641_v60  ;;  %v12643_v37 = vld [vmem:[#allocation475_spill] sm:$0xff] }
 0x586   :  { %5825 = vmatpush2.bf16.msra.mxu0 %v7078_v2  ;;  %5866 = vmatpush2.bf16.msra.mxu1 %v7110_v3  ;;  %v7128_v2 = vcombine.low %v12642_v52, %v12641_v60  ;;  %v7160_v3 = vcombine.low %v12644_v53, %v12643_v37  ;;  %v12671_v60 = vld [vmem:[#allocation493_spill] sm:$0xff]  ;;  %v12672_v52 = vld [vmem:[#allocation492_spill] sm:$0xff] }
 0x587   :  { %5876 = vmatprep.subr.bf16.mxu0 %v7141_v42  ;;  %5917 = vmatprep.subr.bf16.mxu1 %v7173_v0  ;;  %v7127_v42 = vcombine.high %v12646_v19, %v12645_v9  ;;  %v7159_v0 = vcombine.high %v12648_v33, %v12647_v50 }
 0x589   :  { %5827 = vmatmul.mubr.bf16.vlgmr.msra.gmra.mxu0 %v5120_v18  ;;  %5868 = vmatmul.mubr.bf16.vlgmr.msra.gmra.mxu1 %v5142_v31  ;;  %v7161_v18 = vcombine.high %v12644_v53, %v12643_v37  ;;  %v7158_v31 = vcombine.low %v12648_v33, %v12647_v50  ;;  %v7178_v53 = vcombine.low %v12672_v52, %v12671_v60 }
 0x58a   :  { %5877 = vmatpush1.bf16.msra.mxu0 %v7140_v29  ;;  %5918 = vmatpush1.bf16.msra.mxu1 %v7172_v17  ;;  %v12649_v29 = vld [vmem:[#allocation471_spill] sm:$0xff]  ;;  %v12650_v17 = vld [vmem:[#allocation470_spill] sm:$0xff] }
 0x58b   :  { %5878 = vmatprep.subr.bf16.mxu0 %v7139_v51  ;;  %5919 = vmatprep.subr.bf16.mxu1 %v7171_v44  ;;  %v7157_v34 = vcombine.high %v12650_v17, %v12649_v29  ;;  %v12652_v51 = vld [vmem:[#allocation502_spill] sm:$0xff]  ;;  %v7156_v27 = vcombine.low %v12650_v17, %v12649_v29  ;;  %v12679_v29 = vld [vmem:[#allocation489_spill] sm:$0xff]  ;;  %v12680_v17 = vld [vmem:[#allocation488_spill] sm:$0xff] }
 0x58c   :  { %5908 = vmatprep.mubr.bf16.mxu0 %v5141_v48  ;;  %5949 = vmatprep.mubr.bf16.mxu1 %v5145_v12  ;;  %v7126_v48 = vcombine.low %v12646_v19, %v12645_v9  ;;  %v7189_v43 = vcombine.high %v12652_v51, %v12651_v35  ;;  %v7188_v44 = vcombine.low %v12652_v51, %v12651_v35  ;;  %v12653_v12 = vld [vmem:[#allocation469_spill] sm:$0xff]  ;;  %v12675_v9 = vld [vmem:[#allocation491_spill] sm:$0xff]  ;;  %v12676_v19 = vld [vmem:[#allocation490_spill] sm:$0xff] }
 0x58d   :  { %v7176_v33 = vcombine.low %v12676_v19, %v12675_v9  ;;  %v5127_v35 = vrot.slane %v10995_v55, %v10016_v8  ;;  %v7276_v8 = vld [vmem:[%s11212_s5 + $0x38] sm:$0xff]   ;;  %v7277_v55 = vld [vmem:[%s11212_s5 + $0x70] sm:$0xff]  }
 0x58e   :  { %5879 = vmatpush1.bf16.msra.mxu0 %v7138_v20  ;;  %5920 = vmatpush1.bf16.msra.mxu1 %v7170_v49  ;;  %v12654_v20 = vld [vmem:[#allocation468_spill] sm:$0xff] }
 0x58f   :  { %5880 = vmatprep.subr.bf16.mxu0 %v7137_v24  ;;  %5921 = vmatprep.subr.bf16.mxu1 %v7169_v21  ;;  %v7155_v49 = vcombine.high %v12654_v20, %v12653_v12  ;;  %v7187_v24 = vcombine.high %v12656_v16, %v12655_v56  ;;  %v7154_v25 = vcombine.low %v12654_v20, %v12653_v12  ;;  %v12657_v21 = vld [vmem:[#allocation467_spill] sm:$0xff]  ;;  %v7279_v20 = vld [vmem:[%s11212_s5 + $0x68] sm:$0xff]   ;;  %v7281_v56 = vld [vmem:[%s11212_s5 + $0x60] sm:$0xff]  }
 0x590   :  { %v7278_v12 = vld [vmem:[%s11212_s5 + $0x30] sm:$0xff]   ;;  %v7282_v16 = vld [vmem:[%s11212_s5 + $0x20] sm:$0xff]  }
 0x592   :  { %5881 = vmatpush1.bf16.msra.mxu0 %v7136_v59  ;;  %5922 = vmatpush1.bf16.msra.mxu1 %v7168_v1  ;;  %v12658_v59 = vld [vmem:[#allocation466_spill] sm:$0xff] }
 0x593   :  { %5882 = vmatprep.subr.bf16.mxu0 %v7135_v46  ;;  %5923 = vmatprep.subr.bf16.mxu1 %v7167_v62  ;;  %v7153_v1 = vcombine.high %v12658_v59, %v12657_v21  ;;  %v7185_v46 = vcombine.high %v12660_v11, %v12659_v26  ;;  %v7152_v47 = vcombine.low %v12658_v59, %v12657_v21  ;;  %v12661_v62 = vld [vmem:[#allocation465_spill] sm:$0xff]  ;;  %v7286_v21 = vld [vmem:[%s11212_s5 + $0x10] sm:$0xff]  }
 0x594   :  { %v7287_v59 = vld [vmem:[%s11212_s5 + $0x48] sm:$0xff]   ;;  %v7289_v26 = vld [vmem:[%s11212_s5 + $0x40] sm:$0xff]  }
 0x595   :  { %v7290_v11 = vld [vmem:[%s11212_s5] sm:$0xff]  }
 0x596   :  { %5883 = vmatpush1.bf16.msra.mxu0 %v7134_v36  ;;  %5924 = vmatpush1.bf16.msra.mxu1 %v7166_v40  ;;  %v12662_v36 = vld [vmem:[#allocation464_spill] sm:$0xff] }
 0x597   :  { %5884 = vmatprep.subr.bf16.mxu0 %v7133_v15  ;;  %5925 = vmatprep.subr.bf16.mxu1 %v7165_v22  ;;  %v7151_v40 = vcombine.high %v12662_v36, %v12661_v62  ;;  %v7183_v15 = vcombine.high %v12664_v45, %v12663_v41  ;;  %v7150_v14 = vcombine.low %v12662_v36, %v12661_v62  ;;  %v12665_v22 = vld [vmem:[#allocation463_spill] sm:$0xff] }
 0x59a   :  { %5885 = vmatpush1.bf16.msra.mxu0 %v7132_v7  ;;  %5926 = vmatpush1.bf16.msra.mxu1 %v7164_v63  ;;  %v12666_v7 = vld [vmem:[#allocation462_spill] sm:$0xff] }
 0x59b   :  { %5886 = vmatprep.subr.bf16.mxu0 %v7131_v39  ;;  %5927 = vmatprep.subr.bf16.mxu1 %v7163_v4  ;;  %v7149_v63 = vcombine.high %v12666_v7, %v12665_v22  ;;  %v7181_v39 = vcombine.high %v12668_v38, %v12667_v61  ;;  %v7148_v54 = vcombine.low %v12666_v7, %v12665_v22  ;;  %v12669_v4 = vld [vmem:[#allocation461_spill] sm:$0xff]  ;;  %v5960_v22 = vld [vmem:[%s11211_s4] sm:$0x3] }
 0x59e   :  { %5887 = vmatpush1.bf16.msra.mxu0 %v7130_v10  ;;  %5928 = vmatpush1.bf16.msra.mxu1 %v7162_v5  ;;  %v12670_v10 = vld [vmem:[#allocation460_spill] sm:$0xff] }
 0x59f   :  { %5888 = vmatprep.subr.bf16.mxu0 %v7129_v23  ;;  %5929 = vmatprep.subr.bf16.mxu1 %v7161_v18  ;;  %v7147_v5 = vcombine.high %v12670_v10, %v12669_v4  ;;  %v7179_v23 = vcombine.high %v12672_v52, %v12671_v60  ;;  %v7146_v37 = vcombine.low %v12670_v10, %v12669_v4  ;;  %v12673_v18 = vld [vmem:[#allocation459_spill] sm:$0xff] }
 0x5a2   :  { %5889 = vmatpush1.bf16.msra.mxu0 %v7128_v2  ;;  %5930 = vmatpush1.bf16.msra.mxu1 %v7160_v3  ;;  %v12674_v2 = vld [vmem:[#allocation458_spill] sm:$0xff] }
 0x5a3   :  { %5890 = vmatprep.subr.bf16.mxu0 %v7127_v42  ;;  %5931 = vmatprep.subr.bf16.mxu1 %v7159_v0  ;;  %v7145_v3 = vcombine.high %v12674_v2, %v12673_v18  ;;  %v7177_v42 = vcombine.high %v12676_v19, %v12675_v9  ;;  %v7144_v50 = vcombine.low %v12674_v2, %v12673_v18  ;;  %v12677_v0 = vld [vmem:[#allocation457_spill] sm:$0xff] }
 0x5a6   :  { %5891 = vmatpush1.bf16.msra.mxu0 %v7126_v48  ;;  %5932 = vmatpush1.bf16.msra.mxu1 %v7158_v31  ;;  %v12678_v48 = vld [vmem:[#allocation456_spill] sm:$0xff] }
 0x5a7   :  { %5892 = vmatprep.subr.bf16.mxu0 %v7157_v34  ;;  %5933 = vmatprep.subr.bf16.mxu1 %v7189_v43  ;;  %v7143_v31 = vcombine.high %v12678_v48, %v12677_v0  ;;  %v7175_v34 = vcombine.high %v12680_v17, %v12679_v29  ;;  %v7142_v51 = vcombine.low %v12678_v48, %v12677_v0 }
 0x5a8   :  { %v7174_v43 = vcombine.low %v12680_v17, %v12679_v29 }
 0x5aa   :  { %5893 = vmatpush2.bf16.msra.mxu0 %v7156_v27  ;;  %5934 = vmatpush2.bf16.msra.mxu1 %v7188_v44  ;;  %v5143_v27 = vcombine.high %v5127_v35, %v5127_v35  ;;  %v7275_v44 = vld [vmem:[%s11212_s5 + $0x78] sm:$0xff]  }
 0x5ab   :  { %5894 = vmatprep.subr.bf16.mxu0 %v7155_v49  ;;  %5935 = vmatprep.subr.bf16.mxu1 %v7187_v24  ;;  %v7280_v49 = vld [vmem:[%s11212_s5 + $0x28] sm:$0xff]   ;;  %v7283_v24 = vld [vmem:[%s11212_s5 + $0x58] sm:$0xff]  }
 0x5ae   :  { %5895 = vmatpush2.bf16.msra.mxu0 %v7154_v25  ;;  %5936 = vmatpush2.bf16.msra.mxu1 %v7186_v28  ;;  %v7284_v25 = vld [vmem:[%s11212_s5 + $0x18] sm:$0xff]   ;;  %v7285_v28 = vld [vmem:[%s11212_s5 + $0x50] sm:$0xff]  }
 0x5af   :  { %5896 = vmatprep.subr.bf16.mxu0 %v7153_v1  ;;  %5937 = vmatprep.subr.bf16.mxu1 %v7185_v46  ;;  %v7288_v1 = vld [vmem:[%s11212_s5 + $0x8] sm:$0xff]  }
 0x5b2   :  { %5897 = vmatpush2.bf16.msra.mxu0 %v7152_v47  ;;  %5938 = vmatpush2.bf16.msra.mxu1 %v7184_v13 }
 0x5b3   :  { %5898 = vmatprep.subr.bf16.mxu0 %v7151_v40  ;;  %5939 = vmatprep.subr.bf16.mxu1 %v7183_v15 }
 0x5b6   :  { %5899 = vmatpush2.bf16.msra.mxu0 %v7150_v14  ;;  %5940 = vmatpush2.bf16.msra.mxu1 %v7182_v32 }
 0x5b7   :  { %5900 = vmatprep.subr.bf16.mxu0 %v7149_v63  ;;  %5941 = vmatprep.subr.bf16.mxu1 %v7181_v39 }
 0x5ba   :  { %5901 = vmatpush2.bf16.msra.mxu0 %v7148_v54  ;;  %5942 = vmatpush2.bf16.msra.mxu1 %v7180_v57  ;;  %v12681_v54 = vsub.s32 0, %v10004_v58 }
 0x5bb   :  { %5902 = vmatprep.subr.bf16.mxu0 %v7147_v5  ;;  %5943 = vmatprep.subr.bf16.mxu1 %v7179_v23  ;;  %v12682_v23 = vsub.s32 1, %v10004_v58 }
 0x5bc   :  { %v5965_v57 = vrot.slane %v5960_v22, %v12681_v54 }
 0x5be   :  { %5903 = vmatpush2.bf16.msra.mxu0 %v7146_v37  ;;  %5944 = vmatpush2.bf16.msra.mxu1 %v7178_v53  ;;  %v5969_v37 = vrot.slane %v5960_v22, %v12682_v23 }
 0x5bf   :  { %5904 = vmatprep.subr.bf16.mxu0 %v7145_v3  ;;  %5945 = vmatprep.subr.bf16.mxu1 %v7177_v42 }
 0x5c2   :  { %5905 = vmatpush2.bf16.msra.mxu0 %v7144_v50  ;;  %5946 = vmatpush2.bf16.msra.mxu1 %v7176_v33 }
 0x5c3   :  { %5906 = vmatprep.subr.bf16.mxu0 %v7143_v31  ;;  %5947 = vmatprep.subr.bf16.mxu1 %v7175_v34 }
 0x5c6   :  { %5907 = vmatpush2.bf16.msra.mxu0 %v7142_v51  ;;  %5948 = vmatpush2.bf16.msra.mxu1 %v7174_v43 }
 0x5c7   :  { %7215 = vmatprep.subr.bf16.mxu0 %v7275_v44 }
 0x5c9   :  { %5909 = vmatmul.mubr.bf16.vlgmr.msra.gmra.mxu0 %v5127_v35  ;;  %5950 = vmatmul.mubr.bf16.vlgmr.msra.gmra.mxu1 %v5143_v27 }
 0x5ca   :  { %7216 = vmatpush3.bf16.msra.mxu0 %v7276_v8 }
 0x5cb   :  { %7217 = vmatprep.subr.bf16.mxu0 %v7277_v55 }
 0x5ce   :  { %7218 = vmatpush3.bf16.msra.mxu0 %v7278_v12 }
 0x5cf   :  { %7219 = vmatprep.subr.bf16.mxu0 %v7279_v20 }
 0x5d2   :  { %7220 = vmatpush3.bf16.msra.mxu0 %v7280_v49 }
 0x5d3   :  { %7221 = vmatprep.subr.bf16.mxu0 %v7281_v56 }
 0x5d6   :  { %7222 = vmatpush3.bf16.msra.mxu0 %v7282_v16 }
 0x5d7   :  { %7223 = vmatprep.subr.bf16.mxu0 %v7283_v24 }
 0x5da   :  { %7224 = vmatpush3.bf16.msra.mxu0 %v7284_v25 }
 0x5db   :  { %7225 = vmatprep.subr.bf16.mxu0 %v7285_v28 }
 0x5de   :  { %7226 = vmatpush3.bf16.msra.mxu0 %v7286_v21 }
 0x5df   :  { %7227 = vmatprep.subr.bf16.mxu0 %v7287_v59 }
 0x5e2   :  { %7228 = vmatpush3.bf16.msra.mxu0 %v7288_v1 }
 0x5e3   :  { %7229 = vmatprep.subr.bf16.mxu0 %v7289_v26 }
 0x5e6   :  { %7230 = vmatpush3.bf16.msra.mxu0 %v7290_v11 }
 0x649   :  { %v5828_v46 = vpop.f32.mrf.mxu0  ;;  %v5869_v47 = vpop.f32.mrf.mxu1 }
 0x64a   :  { %v5870_v13 = vadd.f32 %v5869_v47, %v5828_v46 }
 0x64b   :  { %v5830_v62 = vpop.f32.mrf.mxu0  ;;  %v5871_v36 = vpop.f32.mrf.mxu1 }
 0x64c   :  { %v5872_v7 = vadd.f32 %v5871_v36, %v5830_v62 }
 0x64d   :  { %v5832_v40 = vpop.f32.mrf.mxu0  ;;  %v5873_v41 = vpop.f32.mrf.mxu1 }
 0x64f   :  { %v5833_v45 = vpop.f32.mrf.mxu0  ;;  %v5874_v15 = vpop.f32.mrf.mxu1 }
 0x689   :  { %v5910_v14 = vpop.f32.mrf.mxu0  ;;  %v5951_v32 = vpop.f32.mrf.mxu1 }
 0x68a   :  { %v5911_v63 = vadd.f32 %v5910_v14, %v5870_v13 }
 0x68b   :  { %v5912_v61 = vpop.f32.mrf.mxu0  ;;  %v5953_v38 = vpop.f32.mrf.mxu1 }
 0x68c   :  { %v5952_v39 = vadd.f32 %v5951_v32, %v5911_v63  ;;  %v5913_v4 = vadd.f32 %v5912_v61, %v5872_v7 }
 0x68d   :  { %v5914_v10 = vpop.f32.mrf.mxu0  ;;  %v5955_v5 = vpop.f32.mrf.mxu1 }
 0x68e   :  { %v5958_v60 = vadd.f32 %v5952_v39, %v10862_v30  ;;  %v5954_v52 = vadd.f32 %v5953_v38, %v5913_v4  ;;  %v7190_v30 = vld [vmem:[%s11213_s6] ss:$0 sm:$0xff] }
 0x68f   :  { %v5915_v53 = vpop.f32.mrf.mxu0  ;;  %v5956_v18 = vpop.f32.mrf.mxu1 }
 0x690   :  { %v5972_v2 = vadd.f32 %v5965_v57, %v5958_v60  ;;  %v5959_v3 = vadd.f32 %v5954_v52, %v10865_v6 }
 0x692   :  { %v5973_v9 = vadd.f32 %v5969_v37, %v5959_v3  ;;  %v5974_v19 = vmax.f32 %v5972_v2, 0.0 }
 0x694   :  { %v5975_v42 = vmax.f32 %v5973_v9, 0.0  ;;  %v5976_v33 = vpack.c.bf16 %v5974_v19, %v5974_v19 }
 0x696   :  { %v5977_v50 = vpack.c.bf16 %v5975_v42, %v5975_v42 }
 0x698   :  { %6145 = vmatprep.mubr.bf16.mxu0 %v5977_v50 }
 0x699   :  { %6146 = vmatmul.mubr.bf16.vlgmr.msra.gmra.mxu0 %v5976_v33 }
 0x759   :  { %v7231_v0 = vpop.f32.mrf.mxu0 }
 0x75b   :  { %v7232_v48 = vpop.f32.mrf.mxu0 }
 0x75c   :  { %v7233_v58 = vadd.f32 %v7232_v48, %v7231_v0 }
 0x75d   :  { %v7234_v31 = vpop.f32.mrf.mxu0 }
 0x75e   :  { %v6148_v29 = vadd.f32 %v7233_v58, %v7190_v30 }
 0x75f   :  { %v7235_v6 = vpop.f32.mrf.mxu0 }
 0x760   :  { %6153 = vst [vmem:[#allocation6] sm:$0x3] %v6148_v29 }
 0x761   :  { %7302 = shalt.err (!%p7299_p4)
}
 0x762   :  { %6163 = dma.vmem_to_hbm [thread:$0]  %s6161_s19, 32, %s11214_s7, [#allocation7]  }
 0x763   :  { %7319 = dma.done.wait [#allocation7], 32  }
 0x764   :  { %7320 = vsyncadd [#allocation7], 4294967264 }
 0x765   :  { %6167 = vsyncpa [#allocation7], 1 }
 0x766   :  { %6168 = vsyncmov [#allocation5] }
 0x769   :  { %s6169_s6 = vpop.sfrf %6168 }
 0x76a   :  { %p7207_p5 = scmp.ne.s32.totalorder %s6169_s6, 0 }
 0x76c   :  { %6173 = shalt.err (%p7207_p5)  }
 0x76d   :  { %6175 = vsyncmov [#allocation5 + $0x1] }
 0x770   :  { %s6176_s23 = vpop.sfrf %6175 }
 0x771   :  { %p7208_p6 = scmp.ne.s32.totalorder %s6176_s23, 0 }
 0x773   :  { %6180 = shalt.err (%p7208_p6)  }
 0x774   :  { %6182 = vsyncmov [#allocation5 + $0x2] }
 0x777   :  { %s6183_s1 = vpop.sfrf %6182 }
 0x778   :  { %p7209_p7 = scmp.ne.s32.totalorder %s6183_s1, 0 }
 0x77a   :  { %6187 = shalt.err (%p7209_p7)  }
 0x77b   :  { %6189 = vsyncmov [#allocation5 + $0x3] }
 0x77e   :  { %s6190_s24 = vpop.sfrf %6189 }
 0x77f   :  { %p7210_p8 = scmp.ne.s32.totalorder %s6190_s24, 0 }
 0x781   :  { %6194 = shalt.err (%p7210_p8)  }

</bundles_post_ra>
